<compile_context>
chip_gen: v7x
topology: tpu7x:2x2x1
jax: 0.10.0
libtpu: 0.0.40
codegen_flags: <defaults>
</compile_context>

<pallas_src>
import math

import jax
import jax.numpy as jnp
from jax import lax
from jax.experimental import pallas as pl
from jax.experimental.pallas import tpu as pltpu

# ----------------------------- configuration -------------------------------
LATENT_DIM = 32
DEC_DIM = 32
STATE_DIM = 16
ACTION_DIM = 8
HIDDEN_DIM = 64
NUM_HEADS = 2
NUM_ENC_LAYERS = 2
NUM_DEC_LAYERS = 2
WINDOW_SIZE = 8                 # constructor arg `window_size`
MASKING_RATE = 0.5
BATCH = 2
SEQ_LEN = WINDOW_SIZE + 1       # input_seq length (window + goal) = 9
DEC_SEQ = WINDOW_SIZE + 2       # self.window_size with use_goal=True = 10


# ----------------------------- block-spec helpers ---------------------------
def _full_spec(arr):
    """Whole array resident in VMEM, identical block for every grid step."""
    nd = arr.ndim
    return pl.BlockSpec(arr.shape, lambda b: (0,) * nd)


def _batch_spec(arr):
    """One batch row per grid step (leading dim indexed by program id)."""
    nd = arr.ndim
    return pl.BlockSpec((1,) + arr.shape[1:], lambda b: (b,) + (0,) * (nd - 1))


# ----------------------------- in-kernel math --------------------------------
def _layernorm(x, g, b):
    mu = jnp.mean(x, axis=-1, keepdims=True)
    var = jnp.mean((x - mu) ** 2, axis=-1, keepdims=True)
    return (x - mu) * lax.rsqrt(var + 1e-5) * g + b


def _mha(x, wqkv, bqkv, wo, bo, bias, num_heads):
    """Multi-head self-attention on a single (S, D) tile.

    Single fused QKV matmul (one MXU push).  Heads live inside one 128-lane
    vreg at D=32, so per-head score/PV matmuls use small static lane slices.
    concat(heads) @ Wo is folded as sum_h o_h @ Wo[rows of head h].
    """
    S, D = x.shape
    hd = D // num_heads
    scale = 1.0 / math.sqrt(hd)
    qkv = jnp.dot(x.astype(jnp.bfloat16), wqkv,
                  preferred_element_type=jnp.float32) + bqkv            # (S, 3D)
    qkv = qkv.astype(jnp.bfloat16)
    out = bo                                                            # (1, D), broadcasts
    for h in range(num_heads):
        lo, hi = h * hd, (h + 1) * hd
        q = qkv[:, lo:hi]
        k = qkv[:, D + lo:D + hi]
        v = qkv[:, 2 * D + lo:2 * D + hi]
        s = lax.dot_general(q, k, (((1,), (1,)), ((), ())),
                            preferred_element_type=jnp.float32) * scale
        if bias is not None:
            s = s + bias
        s = s - jnp.max(s, axis=-1, keepdims=True)
        p = jnp.exp(s)
        p = p * pl.reciprocal(jnp.sum(p, axis=-1, keepdims=True), approx=True)
        o = jnp.dot(p.astype(jnp.bfloat16), v, preferred_element_type=jnp.float32)
        out = out + jnp.dot(o.astype(jnp.bfloat16), wo[lo:hi, :],
                            preferred_element_type=jnp.float32)
    return out


# ----------------------------- fused encoder kernel -------------------------
def _make_encoder_kernel(num_layers, num_heads, with_dec):
    def kernel(x_ref, pos_ref, obs_w_ref, obs_b_ref,
               wqkv_ref, bqkv_ref, wo_ref, bo_ref,
               ln1_g_ref, ln1_b_ref, ff1_w_ref, ff1_b_ref,
               ff2_w_ref, ff2_b_ref, ln2_g_ref, ln2_b_ref,
               norm_g_ref, norm_b_ref, *rest):
        if with_dec:
            dec_w_ref, dec_b_ref, latent_ref, dec_ref = rest
        else:
            (latent_ref,) = rest

        # Token embedding.  Row 0 of x is zeros and row 0 of pos carries
        # (cls_token + pos_emb[0] - obs_bias), so row 0 becomes the cls token
        # and no in-kernel concatenation is needed.
        x = jnp.dot(x_ref[0].astype(jnp.bfloat16), obs_w_ref[...],
                    preferred_element_type=jnp.float32) + obs_b_ref[...] + pos_ref[0]

        for l in range(num_layers):
            # nn.TransformerEncoderLayer (batch_first, post-norm, ReLU FFN,
            # dropout = eval-mode identity).
            a = _mha(x, wqkv_ref[l], bqkv_ref[l], wo_ref[l], bo_ref[l],
                     None, num_heads)
            x = _layernorm(x + a, ln1_g_ref[l], ln1_b_ref[l])
            h = jnp.dot(x.astype(jnp.bfloat16), ff1_w_ref[l],
                        preferred_element_type=jnp.float32) + ff1_b_ref[l]
            h = jnp.maximum(h, 0.0)
            h = jnp.dot(h.astype(jnp.bfloat16), ff2_w_ref[l],
                        preferred_element_type=jnp.float32) + ff2_b_ref[l]
            x = _layernorm(x + h, ln2_g_ref[l], ln2_b_ref[l])

        x = _layernorm(x, norm_g_ref[...], norm_b_ref[...])  # TransformerEncoder final norm
        x = _layernorm(x, norm_g_ref[...], norm_b_ref[...])  # encoder_norm applied again (as in torch)
        latent_ref[0] = x.astype(latent_ref.dtype)
        if with_dec:
            d = jnp.dot(x.astype(jnp.bfloat16), dec_w_ref[...],
                        preferred_element_type=jnp.float32) + dec_b_ref[...]
            dec_ref[0] = d.astype(dec_ref.dtype)
    return kernel


def encoder_stack(params, x_in, pos_in, with_dec):
    """x_in: (B, S, STATE_DIM) with a zero cls row; pos_in: (B, S, D)."""
    B, S, _ = x_in.shape
    D, Dd = LATENT_DIM, DEC_DIM
    e = params["enc"]
    inputs = [x_in, pos_in, params["obs_emb"]["w"], params["obs_emb"]["b"],
              e["wqkv"], e["bqkv"], e["wo"], e["bo"],
              e["ln1_g"], e["ln1_b"], e["ff1_w"], e["ff1_b"],
              e["ff2_w"], e["ff2_b"], e["ln2_g"], e["ln2_b"],
              params["enc_norm"]["g"], params["enc_norm"]["b"]]
    in_specs = [_batch_spec(x_in), _batch_spec(pos_in)] + \
               [_full_spec(a) for a in inputs[2:]]
    if with_dec:
        inputs += [params["dec_embed"]["w"], params["dec_embed"]["b"]]
        in_specs += [_full_spec(inputs[-2]), _full_spec(inputs[-1])]
        out_shape = (jax.ShapeDtypeStruct((B, S, D), jnp.float32),
                     jax.ShapeDtypeStruct((B, S, Dd), jnp.float32))
        out_specs = (pl.BlockSpec((1, S, D), lambda b: (b, 0, 0)),
                     pl.BlockSpec((1, S, Dd), lambda b: (b, 0, 0)))
    else:
        out_shape = jax.ShapeDtypeStruct((B, S, D), jnp.float32)
        out_specs = pl.BlockSpec((1, S, D), lambda b: (b, 0, 0))
    return pl.pallas_call(
        _make_encoder_kernel(NUM_ENC_LAYERS, NUM_HEADS, with_dec),
        grid=(B,),
        in_specs=in_specs,
        out_specs=out_specs,
        out_shape=out_shape,
        compiler_params=pltpu.CompilerParams(dimension_semantics=("parallel",)),
    )(*inputs)


# ----------------------------- fused decoder kernel -------------------------
def _make_decoder_kernel(num_layers, num_heads):
    def kernel(x_ref, pos_ref, bias_ref,
               ln1_g_ref, ln1_b_ref, wqkv_ref, bqkv_ref, wo_ref, bo_ref,
               ln2_g_ref, ln2_b_ref, m1_w_ref, m1_b_ref, m2_w_ref, m2_b_ref,
               nf_g_ref, nf_b_ref, sh_w_ref, sh_b_ref, o_ref):
        x = x_ref[0] + pos_ref[0]
        bias = bias_ref[...]                          # hoisted causal mask
        for l in range(num_layers):
            # TODO(synk): `Block` undefined in the reference; minGPT-style
            # pre-norm causal block assumed.
            h = _layernorm(x, ln1_g_ref[l], ln1_b_ref[l])
            x = x + _mha(h, wqkv_ref[l], bqkv_ref[l], wo_ref[l], bo_ref[l],
                         bias, num_heads)
            h = _layernorm(x, ln2_g_ref[l], ln2_b_ref[l])
            m = jnp.dot(h.astype(jnp.bfloat16), m1_w_ref[l],
                        preferred_element_type=jnp.float32) + m1_b_ref[l]
            m = jax.nn.gelu(m)
            m = jnp.dot(m.astype(jnp.bfloat16), m2_w_ref[l],
                        preferred_element_type=jnp.float32) + m2_b_ref[l]
            x = x + m
        x = _layernorm(x, nf_g_ref[...], nf_b_ref[...])      # decoder_norm
        pred = x[1:, :]                                      # drop cls row
        sp = jnp.dot(pred.astype(jnp.bfloat16), sh_w_ref[...],
                     preferred_element_type=jnp.float32) + sh_b_ref[...]
        o_ref[0] = sp.astype(o_ref.dtype)
    return kernel


def decoder_stack(params, dec_in):
    B, S, _ = dec_in.shape
    d = params["dec"]
    # Causal additive bias, built once outside the kernel.
    i = jnp.arange(S)
    causal = jnp.where(i[None, :] <= i[:, None], 0.0, -1e30).astype(jnp.float32)
    inputs = [dec_in, params["decoder_pos_embed"], causal,
              d["ln1_g"], d["ln1_b"], d["wqkv"], d["bqkv"], d["wo"], d["bo"],
              d["ln2_g"], d["ln2_b"], d["mlp1_w"], d["mlp1_b"],
              d["mlp2_w"], d["mlp2_b"],
              params["dec_norm"]["g"], params["dec_norm"]["b"],
              params["state_head"]["w"], params["state_head"]["b"]]
    in_specs = [_batch_spec(dec_in)] + [_full_spec(a) for a in inputs[1:]]
    return pl.pallas_call(
        _make_decoder_kernel(NUM_DEC_LAYERS, NUM_HEADS),
        grid=(B,),
        in_specs=in_specs,
        out_specs=pl.BlockSpec((1, S - 1, STATE_DIM), lambda b: (b, 0, 0)),
        out_shape=jax.ShapeDtypeStruct((B, S - 1, STATE_DIM), jnp.float32),
        compiler_params=pltpu.CompilerParams(dimension_semantics=("parallel",)),
    )(*inputs)


# ----------------------------- forward ---------------------------------------
def forward(params, input_seq, actions, key):
    del actions  # reconstruct_actions=False in this configuration
    B, L, _ = input_seq.shape
    D, Dd = LATENT_DIM, DEC_DIM
    len_keep = int(L * (1 - MASKING_RATE))

    # random_masking: index math stays in XLA (tiny).
    noise = jax.random.uniform(key, (B, L))
    ids_shuffle = jnp.argsort(noise, axis=1)
    ids_restore = jnp.argsort(ids_shuffle, axis=1)
    ids_keep = ids_shuffle[:, :len_keep]
    mask = jnp.ones((B, L), jnp.float32).at[:, :len_keep].set(0.0)
    mask = jnp.take_along_axis(mask, ids_restore, axis=1)  # unused by this config's loss

    # Masking commutes with the per-token obs_emb + pos add, so gather raw
    # states / pos rows here and embed inside the fused encoder kernel.
    x_keep = jnp.take_along_axis(input_seq, ids_keep[:, :, None], axis=1)   # (B, keep, state)
    pos_rows = params["pos_emb"][0, 1:, :]                                  # (L, D)
    pos_keep = jnp.take(pos_rows, ids_keep, axis=0)                         # (B, keep, D)

    # Row 0: zeros @ W_obs + b_obs + (cls + pos0 - b_obs) == cls + pos0.
    cls_row = (params["cls_token"][0] + params["pos_emb"][:, 0, :]
               - params["obs_emb"]["b"])                                    # (1, D)
    x_in = jnp.concatenate(
        [jnp.zeros((B, 1, STATE_DIM), jnp.float32), x_keep], axis=1)
    pos_in = jnp.concatenate(
        [jnp.broadcast_to(cls_row[None], (B, 1, D)), pos_keep], axis=1)

    # --- fused encoder stack (also emits decoder_embed(latent)) -------------
    latent, dec_x = encoder_stack(params, x_in, pos_in, with_dec=True)      # (B,S,D),(B,S,Dd)

    # --- decoder input assembly (mask-token scatter) in XLA ------------------
    S = latent.shape[1]
    n_mask = L + 1 - S
    mask_tokens = jnp.broadcast_to(params["mask_token"], (B, n_mask, Dd))
    x_ = jnp.concatenate([dec_x[:, 1:, :], mask_tokens], axis=1)            # (B, L, Dd)
    x_ = jnp.take_along_axis(x_, ids_restore[:, :, None], axis=1)
    dec_in = jnp.concatenate([dec_x[:, :1, :], x_], axis=1)                 # (B, L+1, Dd)

    # --- fused decoder stack + state head ------------------------------------
    state_pred = decoder_stack(params, dec_in)                              # (B, L, state)

    # forward_loss: reconstruct_states only, use_goal_in_recognition=True
    pred_s = state_pred[:, :-1, :]
    target_states = input_seq[:, :-1, :]
    states_loss = jnp.mean(jnp.mean((pred_s - target_states) ** 2, axis=-1))
    action_loss = None

    # --- proposal path through the same fused encoder ------------------------
    first = input_seq[:, 0:1, :]
    goal = input_seq[:, -1:, :]
    px = jnp.concatenate(
        [jnp.zeros((B, 1, STATE_DIM), jnp.float32), first, goal], axis=1)
    ppos_tok = jnp.concatenate(
        [params["pos_emb"][:, 1:2, :], params["pos_emb"][:, -1:, :]], axis=1)  # (1,2,D)
    ppos = jnp.concatenate(
        [jnp.broadcast_to(cls_row[None], (B, 1, D)),
         jnp.broadcast_to(ppos_tok, (B, 2, D))], axis=1)
    plan_latent = encoder_stack(params, px, ppos, with_dec=False)           # (B, 3, D)
    sampled_plan = plan_latent[:, 0, :]
    proposal_loss = jnp.mean(jnp.abs(sampled_plan -
                                     lax.stop_gradient(latent[:, 0, :])))
    return sampled_plan, action_loss, states_loss, proposal_loss


# ----------------------------- parameters ------------------------------------
def init_params(key):
    ks = iter(jax.random.split(key, 64))

    def nrm(shape):
        return 0.02 * jax.random.normal(next(ks), shape, dtype=jnp.float32)

    def w_bf16(shape):
        # Matmul weights stored in bf16 (MXU-native); biases/LN stay f32.
        return nrm(shape).astype(jnp.bfloat16)

    D, Dd, H = LATENT_DIM, DEC_DIM, HIDDEN_DIM
    NE, ND = NUM_ENC_LAYERS, NUM_DEC_LAYERS

    enc = {
        "wqkv": w_bf16((NE, D, 3 * D)), "bqkv": jnp.zeros((NE, 1, 3 * D), jnp.float32),
        "wo": w_bf16((NE, D, D)),       "bo": jnp.zeros((NE, 1, D), jnp.float32),
        "ln1_g": jnp.ones((NE, 1, D), jnp.float32), "ln1_b": jnp.zeros((NE, 1, D), jnp.float32),
        "ff1_w": w_bf16((NE, D, H)),    "ff1_b": jnp.zeros((NE, 1, H), jnp.float32),
        "ff2_w": w_bf16((NE, H, D)),    "ff2_b": jnp.zeros((NE, 1, D), jnp.float32),
        "ln2_g": jnp.ones((NE, 1, D), jnp.float32), "ln2_b": jnp.zeros((NE, 1, D), jnp.float32),
    }
    dec = {
        "ln1_g": jnp.ones((ND, 1, Dd), jnp.float32), "ln1_b": jnp.zeros((ND, 1, Dd), jnp.float32),
        "wqkv": w_bf16((ND, Dd, 3 * Dd)), "bqkv": jnp.zeros((ND, 1, 3 * Dd), jnp.float32),
        "wo": w_bf16((ND, Dd, Dd)),       "bo": jnp.zeros((ND, 1, Dd), jnp.float32),
        "ln2_g": jnp.ones((ND, 1, Dd), jnp.float32), "ln2_b": jnp.zeros((ND, 1, Dd), jnp.float32),
        "mlp1_w": w_bf16((ND, Dd, 4 * Dd)), "mlp1_b": jnp.zeros((ND, 1, 4 * Dd), jnp.float32),
        "mlp2_w": w_bf16((ND, 4 * Dd, Dd)), "mlp2_b": jnp.zeros((ND, 1, Dd), jnp.float32),
    }
    return {
        "cls_token": nrm((1, 1, D)),
        "pos_emb": nrm((1, WINDOW_SIZE + 2, D)),
        "obs_emb": {"w": w_bf16((STATE_DIM, D)), "b": jnp.zeros((1, D), jnp.float32)},
        "enc": enc,
        "enc_norm": {"g": jnp.ones((1, D), jnp.float32), "b": jnp.zeros((1, D), jnp.float32)},
        "dec_embed": {"w": w_bf16((D, Dd)), "b": jnp.zeros((1, Dd), jnp.float32)},
        "mask_token": nrm((1, 1, Dd)),
        "decoder_pos_embed": jnp.zeros((1, DEC_SEQ, Dd), jnp.float32),  # requires_grad=False, zeros
        "dec": dec,
        "dec_norm": {"g": jnp.ones((1, Dd), jnp.float32), "b": jnp.zeros((1, Dd), jnp.float32)},
        "state_head": {"w": w_bf16((Dd, STATE_DIM)), "b": jnp.zeros((1, STATE_DIM), jnp.float32)},
        # action_emb / action_head / ln_f / proj_model are unused in this
        # configuration's forward pass and therefore not materialized.
    }


# ----------------------------- main -------------------------------------------
if __name__ == "__main__":
    root = jax.random.PRNGKey(0)
    pkey, dkey, akey, mkey = jax.random.split(root, 4)

    params = init_params(pkey)
    input_seq = jax.random.normal(dkey, (BATCH, SEQ_LEN, STATE_DIM), jnp.float32)
    actions = jax.random.normal(akey, (BATCH, SEQ_LEN, ACTION_DIM), jnp.float32)

    fwd = jax.jit(forward)
    out = fwd(params, input_seq, actions, mkey)
    out = jax.block_until_ready(out)

    sampled_plan, action_loss, states_loss, proposal_loss = out
    assert sampled_plan.shape == (BATCH, LATENT_DIM)
    assert action_loss is None
    assert jnp.isfinite(states_loss) and jnp.isfinite(proposal_loss)
    print("KERNEL_OK")
</pallas_src>

<mosaic_0001>
module attributes {stable_mosaic.version = 11 : i64} {
  func.func @kernel(%arg0: i32, %arg1: memref<1x3x16xf32, #tpu.memory_space<vmem>>, %arg2: memref<1x3x32xf32, #tpu.memory_space<vmem>>, %arg3: memref<16x32xbf16, #tpu.memory_space<vmem>>, %arg4: memref<1x32xf32, #tpu.memory_space<vmem>>, %arg5: memref<2x32x96xbf16, #tpu.memory_space<vmem>>, %arg6: memref<2x1x96xf32, #tpu.memory_space<vmem>>, %arg7: memref<2x32x32xbf16, #tpu.memory_space<vmem>>, %arg8: memref<2x1x32xf32, #tpu.memory_space<vmem>>, %arg9: memref<2x1x32xf32, #tpu.memory_space<vmem>>, %arg10: memref<2x1x32xf32, #tpu.memory_space<vmem>>, %arg11: memref<2x32x64xbf16, #tpu.memory_space<vmem>>, %arg12: memref<2x1x64xf32, #tpu.memory_space<vmem>>, %arg13: memref<2x64x32xbf16, #tpu.memory_space<vmem>>, %arg14: memref<2x1x32xf32, #tpu.memory_space<vmem>>, %arg15: memref<2x1x32xf32, #tpu.memory_space<vmem>>, %arg16: memref<2x1x32xf32, #tpu.memory_space<vmem>>, %arg17: memref<1x32xf32, #tpu.memory_space<vmem>>, %arg18: memref<1x32xf32, #tpu.memory_space<vmem>>, %arg19: memref<1x3x32xf32, #tpu.memory_space<vmem>>) attributes {dimension_semantics = [#tpu.dimension_semantics<parallel>], iteration_bounds = array<i64: 2>, scalar_prefetch = 0 : i64, scratch_operands = 0 : i64, tpu.core_type = #tpu.core_type<tc>, window_params = [{transform_indices = @transform_0, window_bounds = array<i64: 1, 3, 16>}, {transform_indices = @transform_1, window_bounds = array<i64: 1, 3, 32>}, {pipeline_mode = #tpu.pipeline_mode<synchronous>, transform_indices = @transform_2, window_bounds = array<i64: 16, 32>}, {pipeline_mode = #tpu.pipeline_mode<synchronous>, transform_indices = @transform_3, window_bounds = array<i64: 1, 32>}, {pipeline_mode = #tpu.pipeline_mode<synchronous>, transform_indices = @transform_4, window_bounds = array<i64: 2, 32, 96>}, {pipeline_mode = #tpu.pipeline_mode<synchronous>, transform_indices = @transform_5, window_bounds = array<i64: 2, 1, 96>}, {pipeline_mode = #tpu.pipeline_mode<synchronous>, transform_indices = @transform_6, window_bounds = array<i64: 2, 32, 32>}, {pipeline_mode = #tpu.pipeline_mode<synchronous>, transform_indices = @transform_7, window_bounds = array<i64: 2, 1, 32>}, {pipeline_mode = #tpu.pipeline_mode<synchronous>, transform_indices = @transform_8, window_bounds = array<i64: 2, 1, 32>}, {pipeline_mode = #tpu.pipeline_mode<synchronous>, transform_indices = @transform_9, window_bounds = array<i64: 2, 1, 32>}, {pipeline_mode = #tpu.pipeline_mode<synchronous>, transform_indices = @transform_10, window_bounds = array<i64: 2, 32, 64>}, {pipeline_mode = #tpu.pipeline_mode<synchronous>, transform_indices = @transform_11, window_bounds = array<i64: 2, 1, 64>}, {pipeline_mode = #tpu.pipeline_mode<synchronous>, transform_indices = @transform_12, window_bounds = array<i64: 2, 64, 32>}, {pipeline_mode = #tpu.pipeline_mode<synchronous>, transform_indices = @transform_13, window_bounds = array<i64: 2, 1, 32>}, {pipeline_mode = #tpu.pipeline_mode<synchronous>, transform_indices = @transform_14, window_bounds = array<i64: 2, 1, 32>}, {pipeline_mode = #tpu.pipeline_mode<synchronous>, transform_indices = @transform_15, window_bounds = array<i64: 2, 1, 32>}, {pipeline_mode = #tpu.pipeline_mode<synchronous>, transform_indices = @transform_16, window_bounds = array<i64: 1, 32>}, {pipeline_mode = #tpu.pipeline_mode<synchronous>, transform_indices = @transform_17, window_bounds = array<i64: 1, 32>}, {transform_indices = @transform_18, window_bounds = array<i64: 1, 3, 32>}]} {
    %c0 = arith.constant 0 : index
    %c0_0 = arith.constant 0 : index
    %c0_1 = arith.constant 0 : index
    %0 = vector.load %arg1[%c0, %c0_0, %c0_1] : memref<1x3x16xf32, #tpu.memory_space<vmem>>, vector<1x3x16xf32>
    %1 = vector.shape_cast %0 : vector<1x3x16xf32> to vector<3x16xf32>
    %2 = arith.truncf %1 : vector<3x16xf32> to vector<3x16xbf16>
    %c0_2 = arith.constant 0 : index
    %c0_3 = arith.constant 0 : index
    %3 = vector.load %arg3[%c0_2, %c0_3] : memref<16x32xbf16, #tpu.memory_space<vmem>>, vector<16x32xbf16>
    %cst = arith.constant dense<0.000000e+00> : vector<3x32xf32>
    %4 = tpu.matmul %2, %3, %cst {dimension_numbers = #tpu.dot_dimension_numbers<[1], [0], [0], [1], [0, 0, 1, 1], [], []>} : vector<3x16xbf16>, vector<16x32xbf16>, vector<3x32xf32> -> vector<3x32xf32>
    %c0_4 = arith.constant 0 : index
    %c0_5 = arith.constant 0 : index
    %5 = vector.load %arg4[%c0_4, %c0_5] : memref<1x32xf32, #tpu.memory_space<vmem>>, vector<1x32xf32>
    %6 = vector.broadcast %5 : vector<1x32xf32> to vector<3x32xf32>
    %7 = arith.addf %4, %6 : vector<3x32xf32>
    %c0_6 = arith.constant 0 : index
    %c0_7 = arith.constant 0 : index
    %c0_8 = arith.constant 0 : index
    %8 = vector.load %arg2[%c0_6, %c0_7, %c0_8] : memref<1x3x32xf32, #tpu.memory_space<vmem>>, vector<1x3x32xf32>
    %9 = vector.shape_cast %8 : vector<1x3x32xf32> to vector<3x32xf32>
    %10 = arith.addf %7, %9 : vector<3x32xf32>
    %c0_9 = arith.constant 0 : index
    %c0_10 = arith.constant 0 : index
    %c0_11 = arith.constant 0 : index
    %11 = vector.load %arg5[%c0_9, %c0_10, %c0_11] : memref<2x32x96xbf16, #tpu.memory_space<vmem>>, vector<1x32x96xbf16>
    %12 = vector.shape_cast %11 : vector<1x32x96xbf16> to vector<32x96xbf16>
    %c0_12 = arith.constant 0 : index
    %c0_13 = arith.constant 0 : index
    %c0_14 = arith.constant 0 : index
    %13 = vector.load %arg6[%c0_12, %c0_13, %c0_14] : memref<2x1x96xf32, #tpu.memory_space<vmem>>, vector<1x1x96xf32>
    %14 = vector.shape_cast %13 : vector<1x1x96xf32> to vector<1x96xf32>
    %c0_15 = arith.constant 0 : index
    %c0_16 = arith.constant 0 : index
    %c0_17 = arith.constant 0 : index
    %15 = vector.load %arg7[%c0_15, %c0_16, %c0_17] : memref<2x32x32xbf16, #tpu.memory_space<vmem>>, vector<1x32x32xbf16>
    %16 = vector.shape_cast %15 : vector<1x32x32xbf16> to vector<32x32xbf16>
    %c0_18 = arith.constant 0 : index
    %c0_19 = arith.constant 0 : index
    %c0_20 = arith.constant 0 : index
    %17 = vector.load %arg8[%c0_18, %c0_19, %c0_20] : memref<2x1x32xf32, #tpu.memory_space<vmem>>, vector<1x1x32xf32>
    %18 = vector.shape_cast %17 : vector<1x1x32xf32> to vector<1x32xf32>
    %19 = arith.truncf %10 : vector<3x32xf32> to vector<3x32xbf16>
    %cst_21 = arith.constant dense<0.000000e+00> : vector<3x96xf32>
    %20 = tpu.matmul %19, %12, %cst_21 {dimension_numbers = #tpu.dot_dimension_numbers<[1], [0], [0], [1], [0, 0, 1, 1], [], []>} : vector<3x32xbf16>, vector<32x96xbf16>, vector<3x96xf32> -> vector<3x96xf32>
    %21 = vector.broadcast %14 : vector<1x96xf32> to vector<3x96xf32>
    %22 = arith.addf %20, %21 : vector<3x96xf32>
    %23 = arith.truncf %22 : vector<3x96xf32> to vector<3x96xbf16>
    %24 = vector.extract_strided_slice %23 {offsets = [0, 0], sizes = [3, 16], strides = [1, 1]} : vector<3x96xbf16> to vector<3x16xbf16>
    %25 = vector.extract_strided_slice %23 {offsets = [0, 32], sizes = [3, 16], strides = [1, 1]} : vector<3x96xbf16> to vector<3x16xbf16>
    %26 = vector.extract_strided_slice %23 {offsets = [0, 64], sizes = [3, 16], strides = [1, 1]} : vector<3x96xbf16> to vector<3x16xbf16>
    %cst_22 = arith.constant dense<0.000000e+00> : vector<3x3xf32>
    %27 = tpu.matmul %24, %25, %cst_22 {dimension_numbers = #tpu.dot_dimension_numbers<[1], [1], [0], [0], [0, 0, 1, 0], [], []>} : vector<3x16xbf16>, vector<3x16xbf16>, vector<3x3xf32> -> vector<3x3xf32>
    %cst_23 = arith.constant 2.500000e-01 : f32
    %28 = vector.broadcast %cst_23 : f32 to vector<3x3xf32>
    %29 = arith.mulf %27, %28 : vector<3x3xf32>
    %cst_24 = arith.constant dense<0xFF800000> : vector<3xf32>
    %30 = vector.multi_reduction <maximumf>, %29, %cst_24 [1] : vector<3x3xf32> to vector<3xf32>
    %31 = vector.shape_cast %30 : vector<3xf32> to vector<3x1xf32>
    %32 = vector.broadcast %31 : vector<3x1xf32> to vector<3x3xf32>
    %33 = arith.subf %29, %32 : vector<3x3xf32>
    %34 = math.exp %33 : vector<3x3xf32>
    %cst_25 = arith.constant dense<0.000000e+00> : vector<3xf32>
    %35 = vector.multi_reduction <add>, %34, %cst_25 [1] : vector<3x3xf32> to vector<3xf32>
    %36 = vector.shape_cast %35 : vector<3xf32> to vector<3x1xf32>
    %37 = tpu.reciprocal %36 {approx = true} : vector<3x1xf32> -> vector<3x1xf32>
    %38 = vector.broadcast %37 : vector<3x1xf32> to vector<3x3xf32>
    %39 = arith.mulf %34, %38 : vector<3x3xf32>
    %40 = arith.truncf %39 : vector<3x3xf32> to vector<3x3xbf16>
    %cst_26 = arith.constant dense<0.000000e+00> : vector<3x16xf32>
    %41 = tpu.matmul %40, %26, %cst_26 {dimension_numbers = #tpu.dot_dimension_numbers<[1], [0], [0], [1], [0, 0, 1, 1], [], []>} : vector<3x3xbf16>, vector<3x16xbf16>, vector<3x16xf32> -> vector<3x16xf32>
    %42 = arith.truncf %41 : vector<3x16xf32> to vector<3x16xbf16>
    %43 = vector.extract_strided_slice %16 {offsets = [0, 0], sizes = [16, 32], strides = [1, 1]} : vector<32x32xbf16> to vector<16x32xbf16>
    %cst_27 = arith.constant dense<0.000000e+00> : vector<3x32xf32>
    %44 = tpu.matmul %42, %43, %cst_27 {dimension_numbers = #tpu.dot_dimension_numbers<[1], [0], [0], [1], [0, 0, 1, 1], [], []>} : vector<3x16xbf16>, vector<16x32xbf16>, vector<3x32xf32> -> vector<3x32xf32>
    %45 = vector.broadcast %18 : vector<1x32xf32> to vector<3x32xf32>
    %46 = arith.addf %45, %44 : vector<3x32xf32>
    %47 = vector.extract_strided_slice %23 {offsets = [0, 16], sizes = [3, 16], strides = [1, 1]} : vector<3x96xbf16> to vector<3x16xbf16>
    %48 = vector.extract_strided_slice %23 {offsets = [0, 48], sizes = [3, 16], strides = [1, 1]} : vector<3x96xbf16> to vector<3x16xbf16>
    %49 = vector.extract_strided_slice %23 {offsets = [0, 80], sizes = [3, 16], strides = [1, 1]} : vector<3x96xbf16> to vector<3x16xbf16>
    %cst_28 = arith.constant dense<0.000000e+00> : vector<3x3xf32>
    %50 = tpu.matmul %47, %48, %cst_28 {dimension_numbers = #tpu.dot_dimension_numbers<[1], [1], [0], [0], [0, 0, 1, 0], [], []>} : vector<3x16xbf16>, vector<3x16xbf16>, vector<3x3xf32> -> vector<3x3xf32>
    %cst_29 = arith.constant 2.500000e-01 : f32
    %51 = vector.broadcast %cst_29 : f32 to vector<3x3xf32>
    %52 = arith.mulf %50, %51 : vector<3x3xf32>
    %cst_30 = arith.constant dense<0xFF800000> : vector<3xf32>
    %53 = vector.multi_reduction <maximumf>, %52, %cst_30 [1] : vector<3x3xf32> to vector<3xf32>
    %54 = vector.shape_cast %53 : vector<3xf32> to vector<3x1xf32>
    %55 = vector.broadcast %54 : vector<3x1xf32> to vector<3x3xf32>
    %56 = arith.subf %52, %55 : vector<3x3xf32>
    %57 = math.exp %56 : vector<3x3xf32>
    %cst_31 = arith.constant dense<0.000000e+00> : vector<3xf32>
    %58 = vector.multi_reduction <add>, %57, %cst_31 [1] : vector<3x3xf32> to vector<3xf32>
    %59 = vector.shape_cast %58 : vector<3xf32> to vector<3x1xf32>
    %60 = tpu.reciprocal %59 {approx = true} : vector<3x1xf32> -> vector<3x1xf32>
    %61 = vector.broadcast %60 : vector<3x1xf32> to vector<3x3xf32>
    %62 = arith.mulf %57, %61 : vector<3x3xf32>
    %63 = arith.truncf %62 : vector<3x3xf32> to vector<3x3xbf16>
    %cst_32 = arith.constant dense<0.000000e+00> : vector<3x16xf32>
    %64 = tpu.matmul %63, %49, %cst_32 {dimension_numbers = #tpu.dot_dimension_numbers<[1], [0], [0], [1], [0, 0, 1, 1], [], []>} : vector<3x3xbf16>, vector<3x16xbf16>, vector<3x16xf32> -> vector<3x16xf32>
    %65 = arith.truncf %64 : vector<3x16xf32> to vector<3x16xbf16>
    %66 = vector.extract_strided_slice %16 {offsets = [16, 0], sizes = [16, 32], strides = [1, 1]} : vector<32x32xbf16> to vector<16x32xbf16>
    %cst_33 = arith.constant dense<0.000000e+00> : vector<3x32xf32>
    %67 = tpu.matmul %65, %66, %cst_33 {dimension_numbers = #tpu.dot_dimension_numbers<[1], [0], [0], [1], [0, 0, 1, 1], [], []>} : vector<3x16xbf16>, vector<16x32xbf16>, vector<3x32xf32> -> vector<3x32xf32>
    %68 = arith.addf %46, %67 : vector<3x32xf32>
    %69 = arith.addf %10, %68 : vector<3x32xf32>
    %c0_34 = arith.constant 0 : index
    %c0_35 = arith.constant 0 : index
    %c0_36 = arith.constant 0 : index
    %70 = vector.load %arg9[%c0_34, %c0_35, %c0_36] : memref<2x1x32xf32, #tpu.memory_space<vmem>>, vector<1x1x32xf32>
    %71 = vector.shape_cast %70 : vector<1x1x32xf32> to vector<1x32xf32>
    %c0_37 = arith.constant 0 : index
    %c0_38 = arith.constant 0 : index
    %c0_39 = arith.constant 0 : index
    %72 = vector.load %arg10[%c0_37, %c0_38, %c0_39] : memref<2x1x32xf32, #tpu.memory_space<vmem>>, vector<1x1x32xf32>
    %73 = vector.shape_cast %72 : vector<1x1x32xf32> to vector<1x32xf32>
    %cst_40 = arith.constant dense<0.000000e+00> : vector<3xf32>
    %74 = vector.multi_reduction <add>, %69, %cst_40 [1] : vector<3x32xf32> to vector<3xf32>
    %75 = vector.shape_cast %74 : vector<3xf32> to vector<3x1xf32>
    %cst_41 = arith.constant 3.200000e+01 : f32
    %76 = vector.broadcast %cst_41 : f32 to vector<3x1xf32>
    %77 = arith.divf %75, %76 : vector<3x1xf32>
    %78 = vector.broadcast %77 : vector<3x1xf32> to vector<3x32xf32>
    %79 = arith.subf %69, %78 : vector<3x32xf32>
    %80 = arith.mulf %79, %79 : vector<3x32xf32>
    %cst_42 = arith.constant dense<0.000000e+00> : vector<3xf32>
    %81 = vector.multi_reduction <add>, %80, %cst_42 [1] : vector<3x32xf32> to vector<3xf32>
    %82 = vector.shape_cast %81 : vector<3xf32> to vector<3x1xf32>
    %cst_43 = arith.constant 3.200000e+01 : f32
    %83 = vector.broadcast %cst_43 : f32 to vector<3x1xf32>
    %84 = arith.divf %82, %83 : vector<3x1xf32>
    %85 = vector.broadcast %77 : vector<3x1xf32> to vector<3x32xf32>
    %86 = arith.subf %69, %85 : vector<3x32xf32>
    %cst_44 = arith.constant 9.99999974E-6 : f32
    %87 = vector.broadcast %cst_44 : f32 to vector<3x1xf32>
    %88 = arith.addf %84, %87 : vector<3x1xf32>
    %89 = math.rsqrt %88 : vector<3x1xf32>
    %90 = vector.broadcast %89 : vector<3x1xf32> to vector<3x32xf32>
    %91 = arith.mulf %86, %90 : vector<3x32xf32>
    %92 = vector.broadcast %71 : vector<1x32xf32> to vector<3x32xf32>
    %93 = arith.mulf %91, %92 : vector<3x32xf32>
    %94 = vector.broadcast %73 : vector<1x32xf32> to vector<3x32xf32>
    %95 = arith.addf %93, %94 : vector<3x32xf32>
    %96 = arith.truncf %95 : vector<3x32xf32> to vector<3x32xbf16>
    %c0_45 = arith.constant 0 : index
    %c0_46 = arith.constant 0 : index
    %c0_47 = arith.constant 0 : index
    %97 = vector.load %arg11[%c0_45, %c0_46, %c0_47] : memref<2x32x64xbf16, #tpu.memory_space<vmem>>, vector<1x32x64xbf16>
    %98 = vector.shape_cast %97 : vector<1x32x64xbf16> to vector<32x64xbf16>
    %cst_48 = arith.constant dense<0.000000e+00> : vector<3x64xf32>
    %99 = tpu.matmul %96, %98, %cst_48 {dimension_numbers = #tpu.dot_dimension_numbers<[1], [0], [0], [1], [0, 0, 1, 1], [], []>} : vector<3x32xbf16>, vector<32x64xbf16>, vector<3x64xf32> -> vector<3x64xf32>
    %c0_49 = arith.constant 0 : index
    %c0_50 = arith.constant 0 : index
    %c0_51 = arith.constant 0 : index
    %100 = vector.load %arg12[%c0_49, %c0_50, %c0_51] : memref<2x1x64xf32, #tpu.memory_space<vmem>>, vector<1x1x64xf32>
    %101 = vector.shape_cast %100 : vector<1x1x64xf32> to vector<1x64xf32>
    %102 = vector.broadcast %101 : vector<1x64xf32> to vector<3x64xf32>
    %103 = arith.addf %99, %102 : vector<3x64xf32>
    %cst_52 = arith.constant 0.000000e+00 : f32
    %104 = vector.broadcast %cst_52 : f32 to vector<3x64xf32>
    %105 = arith.maximumf %103, %104 : vector<3x64xf32>
    %106 = arith.truncf %105 : vector<3x64xf32> to vector<3x64xbf16>
    %c0_53 = arith.constant 0 : index
    %c0_54 = arith.constant 0 : index
    %c0_55 = arith.constant 0 : index
    %107 = vector.load %arg13[%c0_53, %c0_54, %c0_55] : memref<2x64x32xbf16, #tpu.memory_space<vmem>>, vector<1x64x32xbf16>
    %108 = vector.shape_cast %107 : vector<1x64x32xbf16> to vector<64x32xbf16>
    %cst_56 = arith.constant dense<0.000000e+00> : vector<3x32xf32>
    %109 = tpu.matmul %106, %108, %cst_56 {dimension_numbers = #tpu.dot_dimension_numbers<[1], [0], [0], [1], [0, 0, 1, 1], [], []>} : vector<3x64xbf16>, vector<64x32xbf16>, vector<3x32xf32> -> vector<3x32xf32>
    %c0_57 = arith.constant 0 : index
    %c0_58 = arith.constant 0 : index
    %c0_59 = arith.constant 0 : index
    %110 = vector.load %arg14[%c0_57, %c0_58, %c0_59] : memref<2x1x32xf32, #tpu.memory_space<vmem>>, vector<1x1x32xf32>
    %111 = vector.shape_cast %110 : vector<1x1x32xf32> to vector<1x32xf32>
    %112 = vector.broadcast %111 : vector<1x32xf32> to vector<3x32xf32>
    %113 = arith.addf %109, %112 : vector<3x32xf32>
    %114 = arith.addf %95, %113 : vector<3x32xf32>
    %c0_60 = arith.constant 0 : index
    %c0_61 = arith.constant 0 : index
    %c0_62 = arith.constant 0 : index
    %115 = vector.load %arg15[%c0_60, %c0_61, %c0_62] : memref<2x1x32xf32, #tpu.memory_space<vmem>>, vector<1x1x32xf32>
    %116 = vector.shape_cast %115 : vector<1x1x32xf32> to vector<1x32xf32>
    %c0_63 = arith.constant 0 : index
    %c0_64 = arith.constant 0 : index
    %c0_65 = arith.constant 0 : index
    %117 = vector.load %arg16[%c0_63, %c0_64, %c0_65] : memref<2x1x32xf32, #tpu.memory_space<vmem>>, vector<1x1x32xf32>
    %118 = vector.shape_cast %117 : vector<1x1x32xf32> to vector<1x32xf32>
    %cst_66 = arith.constant dense<0.000000e+00> : vector<3xf32>
    %119 = vector.multi_reduction <add>, %114, %cst_66 [1] : vector<3x32xf32> to vector<3xf32>
    %120 = vector.shape_cast %119 : vector<3xf32> to vector<3x1xf32>
    %cst_67 = arith.constant 3.200000e+01 : f32
    %121 = vector.broadcast %cst_67 : f32 to vector<3x1xf32>
    %122 = arith.divf %120, %121 : vector<3x1xf32>
    %123 = vector.broadcast %122 : vector<3x1xf32> to vector<3x32xf32>
    %124 = arith.subf %114, %123 : vector<3x32xf32>
    %125 = arith.mulf %124, %124 : vector<3x32xf32>
    %cst_68 = arith.constant dense<0.000000e+00> : vector<3xf32>
    %126 = vector.multi_reduction <add>, %125, %cst_68 [1] : vector<3x32xf32> to vector<3xf32>
    %127 = vector.shape_cast %126 : vector<3xf32> to vector<3x1xf32>
    %cst_69 = arith.constant 3.200000e+01 : f32
    %128 = vector.broadcast %cst_69 : f32 to vector<3x1xf32>
    %129 = arith.divf %127, %128 : vector<3x1xf32>
    %130 = vector.broadcast %122 : vector<3x1xf32> to vector<3x32xf32>
    %131 = arith.subf %114, %130 : vector<3x32xf32>
    %cst_70 = arith.constant 9.99999974E-6 : f32
    %132 = vector.broadcast %cst_70 : f32 to vector<3x1xf32>
    %133 = arith.addf %129, %132 : vector<3x1xf32>
    %134 = math.rsqrt %133 : vector<3x1xf32>
    %135 = vector.broadcast %134 : vector<3x1xf32> to vector<3x32xf32>
    %136 = arith.mulf %131, %135 : vector<3x32xf32>
    %137 = vector.broadcast %116 : vector<1x32xf32> to vector<3x32xf32>
    %138 = arith.mulf %136, %137 : vector<3x32xf32>
    %139 = vector.broadcast %118 : vector<1x32xf32> to vector<3x32xf32>
    %140 = arith.addf %138, %139 : vector<3x32xf32>
    %c1 = arith.constant 1 : index
    %c0_71 = arith.constant 0 : index
    %c0_72 = arith.constant 0 : index
    %141 = vector.load %arg5[%c1, %c0_71, %c0_72] : memref<2x32x96xbf16, #tpu.memory_space<vmem>>, vector<1x32x96xbf16>
    %142 = vector.shape_cast %141 : vector<1x32x96xbf16> to vector<32x96xbf16>
    %c1_73 = arith.constant 1 : index
    %c0_74 = arith.constant 0 : index
    %c0_75 = arith.constant 0 : index
    %143 = vector.load %arg6[%c1_73, %c0_74, %c0_75] : memref<2x1x96xf32, #tpu.memory_space<vmem>>, vector<1x1x96xf32>
    %144 = vector.shape_cast %143 : vector<1x1x96xf32> to vector<1x96xf32>
    %c1_76 = arith.constant 1 : index
    %c0_77 = arith.constant 0 : index
    %c0_78 = arith.constant 0 : index
    %145 = vector.load %arg7[%c1_76, %c0_77, %c0_78] : memref<2x32x32xbf16, #tpu.memory_space<vmem>>, vector<1x32x32xbf16>
    %146 = vector.shape_cast %145 : vector<1x32x32xbf16> to vector<32x32xbf16>
    %c1_79 = arith.constant 1 : index
    %c0_80 = arith.constant 0 : index
    %c0_81 = arith.constant 0 : index
    %147 = vector.load %arg8[%c1_79, %c0_80, %c0_81] : memref<2x1x32xf32, #tpu.memory_space<vmem>>, vector<1x1x32xf32>
    %148 = vector.shape_cast %147 : vector<1x1x32xf32> to vector<1x32xf32>
    %149 = arith.truncf %140 : vector<3x32xf32> to vector<3x32xbf16>
    %cst_82 = arith.constant dense<0.000000e+00> : vector<3x96xf32>
    %150 = tpu.matmul %149, %142, %cst_82 {dimension_numbers = #tpu.dot_dimension_numbers<[1], [0], [0], [1], [0, 0, 1, 1], [], []>} : vector<3x32xbf16>, vector<32x96xbf16>, vector<3x96xf32> -> vector<3x96xf32>
    %151 = vector.broadcast %144 : vector<1x96xf32> to vector<3x96xf32>
    %152 = arith.addf %150, %151 : vector<3x96xf32>
    %153 = arith.truncf %152 : vector<3x96xf32> to vector<3x96xbf16>
    %154 = vector.extract_strided_slice %153 {offsets = [0, 0], sizes = [3, 16], strides = [1, 1]} : vector<3x96xbf16> to vector<3x16xbf16>
    %155 = vector.extract_strided_slice %153 {offsets = [0, 32], sizes = [3, 16], strides = [1, 1]} : vector<3x96xbf16> to vector<3x16xbf16>
    %156 = vector.extract_strided_slice %153 {offsets = [0, 64], sizes = [3, 16], strides = [1, 1]} : vector<3x96xbf16> to vector<3x16xbf16>
    %cst_83 = arith.constant dense<0.000000e+00> : vector<3x3xf32>
    %157 = tpu.matmul %154, %155, %cst_83 {dimension_numbers = #tpu.dot_dimension_numbers<[1], [1], [0], [0], [0, 0, 1, 0], [], []>} : vector<3x16xbf16>, vector<3x16xbf16>, vector<3x3xf32> -> vector<3x3xf32>
    %cst_84 = arith.constant 2.500000e-01 : f32
    %158 = vector.broadcast %cst_84 : f32 to vector<3x3xf32>
    %159 = arith.mulf %157, %158 : vector<3x3xf32>
    %cst_85 = arith.constant dense<0xFF800000> : vector<3xf32>
    %160 = vector.multi_reduction <maximumf>, %159, %cst_85 [1] : vector<3x3xf32> to vector<3xf32>
    %161 = vector.shape_cast %160 : vector<3xf32> to vector<3x1xf32>
    %162 = vector.broadcast %161 : vector<3x1xf32> to vector<3x3xf32>
    %163 = arith.subf %159, %162 : vector<3x3xf32>
    %164 = math.exp %163 : vector<3x3xf32>
    %cst_86 = arith.constant dense<0.000000e+00> : vector<3xf32>
    %165 = vector.multi_reduction <add>, %164, %cst_86 [1] : vector<3x3xf32> to vector<3xf32>
    %166 = vector.shape_cast %165 : vector<3xf32> to vector<3x1xf32>
    %167 = tpu.reciprocal %166 {approx = true} : vector<3x1xf32> -> vector<3x1xf32>
    %168 = vector.broadcast %167 : vector<3x1xf32> to vector<3x3xf32>
    %169 = arith.mulf %164, %168 : vector<3x3xf32>
    %170 = arith.truncf %169 : vector<3x3xf32> to vector<3x3xbf16>
    %cst_87 = arith.constant dense<0.000000e+00> : vector<3x16xf32>
    %171 = tpu.matmul %170, %156, %cst_87 {dimension_numbers = #tpu.dot_dimension_numbers<[1], [0], [0], [1], [0, 0, 1, 1], [], []>} : vector<3x3xbf16>, vector<3x16xbf16>, vector<3x16xf32> -> vector<3x16xf32>
    %172 = arith.truncf %171 : vector<3x16xf32> to vector<3x16xbf16>
    %173 = vector.extract_strided_slice %146 {offsets = [0, 0], sizes = [16, 32], strides = [1, 1]} : vector<32x32xbf16> to vector<16x32xbf16>
    %cst_88 = arith.constant dense<0.000000e+00> : vector<3x32xf32>
    %174 = tpu.matmul %172, %173, %cst_88 {dimension_numbers = #tpu.dot_dimension_numbers<[1], [0], [0], [1], [0, 0, 1, 1], [], []>} : vector<3x16xbf16>, vector<16x32xbf16>, vector<3x32xf32> -> vector<3x32xf32>
    %175 = vector.broadcast %148 : vector<1x32xf32> to vector<3x32xf32>
    %176 = arith.addf %175, %174 : vector<3x32xf32>
    %177 = vector.extract_strided_slice %153 {offsets = [0, 16], sizes = [3, 16], strides = [1, 1]} : vector<3x96xbf16> to vector<3x16xbf16>
    %178 = vector.extract_strided_slice %153 {offsets = [0, 48], sizes = [3, 16], strides = [1, 1]} : vector<3x96xbf16> to vector<3x16xbf16>
    %179 = vector.extract_strided_slice %153 {offsets = [0, 80], sizes = [3, 16], strides = [1, 1]} : vector<3x96xbf16> to vector<3x16xbf16>
    %cst_89 = arith.constant dense<0.000000e+00> : vector<3x3xf32>
    %180 = tpu.matmul %177, %178, %cst_89 {dimension_numbers = #tpu.dot_dimension_numbers<[1], [1], [0], [0], [0, 0, 1, 0], [], []>} : vector<3x16xbf16>, vector<3x16xbf16>, vector<3x3xf32> -> vector<3x3xf32>
    %cst_90 = arith.constant 2.500000e-01 : f32
    %181 = vector.broadcast %cst_90 : f32 to vector<3x3xf32>
    %182 = arith.mulf %180, %181 : vector<3x3xf32>
    %cst_91 = arith.constant dense<0xFF800000> : vector<3xf32>
    %183 = vector.multi_reduction <maximumf>, %182, %cst_91 [1] : vector<3x3xf32> to vector<3xf32>
    %184 = vector.shape_cast %183 : vector<3xf32> to vector<3x1xf32>
    %185 = vector.broadcast %184 : vector<3x1xf32> to vector<3x3xf32>
    %186 = arith.subf %182, %185 : vector<3x3xf32>
    %187 = math.exp %186 : vector<3x3xf32>
    %cst_92 = arith.constant dense<0.000000e+00> : vector<3xf32>
    %188 = vector.multi_reduction <add>, %187, %cst_92 [1] : vector<3x3xf32> to vector<3xf32>
    %189 = vector.shape_cast %188 : vector<3xf32> to vector<3x1xf32>
    %190 = tpu.reciprocal %189 {approx = true} : vector<3x1xf32> -> vector<3x1xf32>
    %191 = vector.broadcast %190 : vector<3x1xf32> to vector<3x3xf32>
    %192 = arith.mulf %187, %191 : vector<3x3xf32>
    %193 = arith.truncf %192 : vector<3x3xf32> to vector<3x3xbf16>
    %cst_93 = arith.constant dense<0.000000e+00> : vector<3x16xf32>
    %194 = tpu.matmul %193, %179, %cst_93 {dimension_numbers = #tpu.dot_dimension_numbers<[1], [0], [0], [1], [0, 0, 1, 1], [], []>} : vector<3x3xbf16>, vector<3x16xbf16>, vector<3x16xf32> -> vector<3x16xf32>
    %195 = arith.truncf %194 : vector<3x16xf32> to vector<3x16xbf16>
    %196 = vector.extract_strided_slice %146 {offsets = [16, 0], sizes = [16, 32], strides = [1, 1]} : vector<32x32xbf16> to vector<16x32xbf16>
    %cst_94 = arith.constant dense<0.000000e+00> : vector<3x32xf32>
    %197 = tpu.matmul %195, %196, %cst_94 {dimension_numbers = #tpu.dot_dimension_numbers<[1], [0], [0], [1], [0, 0, 1, 1], [], []>} : vector<3x16xbf16>, vector<16x32xbf16>, vector<3x32xf32> -> vector<3x32xf32>
    %198 = arith.addf %176, %197 : vector<3x32xf32>
    %199 = arith.addf %140, %198 : vector<3x32xf32>
    %c1_95 = arith.constant 1 : index
    %c0_96 = arith.constant 0 : index
    %c0_97 = arith.constant 0 : index
    %200 = vector.load %arg9[%c1_95, %c0_96, %c0_97] : memref<2x1x32xf32, #tpu.memory_space<vmem>>, vector<1x1x32xf32>
    %201 = vector.shape_cast %200 : vector<1x1x32xf32> to vector<1x32xf32>
    %c1_98 = arith.constant 1 : index
    %c0_99 = arith.constant 0 : index
    %c0_100 = arith.constant 0 : index
    %202 = vector.load %arg10[%c1_98, %c0_99, %c0_100] : memref<2x1x32xf32, #tpu.memory_space<vmem>>, vector<1x1x32xf32>
    %203 = vector.shape_cast %202 : vector<1x1x32xf32> to vector<1x32xf32>
    %cst_101 = arith.constant dense<0.000000e+00> : vector<3xf32>
    %204 = vector.multi_reduction <add>, %199, %cst_101 [1] : vector<3x32xf32> to vector<3xf32>
    %205 = vector.shape_cast %204 : vector<3xf32> to vector<3x1xf32>
    %cst_102 = arith.constant 3.200000e+01 : f32
    %206 = vector.broadcast %cst_102 : f32 to vector<3x1xf32>
    %207 = arith.divf %205, %206 : vector<3x1xf32>
    %208 = vector.broadcast %207 : vector<3x1xf32> to vector<3x32xf32>
    %209 = arith.subf %199, %208 : vector<3x32xf32>
    %210 = arith.mulf %209, %209 : vector<3x32xf32>
    %cst_103 = arith.constant dense<0.000000e+00> : vector<3xf32>
    %211 = vector.multi_reduction <add>, %210, %cst_103 [1] : vector<3x32xf32> to vector<3xf32>
    %212 = vector.shape_cast %211 : vector<3xf32> to vector<3x1xf32>
    %cst_104 = arith.constant 3.200000e+01 : f32
    %213 = vector.broadcast %cst_104 : f32 to vector<3x1xf32>
    %214 = arith.divf %212, %213 : vector<3x1xf32>
    %215 = vector.broadcast %207 : vector<3x1xf32> to vector<3x32xf32>
    %216 = arith.subf %199, %215 : vector<3x32xf32>
    %cst_105 = arith.constant 9.99999974E-6 : f32
    %217 = vector.broadcast %cst_105 : f32 to vector<3x1xf32>
    %218 = arith.addf %214, %217 : vector<3x1xf32>
    %219 = math.rsqrt %218 : vector<3x1xf32>
    %220 = vector.broadcast %219 : vector<3x1xf32> to vector<3x32xf32>
    %221 = arith.mulf %216, %220 : vector<3x32xf32>
    %222 = vector.broadcast %201 : vector<1x32xf32> to vector<3x32xf32>
    %223 = arith.mulf %221, %222 : vector<3x32xf32>
    %224 = vector.broadcast %203 : vector<1x32xf32> to vector<3x32xf32>
    %225 = arith.addf %223, %224 : vector<3x32xf32>
    %226 = arith.truncf %225 : vector<3x32xf32> to vector<3x32xbf16>
    %c1_106 = arith.constant 1 : index
    %c0_107 = arith.constant 0 : index
    %c0_108 = arith.constant 0 : index
    %227 = vector.load %arg11[%c1_106, %c0_107, %c0_108] : memref<2x32x64xbf16, #tpu.memory_space<vmem>>, vector<1x32x64xbf16>
    %228 = vector.shape_cast %227 : vector<1x32x64xbf16> to vector<32x64xbf16>
    %cst_109 = arith.constant dense<0.000000e+00> : vector<3x64xf32>
    %229 = tpu.matmul %226, %228, %cst_109 {dimension_numbers = #tpu.dot_dimension_numbers<[1], [0], [0], [1], [0, 0, 1, 1], [], []>} : vector<3x32xbf16>, vector<32x64xbf16>, vector<3x64xf32> -> vector<3x64xf32>
    %c1_110 = arith.constant 1 : index
    %c0_111 = arith.constant 0 : index
    %c0_112 = arith.constant 0 : index
    %230 = vector.load %arg12[%c1_110, %c0_111, %c0_112] : memref<2x1x64xf32, #tpu.memory_space<vmem>>, vector<1x1x64xf32>
    %231 = vector.shape_cast %230 : vector<1x1x64xf32> to vector<1x64xf32>
    %232 = vector.broadcast %231 : vector<1x64xf32> to vector<3x64xf32>
    %233 = arith.addf %229, %232 : vector<3x64xf32>
    %cst_113 = arith.constant 0.000000e+00 : f32
    %234 = vector.broadcast %cst_113 : f32 to vector<3x64xf32>
    %235 = arith.maximumf %233, %234 : vector<3x64xf32>
    %236 = arith.truncf %235 : vector<3x64xf32> to vector<3x64xbf16>
    %c1_114 = arith.constant 1 : index
    %c0_115 = arith.constant 0 : index
    %c0_116 = arith.constant 0 : index
    %237 = vector.load %arg13[%c1_114, %c0_115, %c0_116] : memref<2x64x32xbf16, #tpu.memory_space<vmem>>, vector<1x64x32xbf16>
    %238 = vector.shape_cast %237 : vector<1x64x32xbf16> to vector<64x32xbf16>
    %cst_117 = arith.constant dense<0.000000e+00> : vector<3x32xf32>
    %239 = tpu.matmul %236, %238, %cst_117 {dimension_numbers = #tpu.dot_dimension_numbers<[1], [0], [0], [1], [0, 0, 1, 1], [], []>} : vector<3x64xbf16>, vector<64x32xbf16>, vector<3x32xf32> -> vector<3x32xf32>
    %c1_118 = arith.constant 1 : index
    %c0_119 = arith.constant 0 : index
    %c0_120 = arith.constant 0 : index
    %240 = vector.load %arg14[%c1_118, %c0_119, %c0_120] : memref<2x1x32xf32, #tpu.memory_space<vmem>>, vector<1x1x32xf32>
    %241 = vector.shape_cast %240 : vector<1x1x32xf32> to vector<1x32xf32>
    %242 = vector.broadcast %241 : vector<1x32xf32> to vector<3x32xf32>
    %243 = arith.addf %239, %242 : vector<3x32xf32>
    %244 = arith.addf %225, %243 : vector<3x32xf32>
    %c1_121 = arith.constant 1 : index
    %c0_122 = arith.constant 0 : index
    %c0_123 = arith.constant 0 : index
    %245 = vector.load %arg15[%c1_121, %c0_122, %c0_123] : memref<2x1x32xf32, #tpu.memory_space<vmem>>, vector<1x1x32xf32>
    %246 = vector.shape_cast %245 : vector<1x1x32xf32> to vector<1x32xf32>
    %c1_124 = arith.constant 1 : index
    %c0_125 = arith.constant 0 : index
    %c0_126 = arith.constant 0 : index
    %247 = vector.load %arg16[%c1_124, %c0_125, %c0_126] : memref<2x1x32xf32, #tpu.memory_space<vmem>>, vector<1x1x32xf32>
    %248 = vector.shape_cast %247 : vector<1x1x32xf32> to vector<1x32xf32>
    %cst_127 = arith.constant dense<0.000000e+00> : vector<3xf32>
    %249 = vector.multi_reduction <add>, %244, %cst_127 [1] : vector<3x32xf32> to vector<3xf32>
    %250 = vector.shape_cast %249 : vector<3xf32> to vector<3x1xf32>
    %cst_128 = arith.constant 3.200000e+01 : f32
    %251 = vector.broadcast %cst_128 : f32 to vector<3x1xf32>
    %252 = arith.divf %250, %251 : vector<3x1xf32>
    %253 = vector.broadcast %252 : vector<3x1xf32> to vector<3x32xf32>
    %254 = arith.subf %244, %253 : vector<3x32xf32>
    %255 = arith.mulf %254, %254 : vector<3x32xf32>
    %cst_129 = arith.constant dense<0.000000e+00> : vector<3xf32>
    %256 = vector.multi_reduction <add>, %255, %cst_129 [1] : vector<3x32xf32> to vector<3xf32>
    %257 = vector.shape_cast %256 : vector<3xf32> to vector<3x1xf32>
    %cst_130 = arith.constant 3.200000e+01 : f32
    %258 = vector.broadcast %cst_130 : f32 to vector<3x1xf32>
    %259 = arith.divf %257, %258 : vector<3x1xf32>
    %260 = vector.broadcast %252 : vector<3x1xf32> to vector<3x32xf32>
    %261 = arith.subf %244, %260 : vector<3x32xf32>
    %cst_131 = arith.constant 9.99999974E-6 : f32
    %262 = vector.broadcast %cst_131 : f32 to vector<3x1xf32>
    %263 = arith.addf %259, %262 : vector<3x1xf32>
    %264 = math.rsqrt %263 : vector<3x1xf32>
    %265 = vector.broadcast %264 : vector<3x1xf32> to vector<3x32xf32>
    %266 = arith.mulf %261, %265 : vector<3x32xf32>
    %267 = vector.broadcast %246 : vector<1x32xf32> to vector<3x32xf32>
    %268 = arith.mulf %266, %267 : vector<3x32xf32>
    %269 = vector.broadcast %248 : vector<1x32xf32> to vector<3x32xf32>
    %270 = arith.addf %268, %269 : vector<3x32xf32>
    %c0_132 = arith.constant 0 : index
    %c0_133 = arith.constant 0 : index
    %271 = vector.load %arg17[%c0_132, %c0_133] : memref<1x32xf32, #tpu.memory_space<vmem>>, vector<1x32xf32>
    %c0_134 = arith.constant 0 : index
    %c0_135 = arith.constant 0 : index
    %272 = vector.load %arg18[%c0_134, %c0_135] : memref<1x32xf32, #tpu.memory_space<vmem>>, vector<1x32xf32>
    %cst_136 = arith.constant dense<0.000000e+00> : vector<3xf32>
    %273 = vector.multi_reduction <add>, %270, %cst_136 [1] : vector<3x32xf32> to vector<3xf32>
    %274 = vector.shape_cast %273 : vector<3xf32> to vector<3x1xf32>
    %cst_137 = arith.constant 3.200000e+01 : f32
    %275 = vector.broadcast %cst_137 : f32 to vector<3x1xf32>
    %276 = arith.divf %274, %275 : vector<3x1xf32>
    %277 = vector.broadcast %276 : vector<3x1xf32> to vector<3x32xf32>
    %278 = arith.subf %270, %277 : vector<3x32xf32>
    %279 = arith.mulf %278, %278 : vector<3x32xf32>
    %cst_138 = arith.constant dense<0.000000e+00> : vector<3xf32>
    %280 = vector.multi_reduction <add>, %279, %cst_138 [1] : vector<3x32xf32> to vector<3xf32>
    %281 = vector.shape_cast %280 : vector<3xf32> to vector<3x1xf32>
    %cst_139 = arith.constant 3.200000e+01 : f32
    %282 = vector.broadcast %cst_139 : f32 to vector<3x1xf32>
    %283 = arith.divf %281, %282 : vector<3x1xf32>
    %284 = vector.broadcast %276 : vector<3x1xf32> to vector<3x32xf32>
    %285 = arith.subf %270, %284 : vector<3x32xf32>
    %cst_140 = arith.constant 9.99999974E-6 : f32
    %286 = vector.broadcast %cst_140 : f32 to vector<3x1xf32>
    %287 = arith.addf %283, %286 : vector<3x1xf32>
    %288 = math.rsqrt %287 : vector<3x1xf32>
    %289 = vector.broadcast %288 : vector<3x1xf32> to vector<3x32xf32>
    %290 = arith.mulf %285, %289 : vector<3x32xf32>
    %291 = vector.broadcast %271 : vector<1x32xf32> to vector<3x32xf32>
    %292 = arith.mulf %290, %291 : vector<3x32xf32>
    %293 = vector.broadcast %272 : vector<1x32xf32> to vector<3x32xf32>
    %294 = arith.addf %292, %293 : vector<3x32xf32>
    %c0_141 = arith.constant 0 : index
    %c0_142 = arith.constant 0 : index
    %295 = vector.load %arg17[%c0_141, %c0_142] : memref<1x32xf32, #tpu.memory_space<vmem>>, vector<1x32xf32>
    %c0_143 = arith.constant 0 : index
    %c0_144 = arith.constant 0 : index
    %296 = vector.load %arg18[%c0_143, %c0_144] : memref<1x32xf32, #tpu.memory_space<vmem>>, vector<1x32xf32>
    %cst_145 = arith.constant dense<0.000000e+00> : vector<3xf32>
    %297 = vector.multi_reduction <add>, %294, %cst_145 [1] : vector<3x32xf32> to vector<3xf32>
    %298 = vector.shape_cast %297 : vector<3xf32> to vector<3x1xf32>
    %cst_146 = arith.constant 3.200000e+01 : f32
    %299 = vector.broadcast %cst_146 : f32 to vector<3x1xf32>
    %300 = arith.divf %298, %299 : vector<3x1xf32>
    %301 = vector.broadcast %300 : vector<3x1xf32> to vector<3x32xf32>
    %302 = arith.subf %294, %301 : vector<3x32xf32>
    %303 = arith.mulf %302, %302 : vector<3x32xf32>
    %cst_147 = arith.constant dense<0.000000e+00> : vector<3xf32>
    %304 = vector.multi_reduction <add>, %303, %cst_147 [1] : vector<3x32xf32> to vector<3xf32>
    %305 = vector.shape_cast %304 : vector<3xf32> to vector<3x1xf32>
    %cst_148 = arith.constant 3.200000e+01 : f32
    %306 = vector.broadcast %cst_148 : f32 to vector<3x1xf32>
    %307 = arith.divf %305, %306 : vector<3x1xf32>
    %308 = vector.broadcast %300 : vector<3x1xf32> to vector<3x32xf32>
    %309 = arith.subf %294, %308 : vector<3x32xf32>
    %cst_149 = arith.constant 9.99999974E-6 : f32
    %310 = vector.broadcast %cst_149 : f32 to vector<3x1xf32>
    %311 = arith.addf %307, %310 : vector<3x1xf32>
    %312 = math.rsqrt %311 : vector<3x1xf32>
    %313 = vector.broadcast %312 : vector<3x1xf32> to vector<3x32xf32>
    %314 = arith.mulf %309, %313 : vector<3x32xf32>
    %315 = vector.broadcast %295 : vector<1x32xf32> to vector<3x32xf32>
    %316 = arith.mulf %314, %315 : vector<3x32xf32>
    %317 = vector.broadcast %296 : vector<1x32xf32> to vector<3x32xf32>
    %318 = arith.addf %316, %317 : vector<3x32xf32>
    %c0_150 = arith.constant 0 : index
    %c0_151 = arith.constant 0 : index
    %c0_152 = arith.constant 0 : index
    %319 = vector.load %arg19[%c0_150, %c0_151, %c0_152] : memref<1x3x32xf32, #tpu.memory_space<vmem>>, vector<1x3x32xf32>
    %320 = vector.shape_cast %319 : vector<1x3x32xf32> to vector<3x32xf32>
    %321 = vector.shape_cast %318 : vector<3x32xf32> to vector<1x3x32xf32>
    tpu.vector_store %arg19[%c0_150, %c0_151, %c0_152], %321 {strides = array<i32>} : memref<1x3x32xf32, #tpu.memory_space<vmem>>, vector<1x3x32xf32>,
    return
  }
  func.func @transform_0(%arg0: i32) -> (i32, i32, i32) {
    %c0_i32 = arith.constant 0 : i32
    %c0_i32_0 = arith.constant 0 : i32
    %c0_i32_1 = arith.constant 0 : i32
    return %arg0, %c0_i32, %c0_i32_0 : i32, i32, i32
  }
  func.func @transform_1(%arg0: i32) -> (i32, i32, i32) {
    %c0_i32 = arith.constant 0 : i32
    %c0_i32_0 = arith.constant 0 : i32
    %c0_i32_1 = arith.constant 0 : i32
    return %arg0, %c0_i32, %c0_i32_0 : i32, i32, i32
  }
  func.func @transform_2(%arg0: i32) -> (i32, i32) {
    %c0_i32 = arith.constant 0 : i32
    %c0_i32_0 = arith.constant 0 : i32
    %c0_i32_1 = arith.constant 0 : i32
    return %c0_i32, %c0_i32_0 : i32, i32
  }
  func.func @transform_3(%arg0: i32) -> (i32, i32) {
    %c0_i32 = arith.constant 0 : i32
    %c0_i32_0 = arith.constant 0 : i32
    %c0_i32_1 = arith.constant 0 : i32
    return %c0_i32, %c0_i32_0 : i32, i32
  }
  func.func @transform_4(%arg0: i32) -> (i32, i32, i32) {
    %c0_i32 = arith.constant 0 : i32
    %c0_i32_0 = arith.constant 0 : i32
    %c0_i32_1 = arith.constant 0 : i32
    %c0_i32_2 = arith.constant 0 : i32
    return %c0_i32, %c0_i32_0, %c0_i32_1 : i32, i32, i32
  }
  func.func @transform_5(%arg0: i32) -> (i32, i32, i32) {
    %c0_i32 = arith.constant 0 : i32
    %c0_i32_0 = arith.constant 0 : i32
    %c0_i32_1 = arith.constant 0 : i32
    %c0_i32_2 = arith.constant 0 : i32
    return %c0_i32, %c0_i32_0, %c0_i32_1 : i32, i32, i32
  }
  func.func @transform_6(%arg0: i32) -> (i32, i32, i32) {
    %c0_i32 = arith.constant 0 : i32
    %c0_i32_0 = arith.constant 0 : i32
    %c0_i32_1 = arith.constant 0 : i32
    %c0_i32_2 = arith.constant 0 : i32
    return %c0_i32, %c0_i32_0, %c0_i32_1 : i32, i32, i32
  }
  func.func @transform_7(%arg0: i32) -> (i32, i32, i32) {
    %c0_i32 = arith.constant 0 : i32
    %c0_i32_0 = arith.constant 0 : i32
    %c0_i32_1 = arith.constant 0 : i32
    %c0_i32_2 = arith.constant 0 : i32
    return %c0_i32, %c0_i32_0, %c0_i32_1 : i32, i32, i32
  }
  func.func @transform_8(%arg0: i32) -> (i32, i32, i32) {
    %c0_i32 = arith.constant 0 : i32
    %c0_i32_0 = arith.constant 0 : i32
    %c0_i32_1 = arith.constant 0 : i32
    %c0_i32_2 = arith.constant 0 : i32
    return %c0_i32, %c0_i32_0, %c0_i32_1 : i32, i32, i32
  }
  func.func @transform_9(%arg0: i32) -> (i32, i32, i32) {
    %c0_i32 = arith.constant 0 : i32
    %c0_i32_0 = arith.constant 0 : i32
    %c0_i32_1 = arith.constant 0 : i32
    %c0_i32_2 = arith.constant 0 : i32
    return %c0_i32, %c0_i32_0, %c0_i32_1 : i32, i32, i32
  }
  func.func @transform_10(%arg0: i32) -> (i32, i32, i32) {
    %c0_i32 = arith.constant 0 : i32
    %c0_i32_0 = arith.constant 0 : i32
    %c0_i32_1 = arith.constant 0 : i32
    %c0_i32_2 = arith.constant 0 : i32
    return %c0_i32, %c0_i32_0, %c0_i32_1 : i32, i32, i32
  }
  func.func @transform_11(%arg0: i32) -> (i32, i32, i32) {
    %c0_i32 = arith.constant 0 : i32
    %c0_i32_0 = arith.constant 0 : i32
    %c0_i32_1 = arith.constant 0 : i32
    %c0_i32_2 = arith.constant 0 : i32
    return %c0_i32, %c0_i32_0, %c0_i32_1 : i32, i32, i32
  }
  func.func @transform_12(%arg0: i32) -> (i32, i32, i32) {
    %c0_i32 = arith.constant 0 : i32
    %c0_i32_0 = arith.constant 0 : i32
    %c0_i32_1 = arith.constant 0 : i32
    %c0_i32_2 = arith.constant 0 : i32
    return %c0_i32, %c0_i32_0, %c0_i32_1 : i32, i32, i32
  }
  func.func @transform_13(%arg0: i32) -> (i32, i32, i32) {
    %c0_i32 = arith.constant 0 : i32
    %c0_i32_0 = arith.constant 0 : i32
    %c0_i32_1 = arith.constant 0 : i32
    %c0_i32_2 = arith.constant 0 : i32
    return %c0_i32, %c0_i32_0, %c0_i32_1 : i32, i32, i32
  }
  func.func @transform_14(%arg0: i32) -> (i32, i32, i32) {
    %c0_i32 = arith.constant 0 : i32
    %c0_i32_0 = arith.constant 0 : i32
    %c0_i32_1 = arith.constant 0 : i32
    %c0_i32_2 = arith.constant 0 : i32
    return %c0_i32, %c0_i32_0, %c0_i32_1 : i32, i32, i32
  }
  func.func @transform_15(%arg0: i32) -> (i32, i32, i32) {
    %c0_i32 = arith.constant 0 : i32
    %c0_i32_0 = arith.constant 0 : i32
    %c0_i32_1 = arith.constant 0 : i32
    %c0_i32_2 = arith.constant 0 : i32
    return %c0_i32, %c0_i32_0, %c0_i32_1 : i32, i32, i32
  }
  func.func @transform_16(%arg0: i32) -> (i32, i32) {
    %c0_i32 = arith.constant 0 : i32
    %c0_i32_0 = arith.constant 0 : i32
    %c0_i32_1 = arith.constant 0 : i32
    return %c0_i32, %c0_i32_0 : i32, i32
  }
  func.func @transform_17(%arg0: i32) -> (i32, i32) {
    %c0_i32 = arith.constant 0 : i32
    %c0_i32_0 = arith.constant 0 : i32
    %c0_i32_1 = arith.constant 0 : i32
    return %c0_i32, %c0_i32_0 : i32, i32
  }
  func.func @transform_18(%arg0: i32) -> (i32, i32, i32) {
    %c0_i32 = arith.constant 0 : i32
    %c0_i32_0 = arith.constant 0 : i32
    %c0_i32_1 = arith.constant 0 : i32
    return %arg0, %c0_i32, %c0_i32_0 : i32, i32, i32
  }
}

module attributes {stable_mosaic.version = 11 : i64} {
  func.func @kernel(%arg0: i32, %arg1: memref<1x5x16xf32, #tpu.memory_space<vmem>>, %arg2: memref<1x5x32xf32, #tpu.memory_space<vmem>>, %arg3: memref<16x32xbf16, #tpu.memory_space<vmem>>, %arg4: memref<1x32xf32, #tpu.memory_space<vmem>>, %arg5: memref<2x32x96xbf16, #tpu.memory_space<vmem>>, %arg6: memref<2x1x96xf32, #tpu.memory_space<vmem>>, %arg7: memref<2x32x32xbf16, #tpu.memory_space<vmem>>, %arg8: memref<2x1x32xf32, #tpu.memory_space<vmem>>, %arg9: memref<2x1x32xf32, #tpu.memory_space<vmem>>, %arg10: memref<2x1x32xf32, #tpu.memory_space<vmem>>, %arg11: memref<2x32x64xbf16, #tpu.memory_space<vmem>>, %arg12: memref<2x1x64xf32, #tpu.memory_space<vmem>>, %arg13: memref<2x64x32xbf16, #tpu.memory_space<vmem>>, %arg14: memref<2x1x32xf32, #tpu.memory_space<vmem>>, %arg15: memref<2x1x32xf32, #tpu.memory_space<vmem>>, %arg16: memref<2x1x32xf32, #tpu.memory_space<vmem>>, %arg17: memref<1x32xf32, #tpu.memory_space<vmem>>, %arg18: memref<1x32xf32, #tpu.memory_space<vmem>>, %arg19: memref<32x32xbf16, #tpu.memory_space<vmem>>, %arg20: memref<1x32xf32, #tpu.memory_space<vmem>>, %arg21: memref<1x5x32xf32, #tpu.memory_space<vmem>>, %arg22: memref<1x5x32xf32, #tpu.memory_space<vmem>>) attributes {dimension_semantics = [#tpu.dimension_semantics<parallel>], iteration_bounds = array<i64: 2>, scalar_prefetch = 0 : i64, scratch_operands = 0 : i64, tpu.core_type = #tpu.core_type<tc>, window_params = [{transform_indices = @transform_0, window_bounds = array<i64: 1, 5, 16>}, {transform_indices = @transform_1, window_bounds = array<i64: 1, 5, 32>}, {pipeline_mode = #tpu.pipeline_mode<synchronous>, transform_indices = @transform_2, window_bounds = array<i64: 16, 32>}, {pipeline_mode = #tpu.pipeline_mode<synchronous>, transform_indices = @transform_3, window_bounds = array<i64: 1, 32>}, {pipeline_mode = #tpu.pipeline_mode<synchronous>, transform_indices = @transform_4, window_bounds = array<i64: 2, 32, 96>}, {pipeline_mode = #tpu.pipeline_mode<synchronous>, transform_indices = @transform_5, window_bounds = array<i64: 2, 1, 96>}, {pipeline_mode = #tpu.pipeline_mode<synchronous>, transform_indices = @transform_6, window_bounds = array<i64: 2, 32, 32>}, {pipeline_mode = #tpu.pipeline_mode<synchronous>, transform_indices = @transform_7, window_bounds = array<i64: 2, 1, 32>}, {pipeline_mode = #tpu.pipeline_mode<synchronous>, transform_indices = @transform_8, window_bounds = array<i64: 2, 1, 32>}, {pipeline_mode = #tpu.pipeline_mode<synchronous>, transform_indices = @transform_9, window_bounds = array<i64: 2, 1, 32>}, {pipeline_mode = #tpu.pipeline_mode<synchronous>, transform_indices = @transform_10, window_bounds = array<i64: 2, 32, 64>}, {pipeline_mode = #tpu.pipeline_mode<synchronous>, transform_indices = @transform_11, window_bounds = array<i64: 2, 1, 64>}, {pipeline_mode = #tpu.pipeline_mode<synchronous>, transform_indices = @transform_12, window_bounds = array<i64: 2, 64, 32>}, {pipeline_mode = #tpu.pipeline_mode<synchronous>, transform_indices = @transform_13, window_bounds = array<i64: 2, 1, 32>}, {pipeline_mode = #tpu.pipeline_mode<synchronous>, transform_indices = @transform_14, window_bounds = array<i64: 2, 1, 32>}, {pipeline_mode = #tpu.pipeline_mode<synchronous>, transform_indices = @transform_15, window_bounds = array<i64: 2, 1, 32>}, {pipeline_mode = #tpu.pipeline_mode<synchronous>, transform_indices = @transform_16, window_bounds = array<i64: 1, 32>}, {pipeline_mode = #tpu.pipeline_mode<synchronous>, transform_indices = @transform_17, window_bounds = array<i64: 1, 32>}, {pipeline_mode = #tpu.pipeline_mode<synchronous>, transform_indices = @transform_18, window_bounds = array<i64: 32, 32>}, {pipeline_mode = #tpu.pipeline_mode<synchronous>, transform_indices = @transform_19, window_bounds = array<i64: 1, 32>}, {transform_indices = @transform_20, window_bounds = array<i64: 1, 5, 32>}, {transform_indices = @transform_21, window_bounds = array<i64: 1, 5, 32>}]} {
    %c0 = arith.constant 0 : index
    %c0_0 = arith.constant 0 : index
    %c0_1 = arith.constant 0 : index
    %0 = vector.load %arg1[%c0, %c0_0, %c0_1] : memref<1x5x16xf32, #tpu.memory_space<vmem>>, vector<1x5x16xf32>
    %1 = vector.shape_cast %0 : vector<1x5x16xf32> to vector<5x16xf32>
    %2 = arith.truncf %1 : vector<5x16xf32> to vector<5x16xbf16>
    %c0_2 = arith.constant 0 : index
    %c0_3 = arith.constant 0 : index
    %3 = vector.load %arg3[%c0_2, %c0_3] : memref<16x32xbf16, #tpu.memory_space<vmem>>, vector<16x32xbf16>
    %cst = arith.constant dense<0.000000e+00> : vector<5x32xf32>
    %4 = tpu.matmul %2, %3, %cst {dimension_numbers = #tpu.dot_dimension_numbers<[1], [0], [0], [1], [0, 0, 1, 1], [], []>} : vector<5x16xbf16>, vector<16x32xbf16>, vector<5x32xf32> -> vector<5x32xf32>
    %c0_4 = arith.constant 0 : index
    %c0_5 = arith.constant 0 : index
    %5 = vector.load %arg4[%c0_4, %c0_5] : memref<1x32xf32, #tpu.memory_space<vmem>>, vector<1x32xf32>
    %6 = vector.broadcast %5 : vector<1x32xf32> to vector<5x32xf32>
    %7 = arith.addf %4, %6 : vector<5x32xf32>
    %c0_6 = arith.constant 0 : index
    %c0_7 = arith.constant 0 : index
    %c0_8 = arith.constant 0 : index
    %8 = vector.load %arg2[%c0_6, %c0_7, %c0_8] : memref<1x5x32xf32, #tpu.memory_space<vmem>>, vector<1x5x32xf32>
    %9 = vector.shape_cast %8 : vector<1x5x32xf32> to vector<5x32xf32>
    %10 = arith.addf %7, %9 : vector<5x32xf32>
    %c0_9 = arith.constant 0 : index
    %c0_10 = arith.constant 0 : index
    %c0_11 = arith.constant 0 : index
    %11 = vector.load %arg5[%c0_9, %c0_10, %c0_11] : memref<2x32x96xbf16, #tpu.memory_space<vmem>>, vector<1x32x96xbf16>
    %12 = vector.shape_cast %11 : vector<1x32x96xbf16> to vector<32x96xbf16>
    %c0_12 = arith.constant 0 : index
    %c0_13 = arith.constant 0 : index
    %c0_14 = arith.constant 0 : index
    %13 = vector.load %arg6[%c0_12, %c0_13, %c0_14] : memref<2x1x96xf32, #tpu.memory_space<vmem>>, vector<1x1x96xf32>
    %14 = vector.shape_cast %13 : vector<1x1x96xf32> to vector<1x96xf32>
    %c0_15 = arith.constant 0 : index
    %c0_16 = arith.constant 0 : index
    %c0_17 = arith.constant 0 : index
    %15 = vector.load %arg7[%c0_15, %c0_16, %c0_17] : memref<2x32x32xbf16, #tpu.memory_space<vmem>>, vector<1x32x32xbf16>
    %16 = vector.shape_cast %15 : vector<1x32x32xbf16> to vector<32x32xbf16>
    %c0_18 = arith.constant 0 : index
    %c0_19 = arith.constant 0 : index
    %c0_20 = arith.constant 0 : index
    %17 = vector.load %arg8[%c0_18, %c0_19, %c0_20] : memref<2x1x32xf32, #tpu.memory_space<vmem>>, vector<1x1x32xf32>
    %18 = vector.shape_cast %17 : vector<1x1x32xf32> to vector<1x32xf32>
    %19 = arith.truncf %10 : vector<5x32xf32> to vector<5x32xbf16>
    %cst_21 = arith.constant dense<0.000000e+00> : vector<5x96xf32>
    %20 = tpu.matmul %19, %12, %cst_21 {dimension_numbers = #tpu.dot_dimension_numbers<[1], [0], [0], [1], [0, 0, 1, 1], [], []>} : vector<5x32xbf16>, vector<32x96xbf16>, vector<5x96xf32> -> vector<5x96xf32>
    %21 = vector.broadcast %14 : vector<1x96xf32> to vector<5x96xf32>
    %22 = arith.addf %20, %21 : vector<5x96xf32>
    %23 = arith.truncf %22 : vector<5x96xf32> to vector<5x96xbf16>
    %24 = vector.extract_strided_slice %23 {offsets = [0, 0], sizes = [5, 16], strides = [1, 1]} : vector<5x96xbf16> to vector<5x16xbf16>
    %25 = vector.extract_strided_slice %23 {offsets = [0, 32], sizes = [5, 16], strides = [1, 1]} : vector<5x96xbf16> to vector<5x16xbf16>
    %26 = vector.extract_strided_slice %23 {offsets = [0, 64], sizes = [5, 16], strides = [1, 1]} : vector<5x96xbf16> to vector<5x16xbf16>
    %cst_22 = arith.constant dense<0.000000e+00> : vector<5x5xf32>
    %27 = tpu.matmul %24, %25, %cst_22 {dimension_numbers = #tpu.dot_dimension_numbers<[1], [1], [0], [0], [0, 0, 1, 0], [], []>} : vector<5x16xbf16>, vector<5x16xbf16>, vector<5x5xf32> -> vector<5x5xf32>
    %cst_23 = arith.constant 2.500000e-01 : f32
    %28 = vector.broadcast %cst_23 : f32 to vector<5x5xf32>
    %29 = arith.mulf %27, %28 : vector<5x5xf32>
    %cst_24 = arith.constant dense<0xFF800000> : vector<5xf32>
    %30 = vector.multi_reduction <maximumf>, %29, %cst_24 [1] : vector<5x5xf32> to vector<5xf32>
    %31 = vector.shape_cast %30 : vector<5xf32> to vector<5x1xf32>
    %32 = vector.broadcast %31 : vector<5x1xf32> to vector<5x5xf32>
    %33 = arith.subf %29, %32 : vector<5x5xf32>
    %34 = math.exp %33 : vector<5x5xf32>
    %cst_25 = arith.constant dense<0.000000e+00> : vector<5xf32>
    %35 = vector.multi_reduction <add>, %34, %cst_25 [1] : vector<5x5xf32> to vector<5xf32>
    %36 = vector.shape_cast %35 : vector<5xf32> to vector<5x1xf32>
    %37 = tpu.reciprocal %36 {approx = true} : vector<5x1xf32> -> vector<5x1xf32>
    %38 = vector.broadcast %37 : vector<5x1xf32> to vector<5x5xf32>
    %39 = arith.mulf %34, %38 : vector<5x5xf32>
    %40 = arith.truncf %39 : vector<5x5xf32> to vector<5x5xbf16>
    %cst_26 = arith.constant dense<0.000000e+00> : vector<5x16xf32>
    %41 = tpu.matmul %40, %26, %cst_26 {dimension_numbers = #tpu.dot_dimension_numbers<[1], [0], [0], [1], [0, 0, 1, 1], [], []>} : vector<5x5xbf16>, vector<5x16xbf16>, vector<5x16xf32> -> vector<5x16xf32>
    %42 = arith.truncf %41 : vector<5x16xf32> to vector<5x16xbf16>
    %43 = vector.extract_strided_slice %16 {offsets = [0, 0], sizes = [16, 32], strides = [1, 1]} : vector<32x32xbf16> to vector<16x32xbf16>
    %cst_27 = arith.constant dense<0.000000e+00> : vector<5x32xf32>
    %44 = tpu.matmul %42, %43, %cst_27 {dimension_numbers = #tpu.dot_dimension_numbers<[1], [0], [0], [1], [0, 0, 1, 1], [], []>} : vector<5x16xbf16>, vector<16x32xbf16>, vector<5x32xf32> -> vector<5x32xf32>
    %45 = vector.broadcast %18 : vector<1x32xf32> to vector<5x32xf32>
    %46 = arith.addf %45, %44 : vector<5x32xf32>
    %47 = vector.extract_strided_slice %23 {offsets = [0, 16], sizes = [5, 16], strides = [1, 1]} : vector<5x96xbf16> to vector<5x16xbf16>
    %48 = vector.extract_strided_slice %23 {offsets = [0, 48], sizes = [5, 16], strides = [1, 1]} : vector<5x96xbf16> to vector<5x16xbf16>
    %49 = vector.extract_strided_slice %23 {offsets = [0, 80], sizes = [5, 16], strides = [1, 1]} : vector<5x96xbf16> to vector<5x16xbf16>
    %cst_28 = arith.constant dense<0.000000e+00> : vector<5x5xf32>
    %50 = tpu.matmul %47, %48, %cst_28 {dimension_numbers = #tpu.dot_dimension_numbers<[1], [1], [0], [0], [0, 0, 1, 0], [], []>} : vector<5x16xbf16>, vector<5x16xbf16>, vector<5x5xf32> -> vector<5x5xf32>
    %cst_29 = arith.constant 2.500000e-01 : f32
    %51 = vector.broadcast %cst_29 : f32 to vector<5x5xf32>
    %52 = arith.mulf %50, %51 : vector<5x5xf32>
    %cst_30 = arith.constant dense<0xFF800000> : vector<5xf32>
    %53 = vector.multi_reduction <maximumf>, %52, %cst_30 [1] : vector<5x5xf32> to vector<5xf32>
    %54 = vector.shape_cast %53 : vector<5xf32> to vector<5x1xf32>
    %55 = vector.broadcast %54 : vector<5x1xf32> to vector<5x5xf32>
    %56 = arith.subf %52, %55 : vector<5x5xf32>
    %57 = math.exp %56 : vector<5x5xf32>
    %cst_31 = arith.constant dense<0.000000e+00> : vector<5xf32>
    %58 = vector.multi_reduction <add>, %57, %cst_31 [1] : vector<5x5xf32> to vector<5xf32>
    %59 = vector.shape_cast %58 : vector<5xf32> to vector<5x1xf32>
    %60 = tpu.reciprocal %59 {approx = true} : vector<5x1xf32> -> vector<5x1xf32>
    %61 = vector.broadcast %60 : vector<5x1xf32> to vector<5x5xf32>
    %62 = arith.mulf %57, %61 : vector<5x5xf32>
    %63 = arith.truncf %62 : vector<5x5xf32> to vector<5x5xbf16>
    %cst_32 = arith.constant dense<0.000000e+00> : vector<5x16xf32>
    %64 = tpu.matmul %63, %49, %cst_32 {dimension_numbers = #tpu.dot_dimension_numbers<[1], [0], [0], [1], [0, 0, 1, 1], [], []>} : vector<5x5xbf16>, vector<5x16xbf16>, vector<5x16xf32> -> vector<5x16xf32>
    %65 = arith.truncf %64 : vector<5x16xf32> to vector<5x16xbf16>
    %66 = vector.extract_strided_slice %16 {offsets = [16, 0], sizes = [16, 32], strides = [1, 1]} : vector<32x32xbf16> to vector<16x32xbf16>
    %cst_33 = arith.constant dense<0.000000e+00> : vector<5x32xf32>
    %67 = tpu.matmul %65, %66, %cst_33 {dimension_numbers = #tpu.dot_dimension_numbers<[1], [0], [0], [1], [0, 0, 1, 1], [], []>} : vector<5x16xbf16>, vector<16x32xbf16>, vector<5x32xf32> -> vector<5x32xf32>
    %68 = arith.addf %46, %67 : vector<5x32xf32>
    %69 = arith.addf %10, %68 : vector<5x32xf32>
    %c0_34 = arith.constant 0 : index
    %c0_35 = arith.constant 0 : index
    %c0_36 = arith.constant 0 : index
    %70 = vector.load %arg9[%c0_34, %c0_35, %c0_36] : memref<2x1x32xf32, #tpu.memory_space<vmem>>, vector<1x1x32xf32>
    %71 = vector.shape_cast %70 : vector<1x1x32xf32> to vector<1x32xf32>
    %c0_37 = arith.constant 0 : index
    %c0_38 = arith.constant 0 : index
    %c0_39 = arith.constant 0 : index
    %72 = vector.load %arg10[%c0_37, %c0_38, %c0_39] : memref<2x1x32xf32, #tpu.memory_space<vmem>>, vector<1x1x32xf32>
    %73 = vector.shape_cast %72 : vector<1x1x32xf32> to vector<1x32xf32>
    %cst_40 = arith.constant dense<0.000000e+00> : vector<5xf32>
    %74 = vector.multi_reduction <add>, %69, %cst_40 [1] : vector<5x32xf32> to vector<5xf32>
    %75 = vector.shape_cast %74 : vector<5xf32> to vector<5x1xf32>
    %cst_41 = arith.constant 3.200000e+01 : f32
    %76 = vector.broadcast %cst_41 : f32 to vector<5x1xf32>
    %77 = arith.divf %75, %76 : vector<5x1xf32>
    %78 = vector.broadcast %77 : vector<5x1xf32> to vector<5x32xf32>
    %79 = arith.subf %69, %78 : vector<5x32xf32>
    %80 = arith.mulf %79, %79 : vector<5x32xf32>
    %cst_42 = arith.constant dense<0.000000e+00> : vector<5xf32>
    %81 = vector.multi_reduction <add>, %80, %cst_42 [1] : vector<5x32xf32> to vector<5xf32>
    %82 = vector.shape_cast %81 : vector<5xf32> to vector<5x1xf32>
    %cst_43 = arith.constant 3.200000e+01 : f32
    %83 = vector.broadcast %cst_43 : f32 to vector<5x1xf32>
    %84 = arith.divf %82, %83 : vector<5x1xf32>
    %85 = vector.broadcast %77 : vector<5x1xf32> to vector<5x32xf32>
    %86 = arith.subf %69, %85 : vector<5x32xf32>
    %cst_44 = arith.constant 9.99999974E-6 : f32
    %87 = vector.broadcast %cst_44 : f32 to vector<5x1xf32>
    %88 = arith.addf %84, %87 : vector<5x1xf32>
    %89 = math.rsqrt %88 : vector<5x1xf32>
    %90 = vector.broadcast %89 : vector<5x1xf32> to vector<5x32xf32>
    %91 = arith.mulf %86, %90 : vector<5x32xf32>
    %92 = vector.broadcast %71 : vector<1x32xf32> to vector<5x32xf32>
    %93 = arith.mulf %91, %92 : vector<5x32xf32>
    %94 = vector.broadcast %73 : vector<1x32xf32> to vector<5x32xf32>
    %95 = arith.addf %93, %94 : vector<5x32xf32>
    %96 = arith.truncf %95 : vector<5x32xf32> to vector<5x32xbf16>
    %c0_45 = arith.constant 0 : index
    %c0_46 = arith.constant 0 : index
    %c0_47 = arith.constant 0 : index
    %97 = vector.load %arg11[%c0_45, %c0_46, %c0_47] : memref<2x32x64xbf16, #tpu.memory_space<vmem>>, vector<1x32x64xbf16>
    %98 = vector.shape_cast %97 : vector<1x32x64xbf16> to vector<32x64xbf16>
    %cst_48 = arith.constant dense<0.000000e+00> : vector<5x64xf32>
    %99 = tpu.matmul %96, %98, %cst_48 {dimension_numbers = #tpu.dot_dimension_numbers<[1], [0], [0], [1], [0, 0, 1, 1], [], []>} : vector<5x32xbf16>, vector<32x64xbf16>, vector<5x64xf32> -> vector<5x64xf32>
    %c0_49 = arith.constant 0 : index
    %c0_50 = arith.constant 0 : index
    %c0_51 = arith.constant 0 : index
    %100 = vector.load %arg12[%c0_49, %c0_50, %c0_51] : memref<2x1x64xf32, #tpu.memory_space<vmem>>, vector<1x1x64xf32>
    %101 = vector.shape_cast %100 : vector<1x1x64xf32> to vector<1x64xf32>
    %102 = vector.broadcast %101 : vector<1x64xf32> to vector<5x64xf32>
    %103 = arith.addf %99, %102 : vector<5x64xf32>
    %cst_52 = arith.constant 0.000000e+00 : f32
    %104 = vector.broadcast %cst_52 : f32 to vector<5x64xf32>
    %105 = arith.maximumf %103, %104 : vector<5x64xf32>
    %106 = arith.truncf %105 : vector<5x64xf32> to vector<5x64xbf16>
    %c0_53 = arith.constant 0 : index
    %c0_54 = arith.constant 0 : index
    %c0_55 = arith.constant 0 : index
    %107 = vector.load %arg13[%c0_53, %c0_54, %c0_55] : memref<2x64x32xbf16, #tpu.memory_space<vmem>>, vector<1x64x32xbf16>
    %108 = vector.shape_cast %107 : vector<1x64x32xbf16> to vector<64x32xbf16>
    %cst_56 = arith.constant dense<0.000000e+00> : vector<5x32xf32>
    %109 = tpu.matmul %106, %108, %cst_56 {dimension_numbers = #tpu.dot_dimension_numbers<[1], [0], [0], [1], [0, 0, 1, 1], [], []>} : vector<5x64xbf16>, vector<64x32xbf16>, vector<5x32xf32> -> vector<5x32xf32>
    %c0_57 = arith.constant 0 : index
    %c0_58 = arith.constant 0 : index
    %c0_59 = arith.constant 0 : index
    %110 = vector.load %arg14[%c0_57, %c0_58, %c0_59] : memref<2x1x32xf32, #tpu.memory_space<vmem>>, vector<1x1x32xf32>
    %111 = vector.shape_cast %110 : vector<1x1x32xf32> to vector<1x32xf32>
    %112 = vector.broadcast %111 : vector<1x32xf32> to vector<5x32xf32>
    %113 = arith.addf %109, %112 : vector<5x32xf32>
    %114 = arith.addf %95, %113 : vector<5x32xf32>
    %c0_60 = arith.constant 0 : index
    %c0_61 = arith.constant 0 : index
    %c0_62 = arith.constant 0 : index
    %115 = vector.load %arg15[%c0_60, %c0_61, %c0_62] : memref<2x1x32xf32, #tpu.memory_space<vmem>>, vector<1x1x32xf32>
    %116 = vector.shape_cast %115 : vector<1x1x32xf32> to vector<1x32xf32>
    %c0_63 = arith.constant 0 : index
    %c0_64 = arith.constant 0 : index
    %c0_65 = arith.constant 0 : index
    %117 = vector.load %arg16[%c0_63, %c0_64, %c0_65] : memref<2x1x32xf32, #tpu.memory_space<vmem>>, vector<1x1x32xf32>
    %118 = vector.shape_cast %117 : vector<1x1x32xf32> to vector<1x32xf32>
    %cst_66 = arith.constant dense<0.000000e+00> : vector<5xf32>
    %119 = vector.multi_reduction <add>, %114, %cst_66 [1] : vector<5x32xf32> to vector<5xf32>
    %120 = vector.shape_cast %119 : vector<5xf32> to vector<5x1xf32>
    %cst_67 = arith.constant 3.200000e+01 : f32
    %121 = vector.broadcast %cst_67 : f32 to vector<5x1xf32>
    %122 = arith.divf %120, %121 : vector<5x1xf32>
    %123 = vector.broadcast %122 : vector<5x1xf32> to vector<5x32xf32>
    %124 = arith.subf %114, %123 : vector<5x32xf32>
    %125 = arith.mulf %124, %124 : vector<5x32xf32>
    %cst_68 = arith.constant dense<0.000000e+00> : vector<5xf32>
    %126 = vector.multi_reduction <add>, %125, %cst_68 [1] : vector<5x32xf32> to vector<5xf32>
    %127 = vector.shape_cast %126 : vector<5xf32> to vector<5x1xf32>
    %cst_69 = arith.constant 3.200000e+01 : f32
    %128 = vector.broadcast %cst_69 : f32 to vector<5x1xf32>
    %129 = arith.divf %127, %128 : vector<5x1xf32>
    %130 = vector.broadcast %122 : vector<5x1xf32> to vector<5x32xf32>
    %131 = arith.subf %114, %130 : vector<5x32xf32>
    %cst_70 = arith.constant 9.99999974E-6 : f32
    %132 = vector.broadcast %cst_70 : f32 to vector<5x1xf32>
    %133 = arith.addf %129, %132 : vector<5x1xf32>
    %134 = math.rsqrt %133 : vector<5x1xf32>
    %135 = vector.broadcast %134 : vector<5x1xf32> to vector<5x32xf32>
    %136 = arith.mulf %131, %135 : vector<5x32xf32>
    %137 = vector.broadcast %116 : vector<1x32xf32> to vector<5x32xf32>
    %138 = arith.mulf %136, %137 : vector<5x32xf32>
    %139 = vector.broadcast %118 : vector<1x32xf32> to vector<5x32xf32>
    %140 = arith.addf %138, %139 : vector<5x32xf32>
    %c1 = arith.constant 1 : index
    %c0_71 = arith.constant 0 : index
    %c0_72 = arith.constant 0 : index
    %141 = vector.load %arg5[%c1, %c0_71, %c0_72] : memref<2x32x96xbf16, #tpu.memory_space<vmem>>, vector<1x32x96xbf16>
    %142 = vector.shape_cast %141 : vector<1x32x96xbf16> to vector<32x96xbf16>
    %c1_73 = arith.constant 1 : index
    %c0_74 = arith.constant 0 : index
    %c0_75 = arith.constant 0 : index
    %143 = vector.load %arg6[%c1_73, %c0_74, %c0_75] : memref<2x1x96xf32, #tpu.memory_space<vmem>>, vector<1x1x96xf32>
    %144 = vector.shape_cast %143 : vector<1x1x96xf32> to vector<1x96xf32>
    %c1_76 = arith.constant 1 : index
    %c0_77 = arith.constant 0 : index
    %c0_78 = arith.constant 0 : index
    %145 = vector.load %arg7[%c1_76, %c0_77, %c0_78] : memref<2x32x32xbf16, #tpu.memory_space<vmem>>, vector<1x32x32xbf16>
    %146 = vector.shape_cast %145 : vector<1x32x32xbf16> to vector<32x32xbf16>
    %c1_79 = arith.constant 1 : index
    %c0_80 = arith.constant 0 : index
    %c0_81 = arith.constant 0 : index
    %147 = vector.load %arg8[%c1_79, %c0_80, %c0_81] : memref<2x1x32xf32, #tpu.memory_space<vmem>>, vector<1x1x32xf32>
    %148 = vector.shape_cast %147 : vector<1x1x32xf32> to vector<1x32xf32>
    %149 = arith.truncf %140 : vector<5x32xf32> to vector<5x32xbf16>
    %cst_82 = arith.constant dense<0.000000e+00> : vector<5x96xf32>
    %150 = tpu.matmul %149, %142, %cst_82 {dimension_numbers = #tpu.dot_dimension_numbers<[1], [0], [0], [1], [0, 0, 1, 1], [], []>} : vector<5x32xbf16>, vector<32x96xbf16>, vector<5x96xf32> -> vector<5x96xf32>
    %151 = vector.broadcast %144 : vector<1x96xf32> to vector<5x96xf32>
    %152 = arith.addf %150, %151 : vector<5x96xf32>
    %153 = arith.truncf %152 : vector<5x96xf32> to vector<5x96xbf16>
    %154 = vector.extract_strided_slice %153 {offsets = [0, 0], sizes = [5, 16], strides = [1, 1]} : vector<5x96xbf16> to vector<5x16xbf16>
    %155 = vector.extract_strided_slice %153 {offsets = [0, 32], sizes = [5, 16], strides = [1, 1]} : vector<5x96xbf16> to vector<5x16xbf16>
    %156 = vector.extract_strided_slice %153 {offsets = [0, 64], sizes = [5, 16], strides = [1, 1]} : vector<5x96xbf16> to vector<5x16xbf16>
    %cst_83 = arith.constant dense<0.000000e+00> : vector<5x5xf32>
    %157 = tpu.matmul %154, %155, %cst_83 {dimension_numbers = #tpu.dot_dimension_numbers<[1], [1], [0], [0], [0, 0, 1, 0], [], []>} : vector<5x16xbf16>, vector<5x16xbf16>, vector<5x5xf32> -> vector<5x5xf32>
    %cst_84 = arith.constant 2.500000e-01 : f32
    %158 = vector.broadcast %cst_84 : f32 to vector<5x5xf32>
    %159 = arith.mulf %157, %158 : vector<5x5xf32>
    %cst_85 = arith.constant dense<0xFF800000> : vector<5xf32>
    %160 = vector.multi_reduction <maximumf>, %159, %cst_85 [1] : vector<5x5xf32> to vector<5xf32>
    %161 = vector.shape_cast %160 : vector<5xf32> to vector<5x1xf32>
    %162 = vector.broadcast %161 : vector<5x1xf32> to vector<5x5xf32>
    %163 = arith.subf %159, %162 : vector<5x5xf32>
    %164 = math.exp %163 : vector<5x5xf32>
    %cst_86 = arith.constant dense<0.000000e+00> : vector<5xf32>
    %165 = vector.multi_reduction <add>, %164, %cst_86 [1] : vector<5x5xf32> to vector<5xf32>
    %166 = vector.shape_cast %165 : vector<5xf32> to vector<5x1xf32>
    %167 = tpu.reciprocal %166 {approx = true} : vector<5x1xf32> -> vector<5x1xf32>
    %168 = vector.broadcast %167 : vector<5x1xf32> to vector<5x5xf32>
    %169 = arith.mulf %164, %168 : vector<5x5xf32>
    %170 = arith.truncf %169 : vector<5x5xf32> to vector<5x5xbf16>
    %cst_87 = arith.constant dense<0.000000e+00> : vector<5x16xf32>
    %171 = tpu.matmul %170, %156, %cst_87 {dimension_numbers = #tpu.dot_dimension_numbers<[1], [0], [0], [1], [0, 0, 1, 1], [], []>} : vector<5x5xbf16>, vector<5x16xbf16>, vector<5x16xf32> -> vector<5x16xf32>
    %172 = arith.truncf %171 : vector<5x16xf32> to vector<5x16xbf16>
    %173 = vector.extract_strided_slice %146 {offsets = [0, 0], sizes = [16, 32], strides = [1, 1]} : vector<32x32xbf16> to vector<16x32xbf16>
    %cst_88 = arith.constant dense<0.000000e+00> : vector<5x32xf32>
    %174 = tpu.matmul %172, %173, %cst_88 {dimension_numbers = #tpu.dot_dimension_numbers<[1], [0], [0], [1], [0, 0, 1, 1], [], []>} : vector<5x16xbf16>, vector<16x32xbf16>, vector<5x32xf32> -> vector<5x32xf32>
    %175 = vector.broadcast %148 : vector<1x32xf32> to vector<5x32xf32>
    %176 = arith.addf %175, %174 : vector<5x32xf32>
    %177 = vector.extract_strided_slice %153 {offsets = [0, 16], sizes = [5, 16], strides = [1, 1]} : vector<5x96xbf16> to vector<5x16xbf16>
    %178 = vector.extract_strided_slice %153 {offsets = [0, 48], sizes = [5, 16], strides = [1, 1]} : vector<5x96xbf16> to vector<5x16xbf16>
    %179 = vector.extract_strided_slice %153 {offsets = [0, 80], sizes = [5, 16], strides = [1, 1]} : vector<5x96xbf16> to vector<5x16xbf16>
    %cst_89 = arith.constant dense<0.000000e+00> : vector<5x5xf32>
    %180 = tpu.matmul %177, %178, %cst_89 {dimension_numbers = #tpu.dot_dimension_numbers<[1], [1], [0], [0], [0, 0, 1, 0], [], []>} : vector<5x16xbf16>, vector<5x16xbf16>, vector<5x5xf32> -> vector<5x5xf32>
    %cst_90 = arith.constant 2.500000e-01 : f32
    %181 = vector.broadcast %cst_90 : f32 to vector<5x5xf32>
    %182 = arith.mulf %180, %181 : vector<5x5xf32>
    %cst_91 = arith.constant dense<0xFF800000> : vector<5xf32>
    %183 = vector.multi_reduction <maximumf>, %182, %cst_91 [1] : vector<5x5xf32> to vector<5xf32>
    %184 = vector.shape_cast %183 : vector<5xf32> to vector<5x1xf32>
    %185 = vector.broadcast %184 : vector<5x1xf32> to vector<5x5xf32>
    %186 = arith.subf %182, %185 : vector<5x5xf32>
    %187 = math.exp %186 : vector<5x5xf32>
    %cst_92 = arith.constant dense<0.000000e+00> : vector<5xf32>
    %188 = vector.multi_reduction <add>, %187, %cst_92 [1] : vector<5x5xf32> to vector<5xf32>
    %189 = vector.shape_cast %188 : vector<5xf32> to vector<5x1xf32>
    %190 = tpu.reciprocal %189 {approx = true} : vector<5x1xf32> -> vector<5x1xf32>
    %191 = vector.broadcast %190 : vector<5x1xf32> to vector<5x5xf32>
    %192 = arith.mulf %187, %191 : vector<5x5xf32>
    %193 = arith.truncf %192 : vector<5x5xf32> to vector<5x5xbf16>
    %cst_93 = arith.constant dense<0.000000e+00> : vector<5x16xf32>
    %194 = tpu.matmul %193, %179, %cst_93 {dimension_numbers = #tpu.dot_dimension_numbers<[1], [0], [0], [1], [0, 0, 1, 1], [], []>} : vector<5x5xbf16>, vector<5x16xbf16>, vector<5x16xf32> -> vector<5x16xf32>
    %195 = arith.truncf %194 : vector<5x16xf32> to vector<5x16xbf16>
    %196 = vector.extract_strided_slice %146 {offsets = [16, 0], sizes = [16, 32], strides = [1, 1]} : vector<32x32xbf16> to vector<16x32xbf16>
    %cst_94 = arith.constant dense<0.000000e+00> : vector<5x32xf32>
    %197 = tpu.matmul %195, %196, %cst_94 {dimension_numbers = #tpu.dot_dimension_numbers<[1], [0], [0], [1], [0, 0, 1, 1], [], []>} : vector<5x16xbf16>, vector<16x32xbf16>, vector<5x32xf32> -> vector<5x32xf32>
    %198 = arith.addf %176, %197 : vector<5x32xf32>
    %199 = arith.addf %140, %198 : vector<5x32xf32>
    %c1_95 = arith.constant 1 : index
    %c0_96 = arith.constant 0 : index
    %c0_97 = arith.constant 0 : index
    %200 = vector.load %arg9[%c1_95, %c0_96, %c0_97] : memref<2x1x32xf32, #tpu.memory_space<vmem>>, vector<1x1x32xf32>
    %201 = vector.shape_cast %200 : vector<1x1x32xf32> to vector<1x32xf32>
    %c1_98 = arith.constant 1 : index
    %c0_99 = arith.constant 0 : index
    %c0_100 = arith.constant 0 : index
    %202 = vector.load %arg10[%c1_98, %c0_99, %c0_100] : memref<2x1x32xf32, #tpu.memory_space<vmem>>, vector<1x1x32xf32>
    %203 = vector.shape_cast %202 : vector<1x1x32xf32> to vector<1x32xf32>
    %cst_101 = arith.constant dense<0.000000e+00> : vector<5xf32>
    %204 = vector.multi_reduction <add>, %199, %cst_101 [1] : vector<5x32xf32> to vector<5xf32>
    %205 = vector.shape_cast %204 : vector<5xf32> to vector<5x1xf32>
    %cst_102 = arith.constant 3.200000e+01 : f32
    %206 = vector.broadcast %cst_102 : f32 to vector<5x1xf32>
    %207 = arith.divf %205, %206 : vector<5x1xf32>
    %208 = vector.broadcast %207 : vector<5x1xf32> to vector<5x32xf32>
    %209 = arith.subf %199, %208 : vector<5x32xf32>
    %210 = arith.mulf %209, %209 : vector<5x32xf32>
    %cst_103 = arith.constant dense<0.000000e+00> : vector<5xf32>
    %211 = vector.multi_reduction <add>, %210, %cst_103 [1] : vector<5x32xf32> to vector<5xf32>
    %212 = vector.shape_cast %211 : vector<5xf32> to vector<5x1xf32>
    %cst_104 = arith.constant 3.200000e+01 : f32
    %213 = vector.broadcast %cst_104 : f32 to vector<5x1xf32>
    %214 = arith.divf %212, %213 : vector<5x1xf32>
    %215 = vector.broadcast %207 : vector<5x1xf32> to vector<5x32xf32>
    %216 = arith.subf %199, %215 : vector<5x32xf32>
    %cst_105 = arith.constant 9.99999974E-6 : f32
    %217 = vector.broadcast %cst_105 : f32 to vector<5x1xf32>
    %218 = arith.addf %214, %217 : vector<5x1xf32>
    %219 = math.rsqrt %218 : vector<5x1xf32>
    %220 = vector.broadcast %219 : vector<5x1xf32> to vector<5x32xf32>
    %221 = arith.mulf %216, %220 : vector<5x32xf32>
    %222 = vector.broadcast %201 : vector<1x32xf32> to vector<5x32xf32>
    %223 = arith.mulf %221, %222 : vector<5x32xf32>
    %224 = vector.broadcast %203 : vector<1x32xf32> to vector<5x32xf32>
    %225 = arith.addf %223, %224 : vector<5x32xf32>
    %226 = arith.truncf %225 : vector<5x32xf32> to vector<5x32xbf16>
    %c1_106 = arith.constant 1 : index
    %c0_107 = arith.constant 0 : index
    %c0_108 = arith.constant 0 : index
    %227 = vector.load %arg11[%c1_106, %c0_107, %c0_108] : memref<2x32x64xbf16, #tpu.memory_space<vmem>>, vector<1x32x64xbf16>
    %228 = vector.shape_cast %227 : vector<1x32x64xbf16> to vector<32x64xbf16>
    %cst_109 = arith.constant dense<0.000000e+00> : vector<5x64xf32>
    %229 = tpu.matmul %226, %228, %cst_109 {dimension_numbers = #tpu.dot_dimension_numbers<[1], [0], [0], [1], [0, 0, 1, 1], [], []>} : vector<5x32xbf16>, vector<32x64xbf16>, vector<5x64xf32> -> vector<5x64xf32>
    %c1_110 = arith.constant 1 : index
    %c0_111 = arith.constant 0 : index
    %c0_112 = arith.constant 0 : index
    %230 = vector.load %arg12[%c1_110, %c0_111, %c0_112] : memref<2x1x64xf32, #tpu.memory_space<vmem>>, vector<1x1x64xf32>
    %231 = vector.shape_cast %230 : vector<1x1x64xf32> to vector<1x64xf32>
    %232 = vector.broadcast %231 : vector<1x64xf32> to vector<5x64xf32>
    %233 = arith.addf %229, %232 : vector<5x64xf32>
    %cst_113 = arith.constant 0.000000e+00 : f32
    %234 = vector.broadcast %cst_113 : f32 to vector<5x64xf32>
    %235 = arith.maximumf %233, %234 : vector<5x64xf32>
    %236 = arith.truncf %235 : vector<5x64xf32> to vector<5x64xbf16>
    %c1_114 = arith.constant 1 : index
    %c0_115 = arith.constant 0 : index
    %c0_116 = arith.constant 0 : index
    %237 = vector.load %arg13[%c1_114, %c0_115, %c0_116] : memref<2x64x32xbf16, #tpu.memory_space<vmem>>, vector<1x64x32xbf16>
    %238 = vector.shape_cast %237 : vector<1x64x32xbf16> to vector<64x32xbf16>
    %cst_117 = arith.constant dense<0.000000e+00> : vector<5x32xf32>
    %239 = tpu.matmul %236, %238, %cst_117 {dimension_numbers = #tpu.dot_dimension_numbers<[1], [0], [0], [1], [0, 0, 1, 1], [], []>} : vector<5x64xbf16>, vector<64x32xbf16>, vector<5x32xf32> -> vector<5x32xf32>
    %c1_118 = arith.constant 1 : index
    %c0_119 = arith.constant 0 : index
    %c0_120 = arith.constant 0 : index
    %240 = vector.load %arg14[%c1_118, %c0_119, %c0_120] : memref<2x1x32xf32, #tpu.memory_space<vmem>>, vector<1x1x32xf32>
    %241 = vector.shape_cast %240 : vector<1x1x32xf32> to vector<1x32xf32>
    %242 = vector.broadcast %241 : vector<1x32xf32> to vector<5x32xf32>
    %243 = arith.addf %239, %242 : vector<5x32xf32>
    %244 = arith.addf %225, %243 : vector<5x32xf32>
    %c1_121 = arith.constant 1 : index
    %c0_122 = arith.constant 0 : index
    %c0_123 = arith.constant 0 : index
    %245 = vector.load %arg15[%c1_121, %c0_122, %c0_123] : memref<2x1x32xf32, #tpu.memory_space<vmem>>, vector<1x1x32xf32>
    %246 = vector.shape_cast %245 : vector<1x1x32xf32> to vector<1x32xf32>
    %c1_124 = arith.constant 1 : index
    %c0_125 = arith.constant 0 : index
    %c0_126 = arith.constant 0 : index
    %247 = vector.load %arg16[%c1_124, %c0_125, %c0_126] : memref<2x1x32xf32, #tpu.memory_space<vmem>>, vector<1x1x32xf32>
    %248 = vector.shape_cast %247 : vector<1x1x32xf32> to vector<1x32xf32>
    %cst_127 = arith.constant dense<0.000000e+00> : vector<5xf32>
    %249 = vector.multi_reduction <add>, %244, %cst_127 [1] : vector<5x32xf32> to vector<5xf32>
    %250 = vector.shape_cast %249 : vector<5xf32> to vector<5x1xf32>
    %cst_128 = arith.constant 3.200000e+01 : f32
    %251 = vector.broadcast %cst_128 : f32 to vector<5x1xf32>
    %252 = arith.divf %250, %251 : vector<5x1xf32>
    %253 = vector.broadcast %252 : vector<5x1xf32> to vector<5x32xf32>
    %254 = arith.subf %244, %253 : vector<5x32xf32>
    %255 = arith.mulf %254, %254 : vector<5x32xf32>
    %cst_129 = arith.constant dense<0.000000e+00> : vector<5xf32>
    %256 = vector.multi_reduction <add>, %255, %cst_129 [1] : vector<5x32xf32> to vector<5xf32>
    %257 = vector.shape_cast %256 : vector<5xf32> to vector<5x1xf32>
    %cst_130 = arith.constant 3.200000e+01 : f32
    %258 = vector.broadcast %cst_130 : f32 to vector<5x1xf32>
    %259 = arith.divf %257, %258 : vector<5x1xf32>
    %260 = vector.broadcast %252 : vector<5x1xf32> to vector<5x32xf32>
    %261 = arith.subf %244, %260 : vector<5x32xf32>
    %cst_131 = arith.constant 9.99999974E-6 : f32
    %262 = vector.broadcast %cst_131 : f32 to vector<5x1xf32>
    %263 = arith.addf %259, %262 : vector<5x1xf32>
    %264 = math.rsqrt %263 : vector<5x1xf32>
    %265 = vector.broadcast %264 : vector<5x1xf32> to vector<5x32xf32>
    %266 = arith.mulf %261, %265 : vector<5x32xf32>
    %267 = vector.broadcast %246 : vector<1x32xf32> to vector<5x32xf32>
    %268 = arith.mulf %266, %267 : vector<5x32xf32>
    %269 = vector.broadcast %248 : vector<1x32xf32> to vector<5x32xf32>
    %270 = arith.addf %268, %269 : vector<5x32xf32>
    %c0_132 = arith.constant 0 : index
    %c0_133 = arith.constant 0 : index
    %271 = vector.load %arg17[%c0_132, %c0_133] : memref<1x32xf32, #tpu.memory_space<vmem>>, vector<1x32xf32>
    %c0_134 = arith.constant 0 : index
    %c0_135 = arith.constant 0 : index
    %272 = vector.load %arg18[%c0_134, %c0_135] : memref<1x32xf32, #tpu.memory_space<vmem>>, vector<1x32xf32>
    %cst_136 = arith.constant dense<0.000000e+00> : vector<5xf32>
    %273 = vector.multi_reduction <add>, %270, %cst_136 [1] : vector<5x32xf32> to vector<5xf32>
    %274 = vector.shape_cast %273 : vector<5xf32> to vector<5x1xf32>
    %cst_137 = arith.constant 3.200000e+01 : f32
    %275 = vector.broadcast %cst_137 : f32 to vector<5x1xf32>
    %276 = arith.divf %274, %275 : vector<5x1xf32>
    %277 = vector.broadcast %276 : vector<5x1xf32> to vector<5x32xf32>
    %278 = arith.subf %270, %277 : vector<5x32xf32>
    %279 = arith.mulf %278, %278 : vector<5x32xf32>
    %cst_138 = arith.constant dense<0.000000e+00> : vector<5xf32>
    %280 = vector.multi_reduction <add>, %279, %cst_138 [1] : vector<5x32xf32> to vector<5xf32>
    %281 = vector.shape_cast %280 : vector<5xf32> to vector<5x1xf32>
    %cst_139 = arith.constant 3.200000e+01 : f32
    %282 = vector.broadcast %cst_139 : f32 to vector<5x1xf32>
    %283 = arith.divf %281, %282 : vector<5x1xf32>
    %284 = vector.broadcast %276 : vector<5x1xf32> to vector<5x32xf32>
    %285 = arith.subf %270, %284 : vector<5x32xf32>
    %cst_140 = arith.constant 9.99999974E-6 : f32
    %286 = vector.broadcast %cst_140 : f32 to vector<5x1xf32>
    %287 = arith.addf %283, %286 : vector<5x1xf32>
    %288 = math.rsqrt %287 : vector<5x1xf32>
    %289 = vector.broadcast %288 : vector<5x1xf32> to vector<5x32xf32>
    %290 = arith.mulf %285, %289 : vector<5x32xf32>
    %291 = vector.broadcast %271 : vector<1x32xf32> to vector<5x32xf32>
    %292 = arith.mulf %290, %291 : vector<5x32xf32>
    %293 = vector.broadcast %272 : vector<1x32xf32> to vector<5x32xf32>
    %294 = arith.addf %292, %293 : vector<5x32xf32>
    %c0_141 = arith.constant 0 : index
    %c0_142 = arith.constant 0 : index
    %295 = vector.load %arg17[%c0_141, %c0_142] : memref<1x32xf32, #tpu.memory_space<vmem>>, vector<1x32xf32>
    %c0_143 = arith.constant 0 : index
    %c0_144 = arith.constant 0 : index
    %296 = vector.load %arg18[%c0_143, %c0_144] : memref<1x32xf32, #tpu.memory_space<vmem>>, vector<1x32xf32>
    %cst_145 = arith.constant dense<0.000000e+00> : vector<5xf32>
    %297 = vector.multi_reduction <add>, %294, %cst_145 [1] : vector<5x32xf32> to vector<5xf32>
    %298 = vector.shape_cast %297 : vector<5xf32> to vector<5x1xf32>
    %cst_146 = arith.constant 3.200000e+01 : f32
    %299 = vector.broadcast %cst_146 : f32 to vector<5x1xf32>
    %300 = arith.divf %298, %299 : vector<5x1xf32>
    %301 = vector.broadcast %300 : vector<5x1xf32> to vector<5x32xf32>
    %302 = arith.subf %294, %301 : vector<5x32xf32>
    %303 = arith.mulf %302, %302 : vector<5x32xf32>
    %cst_147 = arith.constant dense<0.000000e+00> : vector<5xf32>
    %304 = vector.multi_reduction <add>, %303, %cst_147 [1] : vector<5x32xf32> to vector<5xf32>
    %305 = vector.shape_cast %304 : vector<5xf32> to vector<5x1xf32>
    %cst_148 = arith.constant 3.200000e+01 : f32
    %306 = vector.broadcast %cst_148 : f32 to vector<5x1xf32>
    %307 = arith.divf %305, %306 : vector<5x1xf32>
    %308 = vector.broadcast %300 : vector<5x1xf32> to vector<5x32xf32>
    %309 = arith.subf %294, %308 : vector<5x32xf32>
    %cst_149 = arith.constant 9.99999974E-6 : f32
    %310 = vector.broadcast %cst_149 : f32 to vector<5x1xf32>
    %311 = arith.addf %307, %310 : vector<5x1xf32>
    %312 = math.rsqrt %311 : vector<5x1xf32>
    %313 = vector.broadcast %312 : vector<5x1xf32> to vector<5x32xf32>
    %314 = arith.mulf %309, %313 : vector<5x32xf32>
    %315 = vector.broadcast %295 : vector<1x32xf32> to vector<5x32xf32>
    %316 = arith.mulf %314, %315 : vector<5x32xf32>
    %317 = vector.broadcast %296 : vector<1x32xf32> to vector<5x32xf32>
    %318 = arith.addf %316, %317 : vector<5x32xf32>
    %c0_150 = arith.constant 0 : index
    %c0_151 = arith.constant 0 : index
    %c0_152 = arith.constant 0 : index
    %319 = vector.load %arg21[%c0_150, %c0_151, %c0_152] : memref<1x5x32xf32, #tpu.memory_space<vmem>>, vector<1x5x32xf32>
    %320 = vector.shape_cast %319 : vector<1x5x32xf32> to vector<5x32xf32>
    %321 = vector.shape_cast %318 : vector<5x32xf32> to vector<1x5x32xf32>
    tpu.vector_store %arg21[%c0_150, %c0_151, %c0_152], %321 {strides = array<i32>} : memref<1x5x32xf32, #tpu.memory_space<vmem>>, vector<1x5x32xf32>,
    %322 = arith.truncf %318 : vector<5x32xf32> to vector<5x32xbf16>
    %c0_153 = arith.constant 0 : index
    %c0_154 = arith.constant 0 : index
    %323 = vector.load %arg19[%c0_153, %c0_154] : memref<32x32xbf16, #tpu.memory_space<vmem>>, vector<32x32xbf16>
    %cst_155 = arith.constant dense<0.000000e+00> : vector<5x32xf32>
    %324 = tpu.matmul %322, %323, %cst_155 {dimension_numbers = #tpu.dot_dimension_numbers<[1], [0], [0], [1], [0, 0, 1, 1], [], []>} : vector<5x32xbf16>, vector<32x32xbf16>, vector<5x32xf32> -> vector<5x32xf32>
    %c0_156 = arith.constant 0 : index
    %c0_157 = arith.constant 0 : index
    %325 = vector.load %arg20[%c0_156, %c0_157] : memref<1x32xf32, #tpu.memory_space<vmem>>, vector<1x32xf32>
    %326 = vector.broadcast %325 : vector<1x32xf32> to vector<5x32xf32>
    %327 = arith.addf %324, %326 : vector<5x32xf32>
    %c0_158 = arith.constant 0 : index
    %c0_159 = arith.constant 0 : index
    %c0_160 = arith.constant 0 : index
    %328 = vector.load %arg22[%c0_158, %c0_159, %c0_160] : memref<1x5x32xf32, #tpu.memory_space<vmem>>, vector<1x5x32xf32>
    %329 = vector.shape_cast %328 : vector<1x5x32xf32> to vector<5x32xf32>
    %330 = vector.shape_cast %327 : vector<5x32xf32> to vector<1x5x32xf32>
    tpu.vector_store %arg22[%c0_158, %c0_159, %c0_160], %330 {strides = array<i32>} : memref<1x5x32xf32, #tpu.memory_space<vmem>>, vector<1x5x32xf32>,
    return
  }
  func.func @transform_0(%arg0: i32) -> (i32, i32, i32) {
    %c0_i32 = arith.constant 0 : i32
    %c0_i32_0 = arith.constant 0 : i32
    %c0_i32_1 = arith.constant 0 : i32
    return %arg0, %c0_i32, %c0_i32_0 : i32, i32, i32
  }
  func.func @transform_1(%arg0: i32) -> (i32, i32, i32) {
    %c0_i32 = arith.constant 0 : i32
    %c0_i32_0 = arith.constant 0 : i32
    %c0_i32_1 = arith.constant 0 : i32
    return %arg0, %c0_i32, %c0_i32_0 : i32, i32, i32
  }
  func.func @transform_2(%arg0: i32) -> (i32, i32) {
    %c0_i32 = arith.constant 0 : i32
    %c0_i32_0 = arith.constant 0 : i32
    %c0_i32_1 = arith.constant 0 : i32
    return %c0_i32, %c0_i32_0 : i32, i32
  }
  func.func @transform_3(%arg0: i32) -> (i32, i32) {
    %c0_i32 = arith.constant 0 : i32
    %c0_i32_0 = arith.constant 0 : i32
    %c0_i32_1 = arith.constant 0 : i32
    return %c0_i32, %c0_i32_0 : i32, i32
  }
  func.func @transform_4(%arg0: i32) -> (i32, i32, i32) {
    %c0_i32 = arith.constant 0 : i32
    %c0_i32_0 = arith.constant 0 : i32
    %c0_i32_1 = arith.constant 0 : i32
    %c0_i32_2 = arith.constant 0 : i32
    return %c0_i32, %c0_i32_0, %c0_i32_1 : i32, i32, i32
  }
  func.func @transform_5(%arg0: i32) -> (i32, i32, i32) {
    %c0_i32 = arith.constant 0 : i32
    %c0_i32_0 = arith.constant 0 : i32
    %c0_i32_1 = arith.constant 0 : i32
    %c0_i32_2 = arith.constant 0 : i32
    return %c0_i32, %c0_i32_0, %c0_i32_1 : i32, i32, i32
  }
  func.func @transform_6(%arg0: i32) -> (i32, i32, i32) {
    %c0_i32 = arith.constant 0 : i32
    %c0_i32_0 = arith.constant 0 : i32
    %c0_i32_1 = arith.constant 0 : i32
    %c0_i32_2 = arith.constant 0 : i32
    return %c0_i32, %c0_i32_0, %c0_i32_1 : i32, i32, i32
  }
  func.func @transform_7(%arg0: i32) -> (i32, i32, i32) {
    %c0_i32 = arith.constant 0 : i32
    %c0_i32_0 = arith.constant 0 : i32
    %c0_i32_1 = arith.constant 0 : i32
    %c0_i32_2 = arith.constant 0 : i32
    return %c0_i32, %c0_i32_0, %c0_i32_1 : i32, i32, i32
  }
  func.func @transform_8(%arg0: i32) -> (i32, i32, i32) {
    %c0_i32 = arith.constant 0 : i32
    %c0_i32_0 = arith.constant 0 : i32
    %c0_i32_1 = arith.constant 0 : i32
    %c0_i32_2 = arith.constant 0 : i32
    return %c0_i32, %c0_i32_0, %c0_i32_1 : i32, i32, i32
  }
  func.func @transform_9(%arg0: i32) -> (i32, i32, i32) {
    %c0_i32 = arith.constant 0 : i32
    %c0_i32_0 = arith.constant 0 : i32
    %c0_i32_1 = arith.constant 0 : i32
    %c0_i32_2 = arith.constant 0 : i32
    return %c0_i32, %c0_i32_0, %c0_i32_1 : i32, i32, i32
  }
  func.func @transform_10(%arg0: i32) -> (i32, i32, i32) {
    %c0_i32 = arith.constant 0 : i32
    %c0_i32_0 = arith.constant 0 : i32
    %c0_i32_1 = arith.constant 0 : i32
    %c0_i32_2 = arith.constant 0 : i32
    return %c0_i32, %c0_i32_0, %c0_i32_1 : i32, i32, i32
  }
  func.func @transform_11(%arg0: i32) -> (i32, i32, i32) {
    %c0_i32 = arith.constant 0 : i32
    %c0_i32_0 = arith.constant 0 : i32
    %c0_i32_1 = arith.constant 0 : i32
    %c0_i32_2 = arith.constant 0 : i32
    return %c0_i32, %c0_i32_0, %c0_i32_1 : i32, i32, i32
  }
  func.func @transform_12(%arg0: i32) -> (i32, i32, i32) {
    %c0_i32 = arith.constant 0 : i32
    %c0_i32_0 = arith.constant 0 : i32
    %c0_i32_1 = arith.constant 0 : i32
    %c0_i32_2 = arith.constant 0 : i32
    return %c0_i32, %c0_i32_0, %c0_i32_1 : i32, i32, i32
  }
  func.func @transform_13(%arg0: i32) -> (i32, i32, i32) {
    %c0_i32 = arith.constant 0 : i32
    %c0_i32_0 = arith.constant 0 : i32
    %c0_i32_1 = arith.constant 0 : i32
    %c0_i32_2 = arith.constant 0 : i32
    return %c0_i32, %c0_i32_0, %c0_i32_1 : i32, i32, i32
  }
  func.func @transform_14(%arg0: i32) -> (i32, i32, i32) {
    %c0_i32 = arith.constant 0 : i32
    %c0_i32_0 = arith.constant 0 : i32
    %c0_i32_1 = arith.constant 0 : i32
    %c0_i32_2 = arith.constant 0 : i32
    return %c0_i32, %c0_i32_0, %c0_i32_1 : i32, i32, i32
  }
  func.func @transform_15(%arg0: i32) -> (i32, i32, i32) {
    %c0_i32 = arith.constant 0 : i32
    %c0_i32_0 = arith.constant 0 : i32
    %c0_i32_1 = arith.constant 0 : i32
    %c0_i32_2 = arith.constant 0 : i32
    return %c0_i32, %c0_i32_0, %c0_i32_1 : i32, i32, i32
  }
  func.func @transform_16(%arg0: i32) -> (i32, i32) {
    %c0_i32 = arith.constant 0 : i32
    %c0_i32_0 = arith.constant 0 : i32
    %c0_i32_1 = arith.constant 0 : i32
    return %c0_i32, %c0_i32_0 : i32, i32
  }
  func.func @transform_17(%arg0: i32) -> (i32, i32) {
    %c0_i32 = arith.constant 0 : i32
    %c0_i32_0 = arith.constant 0 : i32
    %c0_i32_1 = arith.constant 0 : i32
    return %c0_i32, %c0_i32_0 : i32, i32
  }
  func.func @transform_18(%arg0: i32) -> (i32, i32) {
    %c0_i32 = arith.constant 0 : i32
    %c0_i32_0 = arith.constant 0 : i32
    %c0_i32_1 = arith.constant 0 : i32
    return %c0_i32, %c0_i32_0 : i32, i32
  }
  func.func @transform_19(%arg0: i32) -> (i32, i32) {
    %c0_i32 = arith.constant 0 : i32
    %c0_i32_0 = arith.constant 0 : i32
    %c0_i32_1 = arith.constant 0 : i32
    return %c0_i32, %c0_i32_0 : i32, i32
  }
  func.func @transform_20(%arg0: i32) -> (i32, i32, i32) {
    %c0_i32 = arith.constant 0 : i32
    %c0_i32_0 = arith.constant 0 : i32
    %c0_i32_1 = arith.constant 0 : i32
    return %arg0, %c0_i32, %c0_i32_0 : i32, i32, i32
  }
  func.func @transform_21(%arg0: i32) -> (i32, i32, i32) {
    %c0_i32 = arith.constant 0 : i32
    %c0_i32_0 = arith.constant 0 : i32
    %c0_i32_1 = arith.constant 0 : i32
    return %arg0, %c0_i32, %c0_i32_0 : i32, i32, i32
  }
}

module attributes {stable_mosaic.version = 11 : i64} {
  func.func @kernel(%arg0: i32, %arg1: memref<1x10x32xf32, #tpu.memory_space<vmem>>, %arg2: memref<1x10x32xf32, #tpu.memory_space<vmem>>, %arg3: memref<10x10xf32, #tpu.memory_space<vmem>>, %arg4: memref<2x1x32xf32, #tpu.memory_space<vmem>>, %arg5: memref<2x1x32xf32, #tpu.memory_space<vmem>>, %arg6: memref<2x32x96xbf16, #tpu.memory_space<vmem>>, %arg7: memref<2x1x96xf32, #tpu.memory_space<vmem>>, %arg8: memref<2x32x32xbf16, #tpu.memory_space<vmem>>, %arg9: memref<2x1x32xf32, #tpu.memory_space<vmem>>, %arg10: memref<2x1x32xf32, #tpu.memory_space<vmem>>, %arg11: memref<2x1x32xf32, #tpu.memory_space<vmem>>, %arg12: memref<2x32x128xbf16, #tpu.memory_space<vmem>>, %arg13: memref<2x1x128xf32, #tpu.memory_space<vmem>>, %arg14: memref<2x128x32xbf16, #tpu.memory_space<vmem>>, %arg15: memref<2x1x32xf32, #tpu.memory_space<vmem>>, %arg16: memref<1x32xf32, #tpu.memory_space<vmem>>, %arg17: memref<1x32xf32, #tpu.memory_space<vmem>>, %arg18: memref<32x16xbf16, #tpu.memory_space<vmem>>, %arg19: memref<1x16xf32, #tpu.memory_space<vmem>>, %arg20: memref<1x9x16xf32, #tpu.memory_space<vmem>>) attributes {dimension_semantics = [#tpu.dimension_semantics<parallel>], iteration_bounds = array<i64: 2>, scalar_prefetch = 0 : i64, scratch_operands = 0 : i64, tpu.core_type = #tpu.core_type<tc>, window_params = [{transform_indices = @transform_0, window_bounds = array<i64: 1, 10, 32>}, {pipeline_mode = #tpu.pipeline_mode<synchronous>, transform_indices = @transform_1, window_bounds = array<i64: 1, 10, 32>}, {pipeline_mode = #tpu.pipeline_mode<synchronous>, transform_indices = @transform_2, window_bounds = array<i64: 10, 10>}, {pipeline_mode = #tpu.pipeline_mode<synchronous>, transform_indices = @transform_3, window_bounds = array<i64: 2, 1, 32>}, {pipeline_mode = #tpu.pipeline_mode<synchronous>, transform_indices = @transform_4, window_bounds = array<i64: 2, 1, 32>}, {pipeline_mode = #tpu.pipeline_mode<synchronous>, transform_indices = @transform_5, window_bounds = array<i64: 2, 32, 96>}, {pipeline_mode = #tpu.pipeline_mode<synchronous>, transform_indices = @transform_6, window_bounds = array<i64: 2, 1, 96>}, {pipeline_mode = #tpu.pipeline_mode<synchronous>, transform_indices = @transform_7, window_bounds = array<i64: 2, 32, 32>}, {pipeline_mode = #tpu.pipeline_mode<synchronous>, transform_indices = @transform_8, window_bounds = array<i64: 2, 1, 32>}, {pipeline_mode = #tpu.pipeline_mode<synchronous>, transform_indices = @transform_9, window_bounds = array<i64: 2, 1, 32>}, {pipeline_mode = #tpu.pipeline_mode<synchronous>, transform_indices = @transform_10, window_bounds = array<i64: 2, 1, 32>}, {pipeline_mode = #tpu.pipeline_mode<synchronous>, transform_indices = @transform_11, window_bounds = array<i64: 2, 32, 128>}, {pipeline_mode = #tpu.pipeline_mode<synchronous>, transform_indices = @transform_12, window_bounds = array<i64: 2, 1, 128>}, {pipeline_mode = #tpu.pipeline_mode<synchronous>, transform_indices = @transform_13, window_bounds = array<i64: 2, 128, 32>}, {pipeline_mode = #tpu.pipeline_mode<synchronous>, transform_indices = @transform_14, window_bounds = array<i64: 2, 1, 32>}, {pipeline_mode = #tpu.pipeline_mode<synchronous>, transform_indices = @transform_15, window_bounds = array<i64: 1, 32>}, {pipeline_mode = #tpu.pipeline_mode<synchronous>, transform_indices = @transform_16, window_bounds = array<i64: 1, 32>}, {pipeline_mode = #tpu.pipeline_mode<synchronous>, transform_indices = @transform_17, window_bounds = array<i64: 32, 16>}, {pipeline_mode = #tpu.pipeline_mode<synchronous>, transform_indices = @transform_18, window_bounds = array<i64: 1, 16>}, {transform_indices = @transform_19, window_bounds = array<i64: 1, 9, 16>}]} {
    %c0 = arith.constant 0 : index
    %c0_0 = arith.constant 0 : index
    %c0_1 = arith.constant 0 : index
    %0 = vector.load %arg1[%c0, %c0_0, %c0_1] : memref<1x10x32xf32, #tpu.memory_space<vmem>>, vector<1x10x32xf32>
    %1 = vector.shape_cast %0 : vector<1x10x32xf32> to vector<10x32xf32>
    %c0_2 = arith.constant 0 : index
    %c0_3 = arith.constant 0 : index
    %c0_4 = arith.constant 0 : index
    %2 = vector.load %arg2[%c0_2, %c0_3, %c0_4] : memref<1x10x32xf32, #tpu.memory_space<vmem>>, vector<1x10x32xf32>
    %3 = vector.shape_cast %2 : vector<1x10x32xf32> to vector<10x32xf32>
    %4 = arith.addf %1, %3 : vector<10x32xf32>
    %c0_5 = arith.constant 0 : index
    %c0_6 = arith.constant 0 : index
    %5 = vector.load %arg3[%c0_5, %c0_6] : memref<10x10xf32, #tpu.memory_space<vmem>>, vector<10x10xf32>
    %c0_7 = arith.constant 0 : index
    %c0_8 = arith.constant 0 : index
    %c0_9 = arith.constant 0 : index
    %6 = vector.load %arg4[%c0_7, %c0_8, %c0_9] : memref<2x1x32xf32, #tpu.memory_space<vmem>>, vector<1x1x32xf32>
    %7 = vector.shape_cast %6 : vector<1x1x32xf32> to vector<1x32xf32>
    %c0_10 = arith.constant 0 : index
    %c0_11 = arith.constant 0 : index
    %c0_12 = arith.constant 0 : index
    %8 = vector.load %arg5[%c0_10, %c0_11, %c0_12] : memref<2x1x32xf32, #tpu.memory_space<vmem>>, vector<1x1x32xf32>
    %9 = vector.shape_cast %8 : vector<1x1x32xf32> to vector<1x32xf32>
    %cst = arith.constant dense<0.000000e+00> : vector<10xf32>
    %10 = vector.multi_reduction <add>, %4, %cst [1] : vector<10x32xf32> to vector<10xf32>
    %11 = vector.shape_cast %10 : vector<10xf32> to vector<10x1xf32>
    %cst_13 = arith.constant 3.200000e+01 : f32
    %12 = vector.broadcast %cst_13 : f32 to vector<10x1xf32>
    %13 = arith.divf %11, %12 : vector<10x1xf32>
    %14 = vector.broadcast %13 : vector<10x1xf32> to vector<10x32xf32>
    %15 = arith.subf %4, %14 : vector<10x32xf32>
    %16 = arith.mulf %15, %15 : vector<10x32xf32>
    %cst_14 = arith.constant dense<0.000000e+00> : vector<10xf32>
    %17 = vector.multi_reduction <add>, %16, %cst_14 [1] : vector<10x32xf32> to vector<10xf32>
    %18 = vector.shape_cast %17 : vector<10xf32> to vector<10x1xf32>
    %cst_15 = arith.constant 3.200000e+01 : f32
    %19 = vector.broadcast %cst_15 : f32 to vector<10x1xf32>
    %20 = arith.divf %18, %19 : vector<10x1xf32>
    %21 = vector.broadcast %13 : vector<10x1xf32> to vector<10x32xf32>
    %22 = arith.subf %4, %21 : vector<10x32xf32>
    %cst_16 = arith.constant 9.99999974E-6 : f32
    %23 = vector.broadcast %cst_16 : f32 to vector<10x1xf32>
    %24 = arith.addf %20, %23 : vector<10x1xf32>
    %25 = math.rsqrt %24 : vector<10x1xf32>
    %26 = vector.broadcast %25 : vector<10x1xf32> to vector<10x32xf32>
    %27 = arith.mulf %22, %26 : vector<10x32xf32>
    %28 = vector.broadcast %7 : vector<1x32xf32> to vector<10x32xf32>
    %29 = arith.mulf %27, %28 : vector<10x32xf32>
    %30 = vector.broadcast %9 : vector<1x32xf32> to vector<10x32xf32>
    %31 = arith.addf %29, %30 : vector<10x32xf32>
    %c0_17 = arith.constant 0 : index
    %c0_18 = arith.constant 0 : index
    %c0_19 = arith.constant 0 : index
    %32 = vector.load %arg6[%c0_17, %c0_18, %c0_19] : memref<2x32x96xbf16, #tpu.memory_space<vmem>>, vector<1x32x96xbf16>
    %33 = vector.shape_cast %32 : vector<1x32x96xbf16> to vector<32x96xbf16>
    %c0_20 = arith.constant 0 : index
    %c0_21 = arith.constant 0 : index
    %c0_22 = arith.constant 0 : index
    %34 = vector.load %arg7[%c0_20, %c0_21, %c0_22] : memref<2x1x96xf32, #tpu.memory_space<vmem>>, vector<1x1x96xf32>
    %35 = vector.shape_cast %34 : vector<1x1x96xf32> to vector<1x96xf32>
    %c0_23 = arith.constant 0 : index
    %c0_24 = arith.constant 0 : index
    %c0_25 = arith.constant 0 : index
    %36 = vector.load %arg8[%c0_23, %c0_24, %c0_25] : memref<2x32x32xbf16, #tpu.memory_space<vmem>>, vector<1x32x32xbf16>
    %37 = vector.shape_cast %36 : vector<1x32x32xbf16> to vector<32x32xbf16>
    %c0_26 = arith.constant 0 : index
    %c0_27 = arith.constant 0 : index
    %c0_28 = arith.constant 0 : index
    %38 = vector.load %arg9[%c0_26, %c0_27, %c0_28] : memref<2x1x32xf32, #tpu.memory_space<vmem>>, vector<1x1x32xf32>
    %39 = vector.shape_cast %38 : vector<1x1x32xf32> to vector<1x32xf32>
    %40 = arith.truncf %31 : vector<10x32xf32> to vector<10x32xbf16>
    %cst_29 = arith.constant dense<0.000000e+00> : vector<10x96xf32>
    %41 = tpu.matmul %40, %33, %cst_29 {dimension_numbers = #tpu.dot_dimension_numbers<[1], [0], [0], [1], [0, 0, 1, 1], [], []>} : vector<10x32xbf16>, vector<32x96xbf16>, vector<10x96xf32> -> vector<10x96xf32>
    %42 = vector.broadcast %35 : vector<1x96xf32> to vector<10x96xf32>
    %43 = arith.addf %41, %42 : vector<10x96xf32>
    %44 = arith.truncf %43 : vector<10x96xf32> to vector<10x96xbf16>
    %45 = vector.extract_strided_slice %44 {offsets = [0, 0], sizes = [10, 16], strides = [1, 1]} : vector<10x96xbf16> to vector<10x16xbf16>
    %46 = vector.extract_strided_slice %44 {offsets = [0, 32], sizes = [10, 16], strides = [1, 1]} : vector<10x96xbf16> to vector<10x16xbf16>
    %47 = vector.extract_strided_slice %44 {offsets = [0, 64], sizes = [10, 16], strides = [1, 1]} : vector<10x96xbf16> to vector<10x16xbf16>
    %cst_30 = arith.constant dense<0.000000e+00> : vector<10x10xf32>
    %48 = tpu.matmul %45, %46, %cst_30 {dimension_numbers = #tpu.dot_dimension_numbers<[1], [1], [0], [0], [0, 0, 1, 0], [], []>} : vector<10x16xbf16>, vector<10x16xbf16>, vector<10x10xf32> -> vector<10x10xf32>
    %cst_31 = arith.constant 2.500000e-01 : f32
    %49 = vector.broadcast %cst_31 : f32 to vector<10x10xf32>
    %50 = arith.mulf %48, %49 : vector<10x10xf32>
    %51 = arith.addf %50, %5 : vector<10x10xf32>
    %cst_32 = arith.constant dense<0xFF800000> : vector<10xf32>
    %52 = vector.multi_reduction <maximumf>, %51, %cst_32 [1] : vector<10x10xf32> to vector<10xf32>
    %53 = vector.shape_cast %52 : vector<10xf32> to vector<10x1xf32>
    %54 = vector.broadcast %53 : vector<10x1xf32> to vector<10x10xf32>
    %55 = arith.subf %51, %54 : vector<10x10xf32>
    %56 = math.exp %55 : vector<10x10xf32>
    %cst_33 = arith.constant dense<0.000000e+00> : vector<10xf32>
    %57 = vector.multi_reduction <add>, %56, %cst_33 [1] : vector<10x10xf32> to vector<10xf32>
    %58 = vector.shape_cast %57 : vector<10xf32> to vector<10x1xf32>
    %59 = tpu.reciprocal %58 {approx = true} : vector<10x1xf32> -> vector<10x1xf32>
    %60 = vector.broadcast %59 : vector<10x1xf32> to vector<10x10xf32>
    %61 = arith.mulf %56, %60 : vector<10x10xf32>
    %62 = arith.truncf %61 : vector<10x10xf32> to vector<10x10xbf16>
    %cst_34 = arith.constant dense<0.000000e+00> : vector<10x16xf32>
    %63 = tpu.matmul %62, %47, %cst_34 {dimension_numbers = #tpu.dot_dimension_numbers<[1], [0], [0], [1], [0, 0, 1, 1], [], []>} : vector<10x10xbf16>, vector<10x16xbf16>, vector<10x16xf32> -> vector<10x16xf32>
    %64 = arith.truncf %63 : vector<10x16xf32> to vector<10x16xbf16>
    %65 = vector.extract_strided_slice %37 {offsets = [0, 0], sizes = [16, 32], strides = [1, 1]} : vector<32x32xbf16> to vector<16x32xbf16>
    %cst_35 = arith.constant dense<0.000000e+00> : vector<10x32xf32>
    %66 = tpu.matmul %64, %65, %cst_35 {dimension_numbers = #tpu.dot_dimension_numbers<[1], [0], [0], [1], [0, 0, 1, 1], [], []>} : vector<10x16xbf16>, vector<16x32xbf16>, vector<10x32xf32> -> vector<10x32xf32>
    %67 = vector.broadcast %39 : vector<1x32xf32> to vector<10x32xf32>
    %68 = arith.addf %67, %66 : vector<10x32xf32>
    %69 = vector.extract_strided_slice %44 {offsets = [0, 16], sizes = [10, 16], strides = [1, 1]} : vector<10x96xbf16> to vector<10x16xbf16>
    %70 = vector.extract_strided_slice %44 {offsets = [0, 48], sizes = [10, 16], strides = [1, 1]} : vector<10x96xbf16> to vector<10x16xbf16>
    %71 = vector.extract_strided_slice %44 {offsets = [0, 80], sizes = [10, 16], strides = [1, 1]} : vector<10x96xbf16> to vector<10x16xbf16>
    %cst_36 = arith.constant dense<0.000000e+00> : vector<10x10xf32>
    %72 = tpu.matmul %69, %70, %cst_36 {dimension_numbers = #tpu.dot_dimension_numbers<[1], [1], [0], [0], [0, 0, 1, 0], [], []>} : vector<10x16xbf16>, vector<10x16xbf16>, vector<10x10xf32> -> vector<10x10xf32>
    %cst_37 = arith.constant 2.500000e-01 : f32
    %73 = vector.broadcast %cst_37 : f32 to vector<10x10xf32>
    %74 = arith.mulf %72, %73 : vector<10x10xf32>
    %75 = arith.addf %74, %5 : vector<10x10xf32>
    %cst_38 = arith.constant dense<0xFF800000> : vector<10xf32>
    %76 = vector.multi_reduction <maximumf>, %75, %cst_38 [1] : vector<10x10xf32> to vector<10xf32>
    %77 = vector.shape_cast %76 : vector<10xf32> to vector<10x1xf32>
    %78 = vector.broadcast %77 : vector<10x1xf32> to vector<10x10xf32>
    %79 = arith.subf %75, %78 : vector<10x10xf32>
    %80 = math.exp %79 : vector<10x10xf32>
    %cst_39 = arith.constant dense<0.000000e+00> : vector<10xf32>
    %81 = vector.multi_reduction <add>, %80, %cst_39 [1] : vector<10x10xf32> to vector<10xf32>
    %82 = vector.shape_cast %81 : vector<10xf32> to vector<10x1xf32>
    %83 = tpu.reciprocal %82 {approx = true} : vector<10x1xf32> -> vector<10x1xf32>
    %84 = vector.broadcast %83 : vector<10x1xf32> to vector<10x10xf32>
    %85 = arith.mulf %80, %84 : vector<10x10xf32>
    %86 = arith.truncf %85 : vector<10x10xf32> to vector<10x10xbf16>
    %cst_40 = arith.constant dense<0.000000e+00> : vector<10x16xf32>
    %87 = tpu.matmul %86, %71, %cst_40 {dimension_numbers = #tpu.dot_dimension_numbers<[1], [0], [0], [1], [0, 0, 1, 1], [], []>} : vector<10x10xbf16>, vector<10x16xbf16>, vector<10x16xf32> -> vector<10x16xf32>
    %88 = arith.truncf %87 : vector<10x16xf32> to vector<10x16xbf16>
    %89 = vector.extract_strided_slice %37 {offsets = [16, 0], sizes = [16, 32], strides = [1, 1]} : vector<32x32xbf16> to vector<16x32xbf16>
    %cst_41 = arith.constant dense<0.000000e+00> : vector<10x32xf32>
    %90 = tpu.matmul %88, %89, %cst_41 {dimension_numbers = #tpu.dot_dimension_numbers<[1], [0], [0], [1], [0, 0, 1, 1], [], []>} : vector<10x16xbf16>, vector<16x32xbf16>, vector<10x32xf32> -> vector<10x32xf32>
    %91 = arith.addf %68, %90 : vector<10x32xf32>
    %92 = arith.addf %4, %91 : vector<10x32xf32>
    %c0_42 = arith.constant 0 : index
    %c0_43 = arith.constant 0 : index
    %c0_44 = arith.constant 0 : index
    %93 = vector.load %arg10[%c0_42, %c0_43, %c0_44] : memref<2x1x32xf32, #tpu.memory_space<vmem>>, vector<1x1x32xf32>
    %94 = vector.shape_cast %93 : vector<1x1x32xf32> to vector<1x32xf32>
    %c0_45 = arith.constant 0 : index
    %c0_46 = arith.constant 0 : index
    %c0_47 = arith.constant 0 : index
    %95 = vector.load %arg11[%c0_45, %c0_46, %c0_47] : memref<2x1x32xf32, #tpu.memory_space<vmem>>, vector<1x1x32xf32>
    %96 = vector.shape_cast %95 : vector<1x1x32xf32> to vector<1x32xf32>
    %cst_48 = arith.constant dense<0.000000e+00> : vector<10xf32>
    %97 = vector.multi_reduction <add>, %92, %cst_48 [1] : vector<10x32xf32> to vector<10xf32>
    %98 = vector.shape_cast %97 : vector<10xf32> to vector<10x1xf32>
    %cst_49 = arith.constant 3.200000e+01 : f32
    %99 = vector.broadcast %cst_49 : f32 to vector<10x1xf32>
    %100 = arith.divf %98, %99 : vector<10x1xf32>
    %101 = vector.broadcast %100 : vector<10x1xf32> to vector<10x32xf32>
    %102 = arith.subf %92, %101 : vector<10x32xf32>
    %103 = arith.mulf %102, %102 : vector<10x32xf32>
    %cst_50 = arith.constant dense<0.000000e+00> : vector<10xf32>
    %104 = vector.multi_reduction <add>, %103, %cst_50 [1] : vector<10x32xf32> to vector<10xf32>
    %105 = vector.shape_cast %104 : vector<10xf32> to vector<10x1xf32>
    %cst_51 = arith.constant 3.200000e+01 : f32
    %106 = vector.broadcast %cst_51 : f32 to vector<10x1xf32>
    %107 = arith.divf %105, %106 : vector<10x1xf32>
    %108 = vector.broadcast %100 : vector<10x1xf32> to vector<10x32xf32>
    %109 = arith.subf %92, %108 : vector<10x32xf32>
    %cst_52 = arith.constant 9.99999974E-6 : f32
    %110 = vector.broadcast %cst_52 : f32 to vector<10x1xf32>
    %111 = arith.addf %107, %110 : vector<10x1xf32>
    %112 = math.rsqrt %111 : vector<10x1xf32>
    %113 = vector.broadcast %112 : vector<10x1xf32> to vector<10x32xf32>
    %114 = arith.mulf %109, %113 : vector<10x32xf32>
    %115 = vector.broadcast %94 : vector<1x32xf32> to vector<10x32xf32>
    %116 = arith.mulf %114, %115 : vector<10x32xf32>
    %117 = vector.broadcast %96 : vector<1x32xf32> to vector<10x32xf32>
    %118 = arith.addf %116, %117 : vector<10x32xf32>
    %119 = arith.truncf %118 : vector<10x32xf32> to vector<10x32xbf16>
    %c0_53 = arith.constant 0 : index
    %c0_54 = arith.constant 0 : index
    %c0_55 = arith.constant 0 : index
    %120 = vector.load %arg12[%c0_53, %c0_54, %c0_55] : memref<2x32x128xbf16, #tpu.memory_space<vmem>>, vector<1x32x128xbf16>
    %121 = vector.shape_cast %120 : vector<1x32x128xbf16> to vector<32x128xbf16>
    %cst_56 = arith.constant dense<0.000000e+00> : vector<10x128xf32>
    %122 = tpu.matmul %119, %121, %cst_56 {dimension_numbers = #tpu.dot_dimension_numbers<[1], [0], [0], [1], [0, 0, 1, 1], [], []>} : vector<10x32xbf16>, vector<32x128xbf16>, vector<10x128xf32> -> vector<10x128xf32>
    %c0_57 = arith.constant 0 : index
    %c0_58 = arith.constant 0 : index
    %c0_59 = arith.constant 0 : index
    %123 = vector.load %arg13[%c0_57, %c0_58, %c0_59] : memref<2x1x128xf32, #tpu.memory_space<vmem>>, vector<1x1x128xf32>
    %124 = vector.shape_cast %123 : vector<1x1x128xf32> to vector<1x128xf32>
    %125 = vector.broadcast %124 : vector<1x128xf32> to vector<10x128xf32>
    %126 = arith.addf %122, %125 : vector<10x128xf32>
    %127 = arith.mulf %126, %126 : vector<10x128xf32>
    %128 = arith.mulf %126, %127 : vector<10x128xf32>
    %cst_60 = arith.constant 4.471500e-02 : f32
    %129 = vector.broadcast %cst_60 : f32 to vector<10x128xf32>
    %130 = arith.mulf %129, %128 : vector<10x128xf32>
    %131 = arith.addf %126, %130 : vector<10x128xf32>
    %cst_61 = arith.constant 0.797884583 : f32
    %132 = vector.broadcast %cst_61 : f32 to vector<10x128xf32>
    %133 = arith.mulf %132, %131 : vector<10x128xf32>
    %134 = math.tanh %133 : vector<10x128xf32>
    %cst_62 = arith.constant 1.000000e+00 : f32
    %135 = vector.broadcast %cst_62 : f32 to vector<10x128xf32>
    %136 = arith.addf %135, %134 : vector<10x128xf32>
    %cst_63 = arith.constant 5.000000e-01 : f32
    %137 = vector.broadcast %cst_63 : f32 to vector<10x128xf32>
    %138 = arith.mulf %137, %136 : vector<10x128xf32>
    %139 = arith.mulf %126, %138 : vector<10x128xf32>
    %140 = arith.truncf %139 : vector<10x128xf32> to vector<10x128xbf16>
    %c0_64 = arith.constant 0 : index
    %c0_65 = arith.constant 0 : index
    %c0_66 = arith.constant 0 : index
    %141 = vector.load %arg14[%c0_64, %c0_65, %c0_66] : memref<2x128x32xbf16, #tpu.memory_space<vmem>>, vector<1x128x32xbf16>
    %142 = vector.shape_cast %141 : vector<1x128x32xbf16> to vector<128x32xbf16>
    %cst_67 = arith.constant dense<0.000000e+00> : vector<10x32xf32>
    %143 = tpu.matmul %140, %142, %cst_67 {dimension_numbers = #tpu.dot_dimension_numbers<[1], [0], [0], [1], [0, 0, 1, 1], [], []>} : vector<10x128xbf16>, vector<128x32xbf16>, vector<10x32xf32> -> vector<10x32xf32>
    %c0_68 = arith.constant 0 : index
    %c0_69 = arith.constant 0 : index
    %c0_70 = arith.constant 0 : index
    %144 = vector.load %arg15[%c0_68, %c0_69, %c0_70] : memref<2x1x32xf32, #tpu.memory_space<vmem>>, vector<1x1x32xf32>
    %145 = vector.shape_cast %144 : vector<1x1x32xf32> to vector<1x32xf32>
    %146 = vector.broadcast %145 : vector<1x32xf32> to vector<10x32xf32>
    %147 = arith.addf %143, %146 : vector<10x32xf32>
    %148 = arith.addf %92, %147 : vector<10x32xf32>
    %c1 = arith.constant 1 : index
    %c0_71 = arith.constant 0 : index
    %c0_72 = arith.constant 0 : index
    %149 = vector.load %arg4[%c1, %c0_71, %c0_72] : memref<2x1x32xf32, #tpu.memory_space<vmem>>, vector<1x1x32xf32>
    %150 = vector.shape_cast %149 : vector<1x1x32xf32> to vector<1x32xf32>
    %c1_73 = arith.constant 1 : index
    %c0_74 = arith.constant 0 : index
    %c0_75 = arith.constant 0 : index
    %151 = vector.load %arg5[%c1_73, %c0_74, %c0_75] : memref<2x1x32xf32, #tpu.memory_space<vmem>>, vector<1x1x32xf32>
    %152 = vector.shape_cast %151 : vector<1x1x32xf32> to vector<1x32xf32>
    %cst_76 = arith.constant dense<0.000000e+00> : vector<10xf32>
    %153 = vector.multi_reduction <add>, %148, %cst_76 [1] : vector<10x32xf32> to vector<10xf32>
    %154 = vector.shape_cast %153 : vector<10xf32> to vector<10x1xf32>
    %cst_77 = arith.constant 3.200000e+01 : f32
    %155 = vector.broadcast %cst_77 : f32 to vector<10x1xf32>
    %156 = arith.divf %154, %155 : vector<10x1xf32>
    %157 = vector.broadcast %156 : vector<10x1xf32> to vector<10x32xf32>
    %158 = arith.subf %148, %157 : vector<10x32xf32>
    %159 = arith.mulf %158, %158 : vector<10x32xf32>
    %cst_78 = arith.constant dense<0.000000e+00> : vector<10xf32>
    %160 = vector.multi_reduction <add>, %159, %cst_78 [1] : vector<10x32xf32> to vector<10xf32>
    %161 = vector.shape_cast %160 : vector<10xf32> to vector<10x1xf32>
    %cst_79 = arith.constant 3.200000e+01 : f32
    %162 = vector.broadcast %cst_79 : f32 to vector<10x1xf32>
    %163 = arith.divf %161, %162 : vector<10x1xf32>
    %164 = vector.broadcast %156 : vector<10x1xf32> to vector<10x32xf32>
    %165 = arith.subf %148, %164 : vector<10x32xf32>
    %cst_80 = arith.constant 9.99999974E-6 : f32
    %166 = vector.broadcast %cst_80 : f32 to vector<10x1xf32>
    %167 = arith.addf %163, %166 : vector<10x1xf32>
    %168 = math.rsqrt %167 : vector<10x1xf32>
    %169 = vector.broadcast %168 : vector<10x1xf32> to vector<10x32xf32>
    %170 = arith.mulf %165, %169 : vector<10x32xf32>
    %171 = vector.broadcast %150 : vector<1x32xf32> to vector<10x32xf32>
    %172 = arith.mulf %170, %171 : vector<10x32xf32>
    %173 = vector.broadcast %152 : vector<1x32xf32> to vector<10x32xf32>
    %174 = arith.addf %172, %173 : vector<10x32xf32>
    %c1_81 = arith.constant 1 : index
    %c0_82 = arith.constant 0 : index
    %c0_83 = arith.constant 0 : index
    %175 = vector.load %arg6[%c1_81, %c0_82, %c0_83] : memref<2x32x96xbf16, #tpu.memory_space<vmem>>, vector<1x32x96xbf16>
    %176 = vector.shape_cast %175 : vector<1x32x96xbf16> to vector<32x96xbf16>
    %c1_84 = arith.constant 1 : index
    %c0_85 = arith.constant 0 : index
    %c0_86 = arith.constant 0 : index
    %177 = vector.load %arg7[%c1_84, %c0_85, %c0_86] : memref<2x1x96xf32, #tpu.memory_space<vmem>>, vector<1x1x96xf32>
    %178 = vector.shape_cast %177 : vector<1x1x96xf32> to vector<1x96xf32>
    %c1_87 = arith.constant 1 : index
    %c0_88 = arith.constant 0 : index
    %c0_89 = arith.constant 0 : index
    %179 = vector.load %arg8[%c1_87, %c0_88, %c0_89] : memref<2x32x32xbf16, #tpu.memory_space<vmem>>, vector<1x32x32xbf16>
    %180 = vector.shape_cast %179 : vector<1x32x32xbf16> to vector<32x32xbf16>
    %c1_90 = arith.constant 1 : index
    %c0_91 = arith.constant 0 : index
    %c0_92 = arith.constant 0 : index
    %181 = vector.load %arg9[%c1_90, %c0_91, %c0_92] : memref<2x1x32xf32, #tpu.memory_space<vmem>>, vector<1x1x32xf32>
    %182 = vector.shape_cast %181 : vector<1x1x32xf32> to vector<1x32xf32>
    %183 = arith.truncf %174 : vector<10x32xf32> to vector<10x32xbf16>
    %cst_93 = arith.constant dense<0.000000e+00> : vector<10x96xf32>
    %184 = tpu.matmul %183, %176, %cst_93 {dimension_numbers = #tpu.dot_dimension_numbers<[1], [0], [0], [1], [0, 0, 1, 1], [], []>} : vector<10x32xbf16>, vector<32x96xbf16>, vector<10x96xf32> -> vector<10x96xf32>
    %185 = vector.broadcast %178 : vector<1x96xf32> to vector<10x96xf32>
    %186 = arith.addf %184, %185 : vector<10x96xf32>
    %187 = arith.truncf %186 : vector<10x96xf32> to vector<10x96xbf16>
    %188 = vector.extract_strided_slice %187 {offsets = [0, 0], sizes = [10, 16], strides = [1, 1]} : vector<10x96xbf16> to vector<10x16xbf16>
    %189 = vector.extract_strided_slice %187 {offsets = [0, 32], sizes = [10, 16], strides = [1, 1]} : vector<10x96xbf16> to vector<10x16xbf16>
    %190 = vector.extract_strided_slice %187 {offsets = [0, 64], sizes = [10, 16], strides = [1, 1]} : vector<10x96xbf16> to vector<10x16xbf16>
    %cst_94 = arith.constant dense<0.000000e+00> : vector<10x10xf32>
    %191 = tpu.matmul %188, %189, %cst_94 {dimension_numbers = #tpu.dot_dimension_numbers<[1], [1], [0], [0], [0, 0, 1, 0], [], []>} : vector<10x16xbf16>, vector<10x16xbf16>, vector<10x10xf32> -> vector<10x10xf32>
    %cst_95 = arith.constant 2.500000e-01 : f32
    %192 = vector.broadcast %cst_95 : f32 to vector<10x10xf32>
    %193 = arith.mulf %191, %192 : vector<10x10xf32>
    %194 = arith.addf %193, %5 : vector<10x10xf32>
    %cst_96 = arith.constant dense<0xFF800000> : vector<10xf32>
    %195 = vector.multi_reduction <maximumf>, %194, %cst_96 [1] : vector<10x10xf32> to vector<10xf32>
    %196 = vector.shape_cast %195 : vector<10xf32> to vector<10x1xf32>
    %197 = vector.broadcast %196 : vector<10x1xf32> to vector<10x10xf32>
    %198 = arith.subf %194, %197 : vector<10x10xf32>
    %199 = math.exp %198 : vector<10x10xf32>
    %cst_97 = arith.constant dense<0.000000e+00> : vector<10xf32>
    %200 = vector.multi_reduction <add>, %199, %cst_97 [1] : vector<10x10xf32> to vector<10xf32>
    %201 = vector.shape_cast %200 : vector<10xf32> to vector<10x1xf32>
    %202 = tpu.reciprocal %201 {approx = true} : vector<10x1xf32> -> vector<10x1xf32>
    %203 = vector.broadcast %202 : vector<10x1xf32> to vector<10x10xf32>
    %204 = arith.mulf %199, %203 : vector<10x10xf32>
    %205 = arith.truncf %204 : vector<10x10xf32> to vector<10x10xbf16>
    %cst_98 = arith.constant dense<0.000000e+00> : vector<10x16xf32>
    %206 = tpu.matmul %205, %190, %cst_98 {dimension_numbers = #tpu.dot_dimension_numbers<[1], [0], [0], [1], [0, 0, 1, 1], [], []>} : vector<10x10xbf16>, vector<10x16xbf16>, vector<10x16xf32> -> vector<10x16xf32>
    %207 = arith.truncf %206 : vector<10x16xf32> to vector<10x16xbf16>
    %208 = vector.extract_strided_slice %180 {offsets = [0, 0], sizes = [16, 32], strides = [1, 1]} : vector<32x32xbf16> to vector<16x32xbf16>
    %cst_99 = arith.constant dense<0.000000e+00> : vector<10x32xf32>
    %209 = tpu.matmul %207, %208, %cst_99 {dimension_numbers = #tpu.dot_dimension_numbers<[1], [0], [0], [1], [0, 0, 1, 1], [], []>} : vector<10x16xbf16>, vector<16x32xbf16>, vector<10x32xf32> -> vector<10x32xf32>
    %210 = vector.broadcast %182 : vector<1x32xf32> to vector<10x32xf32>
    %211 = arith.addf %210, %209 : vector<10x32xf32>
    %212 = vector.extract_strided_slice %187 {offsets = [0, 16], sizes = [10, 16], strides = [1, 1]} : vector<10x96xbf16> to vector<10x16xbf16>
    %213 = vector.extract_strided_slice %187 {offsets = [0, 48], sizes = [10, 16], strides = [1, 1]} : vector<10x96xbf16> to vector<10x16xbf16>
    %214 = vector.extract_strided_slice %187 {offsets = [0, 80], sizes = [10, 16], strides = [1, 1]} : vector<10x96xbf16> to vector<10x16xbf16>
    %cst_100 = arith.constant dense<0.000000e+00> : vector<10x10xf32>
    %215 = tpu.matmul %212, %213, %cst_100 {dimension_numbers = #tpu.dot_dimension_numbers<[1], [1], [0], [0], [0, 0, 1, 0], [], []>} : vector<10x16xbf16>, vector<10x16xbf16>, vector<10x10xf32> -> vector<10x10xf32>
    %cst_101 = arith.constant 2.500000e-01 : f32
    %216 = vector.broadcast %cst_101 : f32 to vector<10x10xf32>
    %217 = arith.mulf %215, %216 : vector<10x10xf32>
    %218 = arith.addf %217, %5 : vector<10x10xf32>
    %cst_102 = arith.constant dense<0xFF800000> : vector<10xf32>
    %219 = vector.multi_reduction <maximumf>, %218, %cst_102 [1] : vector<10x10xf32> to vector<10xf32>
    %220 = vector.shape_cast %219 : vector<10xf32> to vector<10x1xf32>
    %221 = vector.broadcast %220 : vector<10x1xf32> to vector<10x10xf32>
    %222 = arith.subf %218, %221 : vector<10x10xf32>
    %223 = math.exp %222 : vector<10x10xf32>
    %cst_103 = arith.constant dense<0.000000e+00> : vector<10xf32>
    %224 = vector.multi_reduction <add>, %223, %cst_103 [1] : vector<10x10xf32> to vector<10xf32>
    %225 = vector.shape_cast %224 : vector<10xf32> to vector<10x1xf32>
    %226 = tpu.reciprocal %225 {approx = true} : vector<10x1xf32> -> vector<10x1xf32>
    %227 = vector.broadcast %226 : vector<10x1xf32> to vector<10x10xf32>
    %228 = arith.mulf %223, %227 : vector<10x10xf32>
    %229 = arith.truncf %228 : vector<10x10xf32> to vector<10x10xbf16>
    %cst_104 = arith.constant dense<0.000000e+00> : vector<10x16xf32>
    %230 = tpu.matmul %229, %214, %cst_104 {dimension_numbers = #tpu.dot_dimension_numbers<[1], [0], [0], [1], [0, 0, 1, 1], [], []>} : vector<10x10xbf16>, vector<10x16xbf16>, vector<10x16xf32> -> vector<10x16xf32>
    %231 = arith.truncf %230 : vector<10x16xf32> to vector<10x16xbf16>
    %232 = vector.extract_strided_slice %180 {offsets = [16, 0], sizes = [16, 32], strides = [1, 1]} : vector<32x32xbf16> to vector<16x32xbf16>
    %cst_105 = arith.constant dense<0.000000e+00> : vector<10x32xf32>
    %233 = tpu.matmul %231, %232, %cst_105 {dimension_numbers = #tpu.dot_dimension_numbers<[1], [0], [0], [1], [0, 0, 1, 1], [], []>} : vector<10x16xbf16>, vector<16x32xbf16>, vector<10x32xf32> -> vector<10x32xf32>
    %234 = arith.addf %211, %233 : vector<10x32xf32>
    %235 = arith.addf %148, %234 : vector<10x32xf32>
    %c1_106 = arith.constant 1 : index
    %c0_107 = arith.constant 0 : index
    %c0_108 = arith.constant 0 : index
    %236 = vector.load %arg10[%c1_106, %c0_107, %c0_108] : memref<2x1x32xf32, #tpu.memory_space<vmem>>, vector<1x1x32xf32>
    %237 = vector.shape_cast %236 : vector<1x1x32xf32> to vector<1x32xf32>
    %c1_109 = arith.constant 1 : index
    %c0_110 = arith.constant 0 : index
    %c0_111 = arith.constant 0 : index
    %238 = vector.load %arg11[%c1_109, %c0_110, %c0_111] : memref<2x1x32xf32, #tpu.memory_space<vmem>>, vector<1x1x32xf32>
    %239 = vector.shape_cast %238 : vector<1x1x32xf32> to vector<1x32xf32>
    %cst_112 = arith.constant dense<0.000000e+00> : vector<10xf32>
    %240 = vector.multi_reduction <add>, %235, %cst_112 [1] : vector<10x32xf32> to vector<10xf32>
    %241 = vector.shape_cast %240 : vector<10xf32> to vector<10x1xf32>
    %cst_113 = arith.constant 3.200000e+01 : f32
    %242 = vector.broadcast %cst_113 : f32 to vector<10x1xf32>
    %243 = arith.divf %241, %242 : vector<10x1xf32>
    %244 = vector.broadcast %243 : vector<10x1xf32> to vector<10x32xf32>
    %245 = arith.subf %235, %244 : vector<10x32xf32>
    %246 = arith.mulf %245, %245 : vector<10x32xf32>
    %cst_114 = arith.constant dense<0.000000e+00> : vector<10xf32>
    %247 = vector.multi_reduction <add>, %246, %cst_114 [1] : vector<10x32xf32> to vector<10xf32>
    %248 = vector.shape_cast %247 : vector<10xf32> to vector<10x1xf32>
    %cst_115 = arith.constant 3.200000e+01 : f32
    %249 = vector.broadcast %cst_115 : f32 to vector<10x1xf32>
    %250 = arith.divf %248, %249 : vector<10x1xf32>
    %251 = vector.broadcast %243 : vector<10x1xf32> to vector<10x32xf32>
    %252 = arith.subf %235, %251 : vector<10x32xf32>
    %cst_116 = arith.constant 9.99999974E-6 : f32
    %253 = vector.broadcast %cst_116 : f32 to vector<10x1xf32>
    %254 = arith.addf %250, %253 : vector<10x1xf32>
    %255 = math.rsqrt %254 : vector<10x1xf32>
    %256 = vector.broadcast %255 : vector<10x1xf32> to vector<10x32xf32>
    %257 = arith.mulf %252, %256 : vector<10x32xf32>
    %258 = vector.broadcast %237 : vector<1x32xf32> to vector<10x32xf32>
    %259 = arith.mulf %257, %258 : vector<10x32xf32>
    %260 = vector.broadcast %239 : vector<1x32xf32> to vector<10x32xf32>
    %261 = arith.addf %259, %260 : vector<10x32xf32>
    %262 = arith.truncf %261 : vector<10x32xf32> to vector<10x32xbf16>
    %c1_117 = arith.constant 1 : index
    %c0_118 = arith.constant 0 : index
    %c0_119 = arith.constant 0 : index
    %263 = vector.load %arg12[%c1_117, %c0_118, %c0_119] : memref<2x32x128xbf16, #tpu.memory_space<vmem>>, vector<1x32x128xbf16>
    %264 = vector.shape_cast %263 : vector<1x32x128xbf16> to vector<32x128xbf16>
    %cst_120 = arith.constant dense<0.000000e+00> : vector<10x128xf32>
    %265 = tpu.matmul %262, %264, %cst_120 {dimension_numbers = #tpu.dot_dimension_numbers<[1], [0], [0], [1], [0, 0, 1, 1], [], []>} : vector<10x32xbf16>, vector<32x128xbf16>, vector<10x128xf32> -> vector<10x128xf32>
    %c1_121 = arith.constant 1 : index
    %c0_122 = arith.constant 0 : index
    %c0_123 = arith.constant 0 : index
    %266 = vector.load %arg13[%c1_121, %c0_122, %c0_123] : memref<2x1x128xf32, #tpu.memory_space<vmem>>, vector<1x1x128xf32>
    %267 = vector.shape_cast %266 : vector<1x1x128xf32> to vector<1x128xf32>
    %268 = vector.broadcast %267 : vector<1x128xf32> to vector<10x128xf32>
    %269 = arith.addf %265, %268 : vector<10x128xf32>
    %270 = arith.mulf %269, %269 : vector<10x128xf32>
    %271 = arith.mulf %269, %270 : vector<10x128xf32>
    %cst_124 = arith.constant 4.471500e-02 : f32
    %272 = vector.broadcast %cst_124 : f32 to vector<10x128xf32>
    %273 = arith.mulf %272, %271 : vector<10x128xf32>
    %274 = arith.addf %269, %273 : vector<10x128xf32>
    %cst_125 = arith.constant 0.797884583 : f32
    %275 = vector.broadcast %cst_125 : f32 to vector<10x128xf32>
    %276 = arith.mulf %275, %274 : vector<10x128xf32>
    %277 = math.tanh %276 : vector<10x128xf32>
    %cst_126 = arith.constant 1.000000e+00 : f32
    %278 = vector.broadcast %cst_126 : f32 to vector<10x128xf32>
    %279 = arith.addf %278, %277 : vector<10x128xf32>
    %cst_127 = arith.constant 5.000000e-01 : f32
    %280 = vector.broadcast %cst_127 : f32 to vector<10x128xf32>
    %281 = arith.mulf %280, %279 : vector<10x128xf32>
    %282 = arith.mulf %269, %281 : vector<10x128xf32>
    %283 = arith.truncf %282 : vector<10x128xf32> to vector<10x128xbf16>
    %c1_128 = arith.constant 1 : index
    %c0_129 = arith.constant 0 : index
    %c0_130 = arith.constant 0 : index
    %284 = vector.load %arg14[%c1_128, %c0_129, %c0_130] : memref<2x128x32xbf16, #tpu.memory_space<vmem>>, vector<1x128x32xbf16>
    %285 = vector.shape_cast %284 : vector<1x128x32xbf16> to vector<128x32xbf16>
    %cst_131 = arith.constant dense<0.000000e+00> : vector<10x32xf32>
    %286 = tpu.matmul %283, %285, %cst_131 {dimension_numbers = #tpu.dot_dimension_numbers<[1], [0], [0], [1], [0, 0, 1, 1], [], []>} : vector<10x128xbf16>, vector<128x32xbf16>, vector<10x32xf32> -> vector<10x32xf32>
    %c1_132 = arith.constant 1 : index
    %c0_133 = arith.constant 0 : index
    %c0_134 = arith.constant 0 : index
    %287 = vector.load %arg15[%c1_132, %c0_133, %c0_134] : memref<2x1x32xf32, #tpu.memory_space<vmem>>, vector<1x1x32xf32>
    %288 = vector.shape_cast %287 : vector<1x1x32xf32> to vector<1x32xf32>
    %289 = vector.broadcast %288 : vector<1x32xf32> to vector<10x32xf32>
    %290 = arith.addf %286, %289 : vector<10x32xf32>
    %291 = arith.addf %235, %290 : vector<10x32xf32>
    %c0_135 = arith.constant 0 : index
    %c0_136 = arith.constant 0 : index
    %292 = vector.load %arg16[%c0_135, %c0_136] : memref<1x32xf32, #tpu.memory_space<vmem>>, vector<1x32xf32>
    %c0_137 = arith.constant 0 : index
    %c0_138 = arith.constant 0 : index
    %293 = vector.load %arg17[%c0_137, %c0_138] : memref<1x32xf32, #tpu.memory_space<vmem>>, vector<1x32xf32>
    %cst_139 = arith.constant dense<0.000000e+00> : vector<10xf32>
    %294 = vector.multi_reduction <add>, %291, %cst_139 [1] : vector<10x32xf32> to vector<10xf32>
    %295 = vector.shape_cast %294 : vector<10xf32> to vector<10x1xf32>
    %cst_140 = arith.constant 3.200000e+01 : f32
    %296 = vector.broadcast %cst_140 : f32 to vector<10x1xf32>
    %297 = arith.divf %295, %296 : vector<10x1xf32>
    %298 = vector.broadcast %297 : vector<10x1xf32> to vector<10x32xf32>
    %299 = arith.subf %291, %298 : vector<10x32xf32>
    %300 = arith.mulf %299, %299 : vector<10x32xf32>
    %cst_141 = arith.constant dense<0.000000e+00> : vector<10xf32>
    %301 = vector.multi_reduction <add>, %300, %cst_141 [1] : vector<10x32xf32> to vector<10xf32>
    %302 = vector.shape_cast %301 : vector<10xf32> to vector<10x1xf32>
    %cst_142 = arith.constant 3.200000e+01 : f32
    %303 = vector.broadcast %cst_142 : f32 to vector<10x1xf32>
    %304 = arith.divf %302, %303 : vector<10x1xf32>
    %305 = vector.broadcast %297 : vector<10x1xf32> to vector<10x32xf32>
    %306 = arith.subf %291, %305 : vector<10x32xf32>
    %cst_143 = arith.constant 9.99999974E-6 : f32
    %307 = vector.broadcast %cst_143 : f32 to vector<10x1xf32>
    %308 = arith.addf %304, %307 : vector<10x1xf32>
    %309 = math.rsqrt %308 : vector<10x1xf32>
    %310 = vector.broadcast %309 : vector<10x1xf32> to vector<10x32xf32>
    %311 = arith.mulf %306, %310 : vector<10x32xf32>
    %312 = vector.broadcast %292 : vector<1x32xf32> to vector<10x32xf32>
    %313 = arith.mulf %311, %312 : vector<10x32xf32>
    %314 = vector.broadcast %293 : vector<1x32xf32> to vector<10x32xf32>
    %315 = arith.addf %313, %314 : vector<10x32xf32>
    %316 = vector.extract_strided_slice %315 {offsets = [1, 0], sizes = [9, 32], strides = [1, 1]} : vector<10x32xf32> to vector<9x32xf32>
    %317 = arith.truncf %316 : vector<9x32xf32> to vector<9x32xbf16>
    %c0_144 = arith.constant 0 : index
    %c0_145 = arith.constant 0 : index
    %318 = vector.load %arg18[%c0_144, %c0_145] : memref<32x16xbf16, #tpu.memory_space<vmem>>, vector<32x16xbf16>
    %cst_146 = arith.constant dense<0.000000e+00> : vector<9x16xf32>
    %319 = tpu.matmul %317, %318, %cst_146 {dimension_numbers = #tpu.dot_dimension_numbers<[1], [0], [0], [1], [0, 0, 1, 1], [], []>} : vector<9x32xbf16>, vector<32x16xbf16>, vector<9x16xf32> -> vector<9x16xf32>
    %c0_147 = arith.constant 0 : index
    %c0_148 = arith.constant 0 : index
    %320 = vector.load %arg19[%c0_147, %c0_148] : memref<1x16xf32, #tpu.memory_space<vmem>>, vector<1x16xf32>
    %321 = vector.broadcast %320 : vector<1x16xf32> to vector<9x16xf32>
    %322 = arith.addf %319, %321 : vector<9x16xf32>
    %c0_149 = arith.constant 0 : index
    %c0_150 = arith.constant 0 : index
    %c0_151 = arith.constant 0 : index
    %323 = vector.load %arg20[%c0_149, %c0_150, %c0_151] : memref<1x9x16xf32, #tpu.memory_space<vmem>>, vector<1x9x16xf32>
    %324 = vector.shape_cast %323 : vector<1x9x16xf32> to vector<9x16xf32>
    %325 = vector.shape_cast %322 : vector<9x16xf32> to vector<1x9x16xf32>
    tpu.vector_store %arg20[%c0_149, %c0_150, %c0_151], %325 {strides = array<i32>} : memref<1x9x16xf32, #tpu.memory_space<vmem>>, vector<1x9x16xf32>,
    return
  }
  func.func @transform_0(%arg0: i32) -> (i32, i32, i32) {
    %c0_i32 = arith.constant 0 : i32
    %c0_i32_0 = arith.constant 0 : i32
    %c0_i32_1 = arith.constant 0 : i32
    return %arg0, %c0_i32, %c0_i32_0 : i32, i32, i32
  }
  func.func @transform_1(%arg0: i32) -> (i32, i32, i32) {
    %c0_i32 = arith.constant 0 : i32
    %c0_i32_0 = arith.constant 0 : i32
    %c0_i32_1 = arith.constant 0 : i32
    %c0_i32_2 = arith.constant 0 : i32
    return %c0_i32, %c0_i32_0, %c0_i32_1 : i32, i32, i32
  }
  func.func @transform_2(%arg0: i32) -> (i32, i32) {
    %c0_i32 = arith.constant 0 : i32
    %c0_i32_0 = arith.constant 0 : i32
    %c0_i32_1 = arith.constant 0 : i32
    return %c0_i32, %c0_i32_0 : i32, i32
  }
  func.func @transform_3(%arg0: i32) -> (i32, i32, i32) {
    %c0_i32 = arith.constant 0 : i32
    %c0_i32_0 = arith.constant 0 : i32
    %c0_i32_1 = arith.constant 0 : i32
    %c0_i32_2 = arith.constant 0 : i32
    return %c0_i32, %c0_i32_0, %c0_i32_1 : i32, i32, i32
  }
  func.func @transform_4(%arg0: i32) -> (i32, i32, i32) {
    %c0_i32 = arith.constant 0 : i32
    %c0_i32_0 = arith.constant 0 : i32
    %c0_i32_1 = arith.constant 0 : i32
    %c0_i32_2 = arith.constant 0 : i32
    return %c0_i32, %c0_i32_0, %c0_i32_1 : i32, i32, i32
  }
  func.func @transform_5(%arg0: i32) -> (i32, i32, i32) {
    %c0_i32 = arith.constant 0 : i32
    %c0_i32_0 = arith.constant 0 : i32
    %c0_i32_1 = arith.constant 0 : i32
    %c0_i32_2 = arith.constant 0 : i32
    return %c0_i32, %c0_i32_0, %c0_i32_1 : i32, i32, i32
  }
  func.func @transform_6(%arg0: i32) -> (i32, i32, i32) {
    %c0_i32 = arith.constant 0 : i32
    %c0_i32_0 = arith.constant 0 : i32
    %c0_i32_1 = arith.constant 0 : i32
    %c0_i32_2 = arith.constant 0 : i32
    return %c0_i32, %c0_i32_0, %c0_i32_1 : i32, i32, i32
  }
  func.func @transform_7(%arg0: i32) -> (i32, i32, i32) {
    %c0_i32 = arith.constant 0 : i32
    %c0_i32_0 = arith.constant 0 : i32
    %c0_i32_1 = arith.constant 0 : i32
    %c0_i32_2 = arith.constant 0 : i32
    return %c0_i32, %c0_i32_0, %c0_i32_1 : i32, i32, i32
  }
  func.func @transform_8(%arg0: i32) -> (i32, i32, i32) {
    %c0_i32 = arith.constant 0 : i32
    %c0_i32_0 = arith.constant 0 : i32
    %c0_i32_1 = arith.constant 0 : i32
    %c0_i32_2 = arith.constant 0 : i32
    return %c0_i32, %c0_i32_0, %c0_i32_1 : i32, i32, i32
  }
  func.func @transform_9(%arg0: i32) -> (i32, i32, i32) {
    %c0_i32 = arith.constant 0 : i32
    %c0_i32_0 = arith.constant 0 : i32
    %c0_i32_1 = arith.constant 0 : i32
    %c0_i32_2 = arith.constant 0 : i32
    return %c0_i32, %c0_i32_0, %c0_i32_1 : i32, i32, i32
  }
  func.func @transform_10(%arg0: i32) -> (i32, i32, i32) {
    %c0_i32 = arith.constant 0 : i32
    %c0_i32_0 = arith.constant 0 : i32
    %c0_i32_1 = arith.constant 0 : i32
    %c0_i32_2 = arith.constant 0 : i32
    return %c0_i32, %c0_i32_0, %c0_i32_1 : i32, i32, i32
  }
  func.func @transform_11(%arg0: i32) -> (i32, i32, i32) {
    %c0_i32 = arith.constant 0 : i32
    %c0_i32_0 = arith.constant 0 : i32
    %c0_i32_1 = arith.constant 0 : i32
    %c0_i32_2 = arith.constant 0 : i32
    return %c0_i32, %c0_i32_0, %c0_i32_1 : i32, i32, i32
  }
  func.func @transform_12(%arg0: i32) -> (i32, i32, i32) {
    %c0_i32 = arith.constant 0 : i32
    %c0_i32_0 = arith.constant 0 : i32
    %c0_i32_1 = arith.constant 0 : i32
    %c0_i32_2 = arith.constant 0 : i32
    return %c0_i32, %c0_i32_0, %c0_i32_1 : i32, i32, i32
  }
  func.func @transform_13(%arg0: i32) -> (i32, i32, i32) {
    %c0_i32 = arith.constant 0 : i32
    %c0_i32_0 = arith.constant 0 : i32
    %c0_i32_1 = arith.constant 0 : i32
    %c0_i32_2 = arith.constant 0 : i32
    return %c0_i32, %c0_i32_0, %c0_i32_1 : i32, i32, i32
  }
  func.func @transform_14(%arg0: i32) -> (i32, i32, i32) {
    %c0_i32 = arith.constant 0 : i32
    %c0_i32_0 = arith.constant 0 : i32
    %c0_i32_1 = arith.constant 0 : i32
    %c0_i32_2 = arith.constant 0 : i32
    return %c0_i32, %c0_i32_0, %c0_i32_1 : i32, i32, i32
  }
  func.func @transform_15(%arg0: i32) -> (i32, i32) {
    %c0_i32 = arith.constant 0 : i32
    %c0_i32_0 = arith.constant 0 : i32
    %c0_i32_1 = arith.constant 0 : i32
    return %c0_i32, %c0_i32_0 : i32, i32
  }
  func.func @transform_16(%arg0: i32) -> (i32, i32) {
    %c0_i32 = arith.constant 0 : i32
    %c0_i32_0 = arith.constant 0 : i32
    %c0_i32_1 = arith.constant 0 : i32
    return %c0_i32, %c0_i32_0 : i32, i32
  }
  func.func @transform_17(%arg0: i32) -> (i32, i32) {
    %c0_i32 = arith.constant 0 : i32
    %c0_i32_0 = arith.constant 0 : i32
    %c0_i32_1 = arith.constant 0 : i32
    return %c0_i32, %c0_i32_0 : i32, i32
  }
  func.func @transform_18(%arg0: i32) -> (i32, i32) {
    %c0_i32 = arith.constant 0 : i32
    %c0_i32_0 = arith.constant 0 : i32
    %c0_i32_1 = arith.constant 0 : i32
    return %c0_i32, %c0_i32_0 : i32, i32
  }
  func.func @transform_19(%arg0: i32) -> (i32, i32, i32) {
    %c0_i32 = arith.constant 0 : i32
    %c0_i32_0 = arith.constant 0 : i32
    %c0_i32_1 = arith.constant 0 : i32
    return %arg0, %c0_i32, %c0_i32_0 : i32, i32, i32
  }
}

</mosaic_0001>

<bundles_post_ra>
// kernel: forward.3
= control target key start
LH: loop header
LB: loop body
LE: loop exit
PB: predicated region body
PF: predicated region fallthrough
CT: control target
= control target key end

     0   :  { %s2465_s27 = smov 0   ;;  %s2763_s0 = inlined_call_operand.vmem [shape: f32[2,3,16], index: 0, kind: input, shape index: {}]   ;;  %s2764_s1 = inlined_call_operand.vmem [shape: f32[2,3,32], index: 1, kind: input, shape index: {}]   ;;  %s2765_s2 = inlined_call_operand.vmem [shape: bf16[16,32], index: 2, kind: input, shape index: {}]   ;;  %s2766_s3 = inlined_call_operand.vmem [shape: f32[1,32], index: 3, kind: input, shape index: {}]   ;;  %s2767_s4 = inlined_call_operand.vmem [shape: bf16[2,32,96], index: 4, kind: input, shape index: {}]   ;;  %s2768_s5 = inlined_call_operand.vmem [shape: f32[2,1,96], index: 5, kind: input, shape index: {}]   ;;  %s2769_s6 = inlined_call_operand.vmem [shape: bf16[2,32,32], index: 6, kind: input, shape index: {}]   ;;  %s2770_s7 = inlined_call_operand.vmem [shape: f32[2,1,32], index: 7, kind: input, shape index: {}]   ;;  %s2771_s8 = inlined_call_operand.vmem [shape: f32[2,1,32], index: 8, kind: input, shape index: {}]   ;;  %s2772_s9 = inlined_call_operand.vmem [shape: f32[2,1,32], index: 9, kind: input, shape index: {}]   ;;  %s2773_s10 = inlined_call_operand.vmem [shape: bf16[2,32,64], index: 10, kind: input, shape index: {}]   ;;  %s2774_s11 = inlined_call_operand.vmem [shape: f32[2,1,64], index: 11, kind: input, shape index: {}]   ;;  %s2775_s12 = inlined_call_operand.vmem [shape: bf16[2,64,32], index: 12, kind: input, shape index: {}]   ;;  %s2776_s13 = inlined_call_operand.vmem [shape: f32[2,1,32], index: 13, kind: input, shape index: {}]   ;;  %s2777_s14 = inlined_call_operand.vmem [shape: f32[2,1,32], index: 14, kind: input, shape index: {}]   ;;  %s2778_s15 = inlined_call_operand.vmem [shape: f32[2,1,32], index: 15, kind: input, shape index: {}]   ;;  %s2779_s16 = inlined_call_operand.vmem [shape: f32[1,32], index: 16, kind: input, shape index: {}]   ;;  %s2780_s17 = inlined_call_operand.vmem [shape: f32[1,32], index: 17, kind: input, shape index: {}]   ;;  %s2781_s18 = inlined_call_operand.vmem [shape: f32[2,3,32], index: 18, kind: output, shape index: {}]  }
   0x1   :  { %2782 = sst [smem:[#allocation2_spill]] %s2763_s0 }
   0x2   :  { %2783 = sst [smem:[#allocation3_spill]] %s2764_s1 }
   0x3   :  { %2784 = sst [smem:[#allocation4_spill]] %s2765_s2 }
   0x4 LB: > { %s2010_s28 = sadd.s32 4294967295, %s2360_s27   ;;  %p2014_p0 = scmp.ge.s32.totalorder %s2360_s27, 1  ;;  %s2360_s27 = sphi %s2465_s27, %s28_s27  }
   0x5   : > { %p520_p1 = scmp.lt.s32.totalorder %s2360_s27, 3 }
   0x7   : > { %p521_p2 = pnand %p2014_p0, %p520_p1 }
   0x8   : > { %s2785_s0 = sld [smem:[#allocation4_spill]] (!%p521_p2)  ;;  %v2362_v1 = vmov (!%p521_p2), 0.0   ;;  %p576_p3 = scmp.lt.s32.totalorder (!%p521_p2), %s2010_s28, 1  ;;  %vm2363_vm0 = vmmov (!%p521_p2), 0   ;;  %vm606_vm1 = vcmask (!%p521_p2), 130048   ;;  %v2306_v4 = vld [vmem:[%s2767_s4] sm:$0xff] (!%p521_p2)  }
   0x9   : > { %524 = sbr.rel (%p521_p2) target bundleno = 6667 (0x1a0b), region = 92  ;;  %2155 = vmatprep.subr.bf16.mxu0 (!%p521_p2), %v2362_v1  ;;  %2175 = vmatprep.subr.bf16.mxu1 (!%p521_p2), %v2362_v1  ;;  %s2786_s21 = sld [smem:[#allocation2_spill]] (!%p521_p2)  ;;  %v2307_v5 = vld [vmem:[%s2767_s4 + $0x8] sm:$0xff] (!%p521_p2)   ;;  %v2018_v6 = vld [vmem:[%s2766_s3] ss:$0 sm:$0xff] (!%p521_p2)  ;;  %vm681_vm2 = vcmask (!%p521_p2), 261120  }
   0xa   : > { %2157 = vmatprep.mubr.msk.bf16.mxu0 (!%p521_p2), %vm2363_vm0, %v2362_v1  ;;  %2177 = vmatprep.mubr.msk.bf16.mxu1 (!%p521_p2), %vm2363_vm0, %v2362_v1  ;;  %s2787_s29 = sld [smem:[#allocation3_spill]] (!%p521_p2)  ;;  %v2021_v15 = vld [vmem:[%s2768_s5] ss:$0 sm:$0xff] (!%p521_p2)  ;;  %s2365_s2 = smov (!%p521_p2), 96   ;;  %vm795_vm3 = vcmask (!%p521_p2), 1040384   ;;  %vm796_vm4 = vcmask (!%p521_p2), 1041408  }
   0xb   : > { %v2366_v22 = vmov (!%p521_p2), 65535   ;;  %vm776_vm5 = vcmask (!%p521_p2), 18432   ;;  %s2367_s23 = smov (!%p521_p2), 80   ;;  %s2368_s24 = smov (!%p521_p2), 112   ;;  %vm791_vm6 = vcmask (!%p521_p2), 23552   ;;  %v2308_v47 = vld [vmem:[%s2769_s6] sm:$0xff] (!%p521_p2)  }
   0xc   : > { %v797_v23 = vsel (!%p521_p2), %vm795_vm3, 4294967295, %v2366_v22  ;;  %vm1064_vm7 = vcmask (!%p521_p2), 256000   ;;  %vm1201_vm8 = vcmask (!%p521_p2), 523264  }
   0xd   : > { %v2523_v24 = vsel (!%p521_p2), %vm796_vm4, %v797_v23, 0 }
   0xe   : > { %v2305_v0 = vld [vmem:[%s2785_s0] sm:$0xff] (!%p521_p2)  }
   0xf   : > { %2156 = vmatpush3.bf16.msra.mxu0 (!%p521_p2), %v2305_v0  ;;  %v2309_v0 = vld [vmem:[%s2769_s6 + $0x8] sm:$0xff] (!%p521_p2)  }
  0x10   : > { %s2789_s28 = smov (!%p576_p3, %s2010_s28), 1  ;;  %2161 = vmatprep.subr.bf16.mxu0 %v2362_v1 }
  0x11   : > { %s2483_s19 = sshll.u32 %s2789_s28, 2  ;;  %s2369_s28 = smov 48  }
  0x12   : > { %s579_s22 = scalar_lea.vmem %s2786_s21, %s2483_s19  ;;  %s583_s30 = scalar_lea.vmem %s2787_s29, %s2483_s19 }
  0x13   : > { %v589_v2 = vld [vmem:[%s579_s22] sm:$0x7]  ;;  %s2364_s22 = smov 64   ;;  %s587_s26 = scalar_lea.vmem %s2781_s18, %s2483_s19 }
  0x14   : > { %v590_v3 = vpack.c.bf16 %v589_v2, %v589_v2  ;;  %v650_v8 = vld [vmem:[%s583_s30] sm:$0x7] }
  0x16   : > { %2158 = vmatmul.mubr.msk.bf16.vlgmr.msra.gmra.mrb[0].mxu0 %vm606_vm1, %v590_v3 }
  0x17   : > { %2165 = vmatprep.mubr.msk.bf16.mxu0 %vm2363_vm0, %v2362_v1  ;;  %2162 = vmatpush3.bf16.msra.mxu0 %v2306_v4 }
  0x18   : > { %2163 = vmatprep.subr.bf16.mxu0 %v2362_v1 }
  0x1b   : > { %2164 = vmatpush3.bf16.msra.mxu0 %v2307_v5 }
  0x1c   : > { %2169 = vmatprep.subr.bf16.mxu0 %v2362_v1 }
  0xe9   : > { %v644_v7 = vpop.f32.mrb[0].mxu0 }
  0xea   : > { %v645_v9 = vadd.f32 %v2018_v6, %v644_v7  ;;  %v2159_v10 = vpop.f32.mrb[1].mxu0 }
  0xeb   : > { %v647_v11 = vpop.f32.mrb[2].mxu0 }
  0xec   : > { %v2507_v12 = vadd.f32 %v650_v8, %v645_v9  ;;  %v2160_v13 = vpop.f32.mrb[3].mxu0 }
  0xee   : > { %v662_v14 = vpack.c.bf16 %v2507_v12, %v2507_v12 }
  0xf0   : > { %2166 = vmatmul.mubr.msk.bf16.vlgmr.msra.gmra.mrb[4].mxu0 %vm681_vm2, %v662_v14 }
  0xf1   : > { %2171 = vmatprep.mubr.msk.bf16.mxu0 %vm2363_vm0, %v2362_v1 }
 0x1c3   : > { %v719_v16 = vpop.f32.mrb[4].mxu0 }
 0x1c4   : > { %v720_v17 = vadd.f32 %v2021_v15, %v719_v16  ;;  %v2167_v18 = vpop.f32.mrb[5].mxu0 }
 0x1c5   : > { %v722_v19 = vpop.f32.mrb[6].mxu0  ;;  %v2029_v18 = vld [vmem:[%s2770_s7] ss:$0 sm:$0xff] }
 0x1c6   : > { %v2517_v20 = vpack.c.bf16 %v720_v17, %v720_v17  ;;  %v2168_v21 = vpop.f32.mrb[7].mxu0 }
 0x1c8   : > { %789 = vrot.lane.b32.xlu1 %v2517_v20, %s2364_s22  ;;  %727 = vrot.lane.b32.xlu0 %v2517_v20, %s2365_s2 }
 0x23a   : > { %v790_v25 = vpop.permute.xlu1 %789  ;;  %v728_v26 = vpop.permute.xlu0 %727 }
 0x23b   : > { %v800_v27 = vand.u32 %v2523_v24, %v790_v25  ;;  %v733_v28 = vsel %vm606_vm1, %v728_v26, 0 }
 0x23c   : > { %2170 = vmatpush3.bf16.xpose.msra.mxu0 %v733_v28 }
 0x23d   : > { %2176 = vmatpush3.bf16.msra.mxu1 %v800_v27  ;;  %2181 = vmatprep.subr.bf16.mxu0 %v2362_v1 }
 0x23e   : > { %2187 = vmatprep.subr.bf16.mxu1 %v2362_v1 }
 0x243   : > { %2172 = vmatmul.mubr.msk.bf16.vlgmr.msra.gmra.mrb[8].mxu0 %vm606_vm1, %v2517_v20 }
 0x244   : > { %2183 = vmatprep.mubr.msk.bf16.mxu0 %vm2363_vm0, %v2362_v1  ;;  %2182 = vmatpush3.bf16.msra.mxu0 %v2308_v47  ;;  %v2315_v47 = vld [vmem:[%s2775_s12 + $0x18] sm:$0xff]  }
 0x245   : > { %2193 = vmatprep.subr.bf16.mxu0 %v2362_v1 }
 0x316   : > { %v769_v29 = vpop.f32.mrb[8].mxu0 }
 0x317   : > { %v775_v30 = vmul.f32 0.25, %v769_v29  ;;  %v2173_v31 = vpop.f32.mrb[9].mxu0 }
 0x318   : > { %v772_v32 = vpop.f32.mrb[10].mxu0 }
 0x319   : > { %v2174_v33 = vpop.f32.mrb[11].mxu0  ;;  %v777_v34 = vsel %vm776_vm5, %v775_v30, -inf }
 0x31a   : > { %778 = vmax.xlane.f32.xlu0 %v777_v34  ;;  %v2310_v33 = vld [vmem:[%s2773_s10] sm:$0xff]   ;;  %v2311_v34 = vld [vmem:[%s2773_s10 + $0x8] sm:$0xff]  }
 0x3a7   : > { %v779_v35 = vpop.xlane.xlu0 %778 }
 0x3a8   : > { %v780_v36 = vsub.f32 %v775_v30, %v779_v35  ;;  %v2313_v35 = vld [vmem:[%s2775_s12 + $0x8] sm:$0xff]  }
 0x3aa   : > { %v781_v37 = vmul.f32 1.442695, %v780_v36 }
 0x3ac   : > { %2326 = vpow2.f32 %v781_v37 }
 0x3b6   : > { %v2327_v38 = vpop.eup %2326 }
 0x3b7   : > { %v783_v39 = vsel %vm776_vm5, %v2327_v38, 0.0 }
 0x3b8   : > { %784 = vadd.xlane.f32.xlu1 %v783_v39 }
 0x3c9   : > { %901 = vrot.lane.b32.xlu1 %v2517_v20, %s2367_s23 }
 0x3cd   : > { %899 = vrot.lane.b32.xlu1 %v2517_v20, %s2368_s24 }
 0x445   : > { %v785_v40 = vpop.xlane.xlu1 %784 }
 0x446   : > { %2328 = vrcp.f32 %v785_v40  ;;  %v2034_v40 = vld [vmem:[%s2771_s8] ss:$0 sm:$0xff] }
 0x449   : > { %v902_v43 = vpop.permute.xlu1 %901 }
 0x44a   : > { %v907_v45 = vsel %vm606_vm1, %v902_v43, 0 }
 0x44d   : > { %v900_v46 = vpop.permute.xlu1 %899 }
 0x450   : > { %v2329_v41 = vpop.eup %2328 }
 0x451   : > { %v787_v42 = vmul.f32 %v2329_v41, %v2327_v38 }
 0x453   : > { %v788_v44 = vpack.c.bf16 %v787_v42, %v787_v42  ;;  %v2035_v42 = vld [vmem:[%s2772_s9] ss:$0 sm:$0xff] }
 0x455   : > { %2178 = vmatmul.mubr.msk.bf16.vlgmr.msra.gmra.mrb[0].mxu1 %vm791_vm6, %v788_v44 }
 0x456   : > { %2188 = vmatpush3.bf16.xpose.msra.mxu1 %v907_v45  ;;  %2189 = vmatprep.mubr.msk.bf16.mxu1 %vm2363_vm0, %v2362_v1 }
 0x457   : > { %2199 = vmatprep.subr.bf16.mxu1 %v2362_v1 }
 0x45d   : > { %2190 = vmatmul.mubr.msk.bf16.vlgmr.msra.gmra.mrb[4].mxu1 %vm606_vm1, %v900_v46  ;;  %v2314_v46 = vld [vmem:[%s2775_s12 + $0x10] sm:$0xff]  }
 0x45e   : > { %2201 = vmatprep.mubr.msk.bf16.mxu1 %vm2363_vm0, %v2362_v1  ;;  %2200 = vmatpush3.bf16.msra.mxu1 %v2309_v0 }
 0x45f   : > { %2213 = vmatprep.subr.bf16.mxu1 %v2362_v1 }
 0x528   : > { %v836_v48 = vpop.f32.mrb[0].mxu1 }
 0x529   : > { %v842_v49 = vpack.c.bf16 %v836_v48, %v836_v48  ;;  %v2179_v50 = vpop.f32.mrb[1].mxu1  ;;  %v2036_v48 = vld [vmem:[%s2774_s11] ss:$0 sm:$0xff] }
 0x52a   : > { %v839_v51 = vpop.f32.mrb[2].mxu1 }
 0x52b   : > { %v2180_v52 = vpop.f32.mrb[3].mxu1  ;;  %2184 = vmatmul.mubr.msk.bf16.vlgmr.msra.gmra.mrb[12].mxu0 %vm606_vm1, %v842_v49 }
 0x52c   : > { %2195 = vmatprep.mubr.msk.bf16.mxu0 %vm2363_vm0, %v2362_v1 }
 0x530   : > { %v943_v53 = vpop.f32.mrb[4].mxu1 }
 0x531   : > { %v949_v54 = vmul.f32 0.25, %v943_v53  ;;  %v2191_v55 = vpop.f32.mrb[5].mxu1 }
 0x532   : > { %v946_v56 = vpop.f32.mrb[6].mxu1 }
 0x533   : > { %v2192_v57 = vpop.f32.mrb[7].mxu1  ;;  %v950_v58 = vsel %vm776_vm5, %v949_v54, -inf  ;;  %v2040_v56 = vld [vmem:[%s2776_s13] ss:$0 sm:$0xff] }
 0x534   : > { %951 = vmax.xlane.f32.xlu1 %v950_v58 }
 0x5c1   : > { %v952_v59 = vpop.xlane.xlu1 %951 }
 0x5c2   : > { %v953_v60 = vsub.f32 %v949_v54, %v952_v59 }
 0x5c4   : > { %v954_v61 = vmul.f32 1.442695, %v953_v60 }
 0x5c6   : > { %2330 = vpow2.f32 %v954_v61 }
 0x5d0   : > { %v2331_v62 = vpop.eup %2330 }
 0x5d1   : > { %v956_v63 = vsel %vm776_vm5, %v2331_v62, 0.0 }
 0x5d2   : > { %957 = vadd.xlane.f32.xlu0 %v956_v63 }
 0x5e8   : > { %962 = vrot.lane.b32.xlu0 %v2517_v20, %s2369_s28 }
 0x5fe   : > { %v886_v2 = vpop.f32.mrb[12].mxu0 }
 0x5ff   : > { %v2185_v3 = vpop.f32.mrb[13].mxu0  ;;  %v898_v19 = vadd.f32 %v2029_v18, %v886_v2 }
 0x600   : > { %v889_v4 = vpop.f32.mrb[14].mxu0 }
 0x601   : > { %v2186_v5 = vpop.f32.mrb[15].mxu0 }
 0x65f   : > { %v958_v6 = vpop.xlane.xlu0 %957 }
 0x660   : > { %2332 = vrcp.f32 %v958_v6  ;;  %v2316_v6 = vld [vmem:[%s2767_s4 + $0x10] sm:$0xff]  }
 0x663   : > { %v963_v7 = vpop.permute.xlu0 %962 }
 0x664   : > { %v968_v8 = vand.u32 %v963_v7, %v2523_v24  ;;  %v2317_v7 = vld [vmem:[%s2767_s4 + $0x18] sm:$0xff]  }
 0x666   : > { %2194 = vmatpush3.bf16.msra.mxu0 %v968_v8 }
 0x667   : > { %2205 = vmatprep.subr.bf16.mxu0 %v2362_v1 }
 0x66a   : > { %v2333_v9 = vpop.eup %2332 }
 0x66b   : > { %v960_v10 = vmul.f32 %v2333_v9, %v2331_v62 }
 0x66d   : > { %v961_v11 = vpack.c.bf16 %v960_v10, %v960_v10 }
 0x66f   : > { %2196 = vmatmul.mubr.msk.bf16.vlgmr.msra.gmra.mrb[16].mxu0 %vm791_vm6, %v961_v11 }
 0x670   : > { %2209 = vmatprep.mubr.msk.bf16.mxu0 %vm2363_vm0, %v2362_v1  ;;  %2206 = vmatpush3.bf16.msra.mxu0 %v2310_v33 }
 0x671   : > { %2207 = vmatprep.subr.bf16.mxu0 %v2362_v1 }
 0x674   : > { %2208 = vmatpush3.bf16.msra.mxu0 %v2311_v34 }
 0x675   : > { %2225 = vmatprep.subr.bf16.mxu0 %v2362_v1 }
 0x742   : > { %v1004_v13 = vpop.f32.mrb[16].mxu0 }
 0x743   : > { %v1010_v14 = vpack.c.bf16 %v1004_v13, %v1004_v13  ;;  %v2197_v15 = vpop.f32.mrb[17].mxu0  ;;  %v2046_v13 = vld [vmem:[%s2777_s14] ss:$0 sm:$0xff] }
 0x744   : > { %v1007_v16 = vpop.f32.mrb[18].mxu0  ;;  %v2047_v15 = vld [vmem:[%s2778_s15] ss:$0 sm:$0xff] }
 0x745   : > { %v2198_v17 = vpop.f32.mrb[19].mxu0  ;;  %2202 = vmatmul.mubr.msk.bf16.vlgmr.msra.gmra.mrb[8].mxu1 %vm606_vm1, %v1010_v14 }
 0x746   : > { %2221 = vmatprep.mubr.msk.bf16.mxu1 %vm2363_vm0, %v2362_v1 }
 0x818   : > { %v1054_v20 = vpop.f32.mrb[8].mxu1 }
 0x819   : > { %v1060_v21 = vadd.f32 %v1054_v20, %v898_v19  ;;  %v2203_v22 = vpop.f32.mrb[9].mxu1  ;;  %v2058_v19 = vld [vmem:[%s2768_s5 + $0x1] ss:$0 sm:$0xff] }
 0x81a   : > { %v1057_v23 = vpop.f32.mrb[10].mxu1 }
 0x81b   : > { %v2204_v25 = vpop.f32.mrb[11].mxu1  ;;  %v1061_v26 = vadd.f32 %v1060_v21, %v2507_v12  ;;  %v2312_v12 = vld [vmem:[%s2775_s12] sm:$0xff]  }
 0x81c   : > { %2214 = vmatpush3.bf16.msra.mxu1 %v2312_v12 }
 0x81d   : > { %v1065_v27 = vsel %vm1064_vm7, %v1061_v26, 0.0  ;;  %2215 = vmatprep.subr.bf16.mxu1 %v2362_v1 }
 0x81e   : > { %1066 = vadd.xlane.f32.xlu0 %v1065_v27 }
 0x820   : > { %2216 = vmatpush3.bf16.msra.mxu1 %v2313_v35 }
 0x821   : > { %2217 = vmatprep.subr.bf16.mxu1 %v2362_v1 }
 0x824   : > { %2218 = vmatpush3.bf16.msra.mxu1 %v2314_v46 }
 0x825   : > { %2219 = vmatprep.subr.bf16.mxu1 %v2362_v1 }
 0x828   : > { %2220 = vmatpush3.bf16.msra.mxu1 %v2315_v47 }
 0x829   : > { %2239 = vmatprep.subr.bf16.mxu1 %v2362_v1 }
 0x8ab   : > { %v1067_v28 = vpop.xlane.xlu0 %1066 }
 0x8ac   : > { %v1069_v29 = vmul.f32 0.03125, %v1067_v28 }
 0x8ae   : > { %v1070_v30 = vsub.f32 %v1061_v26, %v1069_v29 }
 0x8b0   : > { %v1071_v31 = vmul.f32 %v1070_v30, %v1070_v30 }
 0x8b2   : > { %v1072_v32 = vsel %vm1064_vm7, %v1071_v31, 0.0 }
 0x8b3   : > { %1073 = vadd.xlane.f32.xlu1 %v1072_v32 }
 0x940   : > { %v1074_v36 = vpop.xlane.xlu1 %1073 }
 0x941   : > { %v1075_v37 = vmul.f32 0.03125, %v1074_v36 }
 0x943   : > { %v1076_v38 = vadd.f32 1e-05, %v1075_v37 }
 0x945   : > { %2334 = vrsqrt.f32 %v1076_v38 }
 0x94f   : > { %v2335_v39 = vpop.eup %2334 }
 0x950   : > { %v1078_v41 = vmul.f32 %v2335_v39, %v1070_v30 }
 0x952   : > { %v1085_v43 = vmul.f32 %v2034_v40, %v1078_v41 }
 0x954   : > { %v1092_v44 = vadd.f32 %v2035_v42, %v1085_v43 }
 0x956   : > { %v1093_v45 = vpack.c.bf16 %v1092_v44, %v1092_v44 }
 0x958   : > { %2210 = vmatmul.mubr.msk.bf16.vlgmr.msra.gmra.mrb[20].mxu0 %vm681_vm2, %v1093_v45 }
 0x959   : > { %2229 = vmatprep.mubr.msk.bf16.mxu0 %vm2363_vm0, %v2362_v1  ;;  %2226 = vmatpush3.bf16.msra.mxu0 %v2316_v6 }
 0x95a   : > { %2227 = vmatprep.subr.bf16.mxu0 %v2362_v1 }
 0x95d   : > { %2228 = vmatpush3.bf16.msra.mxu0 %v2317_v7 }
 0x95e   : > { %2233 = vmatprep.subr.bf16.mxu0 %v2362_v1 }
 0xa2b   : > { %v1154_v49 = vpop.f32.mrb[20].mxu0 }
 0xa2c   : > { %v1155_v50 = vadd.f32 %v2036_v48, %v1154_v49  ;;  %v2211_v51 = vpop.f32.mrb[21].mxu0  ;;  %v2318_v48 = vld [vmem:[%s2769_s6 + $0x10] sm:$0xff]  }
 0xa2d   : > { %v1157_v52 = vpop.f32.mrb[22].mxu0 }
 0xa2e   : > { %v1160_v53 = vmax.f32 %v1155_v50, 0.0  ;;  %v2212_v54 = vpop.f32.mrb[23].mxu0 }
 0xa30   : > { %v1161_v55 = vpack.c.bf16 %v1160_v53, %v1160_v53 }
 0xa32   : > { %2222 = vmatmul.mubr.msk.bf16.vlgmr.msra.gmra.mrb[12].mxu1 %vm1201_vm8, %v1161_v55 }
 0xa33   : > { %2241 = vmatprep.mubr.msk.bf16.mxu1 %vm2363_vm0, %v2362_v1 }
 0xb05   : > { %v1239_v57 = vpop.f32.mrb[12].mxu1 }
 0xb06   : > { %v1240_v58 = vadd.f32 %v2040_v56, %v1239_v57  ;;  %v2223_v59 = vpop.f32.mrb[13].mxu1 }
 0xb07   : > { %v1242_v60 = vpop.f32.mrb[14].mxu1 }
 0xb08   : > { %v2224_v61 = vpop.f32.mrb[15].mxu1  ;;  %v1245_v62 = vadd.f32 %v1240_v58, %v1092_v44 }
 0xb0a   : > { %v1248_v63 = vsel %vm1064_vm7, %v1245_v62, 0.0 }
 0xb0b   : > { %1249 = vadd.xlane.f32.xlu1 %v1248_v63 }
 0xb98   : > { %v1250_v0 = vpop.xlane.xlu1 %1249 }
 0xb99   : > { %v1251_v2 = vmul.f32 0.03125, %v1250_v0 }
 0xb9b   : > { %v1252_v3 = vsub.f32 %v1245_v62, %v1251_v2  ;;  %v2319_v2 = vld [vmem:[%s2769_s6 + $0x18] sm:$0xff]  }
 0xb9d   : > { %v1253_v4 = vmul.f32 %v1252_v3, %v1252_v3 }
 0xb9f   : > { %v1254_v5 = vsel %vm1064_vm7, %v1253_v4, 0.0 }
 0xba0   : > { %1255 = vadd.xlane.f32.xlu1 %v1254_v5 }
 0xc2d   : > { %v1256_v8 = vpop.xlane.xlu1 %1255 }
 0xc2e   : > { %v1257_v9 = vmul.f32 0.03125, %v1256_v8 }
 0xc30   : > { %v1258_v10 = vadd.f32 1e-05, %v1257_v9 }
 0xc32   : > { %2336 = vrsqrt.f32 %v1258_v10 }
 0xc3c   : > { %v2337_v11 = vpop.eup %2336 }
 0xc3d   : > { %v1260_v14 = vmul.f32 %v2337_v11, %v1252_v3 }
 0xc3f   : > { %v1267_v16 = vmul.f32 %v2046_v13, %v1260_v14 }
 0xc41   : > { %v2634_v17 = vadd.f32 %v2047_v15, %v1267_v16 }
 0xc43   : > { %v1289_v18 = vpack.c.bf16 %v2634_v17, %v2634_v17 }
 0xc45   : > { %2230 = vmatmul.mubr.msk.bf16.vlgmr.msra.gmra.mrb[24].mxu0 %vm681_vm2, %v1289_v18 }
 0xc46   : > { %2235 = vmatprep.mubr.msk.bf16.mxu0 %vm2363_vm0, %v2362_v1 }
 0xd18   : > { %v1345_v20 = vpop.f32.mrb[24].mxu0 }
 0xd19   : > { %v1346_v21 = vadd.f32 %v2058_v19, %v1345_v20  ;;  %v2231_v22 = vpop.f32.mrb[25].mxu0 }
 0xd1a   : > { %v1348_v23 = vpop.f32.mrb[26].mxu0 }
 0xd1b   : > { %v2644_v25 = vpack.c.bf16 %v1346_v21, %v1346_v21  ;;  %v2232_v26 = vpop.f32.mrb[27].mxu0 }
 0xd1d   : > { %1353 = vrot.lane.b32.xlu1 %v2644_v25, %s2365_s2 }
 0xd8f   : > { %v1354_v27 = vpop.permute.xlu1 %1353 }
 0xd90   : > { %v1359_v28 = vsel %vm606_vm1, %v1354_v27, 0 }
 0xd91   : > { %2234 = vmatpush3.bf16.xpose.msra.mxu0 %v1359_v28 }
 0xd92   : > { %2245 = vmatprep.subr.bf16.mxu0 %v2362_v1 }
 0xd98   : > { %2236 = vmatmul.mubr.msk.bf16.vlgmr.msra.gmra.mrb[28].mxu0 %vm606_vm1, %v2644_v25 }
 0xd99   : > { %2247 = vmatprep.mubr.msk.bf16.mxu0 %vm2363_vm0, %v2362_v1  ;;  %2246 = vmatpush3.bf16.msra.mxu0 %v2318_v48  ;;  %v2080_v48 = vld [vmem:[%s2774_s11 + $0x1] ss:$0 sm:$0xff] }
 0xd9a   : > { %2257 = vmatprep.subr.bf16.mxu0 %v2362_v1 }
 0xe6b   : > { %v1395_v29 = vpop.f32.mrb[28].mxu0 }
 0xe6c   : > { %v1401_v30 = vmul.f32 0.25, %v1395_v29  ;;  %v2237_v31 = vpop.f32.mrb[29].mxu0 }
 0xe6d   : > { %v1398_v32 = vpop.f32.mrb[30].mxu0 }
 0xe6e   : > { %v2238_v33 = vpop.f32.mrb[31].mxu0  ;;  %v1402_v34 = vsel %vm776_vm5, %v1401_v30, -inf }
 0xe6f   : > { %1403 = vmax.xlane.f32.xlu0 %v1402_v34  ;;  %v2320_v34 = vld [vmem:[%s2773_s10 + $0x10] sm:$0xff]  }
 0xe85   : > { %1414 = vrot.lane.b32.xlu0 %v2644_v25, %s2364_s22 }
 0xe89   : > { %1521 = vrot.lane.b32.xlu0 %v2644_v25, %s2367_s23 }
 0xe8d   : > { %1519 = vrot.lane.b32.xlu0 %v2644_v25, %s2368_s24 }
 0xefc   : > { %v1404_v12 = vpop.xlane.xlu0 %1403 }
 0xefd   : > { %v1405_v35 = vsub.f32 %v1401_v30, %v1404_v12  ;;  %v2321_v12 = vld [vmem:[%s2773_s10 + $0x18] sm:$0xff]  }
 0xeff   : > { %v1406_v36 = vmul.f32 1.442695, %v1405_v35  ;;  %v2323_v35 = vld [vmem:[%s2775_s12 + $0x28] sm:$0xff]  }
 0xf00   : > { %v1415_v37 = vpop.permute.xlu0 %1414 }
 0xf01   : > { %2338 = vpow2.f32 %v1406_v36  ;;  %v1420_v38 = vand.u32 %v1415_v37, %v2523_v24 }
 0xf03   : > { %2240 = vmatpush3.bf16.msra.mxu1 %v1420_v38 }
 0xf04   : > { %2251 = vmatprep.subr.bf16.mxu1 %v2362_v1  ;;  %v1522_v44 = vpop.permute.xlu0 %1521 }
 0xf05   : > { %v1527_v46 = vsel %vm606_vm1, %v1522_v44, 0 }
 0xf08   : > { %v1520_v47 = vpop.permute.xlu0 %1519 }
 0xf0b   : > { %v2339_v39 = vpop.eup %2338 }
 0xf0c   : > { %v1408_v40 = vsel %vm776_vm5, %v2339_v39, 0.0 }
 0xf0d   : > { %1409 = vadd.xlane.f32.xlu1 %v1408_v40  ;;  %v2073_v40 = vld [vmem:[%s2771_s8 + $0x1] ss:$0 sm:$0xff] }
 0xf9a   : > { %v1410_v41 = vpop.xlane.xlu1 %1409 }
 0xf9b   : > { %2340 = vrcp.f32 %v1410_v41 }
 0xfa5   : > { %v2341_v42 = vpop.eup %2340 }
 0xfa6   : > { %v1412_v43 = vmul.f32 %v2341_v42, %v2339_v39  ;;  %v2074_v42 = vld [vmem:[%s2772_s9 + $0x1] ss:$0 sm:$0xff] }
 0xfa8   : > { %v1413_v45 = vpack.c.bf16 %v1412_v43, %v1412_v43 }
 0xfaa   : > { %2242 = vmatmul.mubr.msk.bf16.vlgmr.msra.gmra.mrb[16].mxu1 %vm791_vm6, %v1413_v45 }
 0xfab   : > { %2252 = vmatpush3.bf16.xpose.msra.mxu1 %v1527_v46  ;;  %2253 = vmatprep.mubr.msk.bf16.mxu1 %vm2363_vm0, %v2362_v1  ;;  %v2324_v46 = vld [vmem:[%s2775_s12 + $0x30] sm:$0xff]  }
 0xfac   : > { %2263 = vmatprep.subr.bf16.mxu1 %v2362_v1 }
 0xfb2   : > { %2254 = vmatmul.mubr.msk.bf16.vlgmr.msra.gmra.mrb[20].mxu1 %vm606_vm1, %v1520_v47  ;;  %v2325_v47 = vld [vmem:[%s2775_s12 + $0x38] sm:$0xff]  }
 0xfb3   : > { %2265 = vmatprep.mubr.msk.bf16.mxu1 %vm2363_vm0, %v2362_v1  ;;  %2264 = vmatpush3.bf16.msra.mxu1 %v2319_v2 }
 0xfb4   : > { %2277 = vmatprep.subr.bf16.mxu1 %v2362_v1 }
0x107d   : > { %v1456_v49 = vpop.f32.mrb[16].mxu1 }
0x107e   : > { %v1462_v50 = vpack.c.bf16 %v1456_v49, %v1456_v49  ;;  %v2243_v51 = vpop.f32.mrb[17].mxu1 }
0x107f   : > { %v1459_v52 = vpop.f32.mrb[18].mxu1 }
0x1080   : > { %v2244_v53 = vpop.f32.mrb[19].mxu1  ;;  %2248 = vmatmul.mubr.msk.bf16.vlgmr.msra.gmra.mrb[32].mxu0 %vm606_vm1, %v1462_v50 }
0x1081   : > { %2259 = vmatprep.mubr.msk.bf16.mxu0 %vm2363_vm0, %v2362_v1 }
0x1085   : > { %v1563_v54 = vpop.f32.mrb[20].mxu1 }
0x1086   : > { %v1569_v55 = vmul.f32 0.25, %v1563_v54  ;;  %v2255_v56 = vpop.f32.mrb[21].mxu1 }
0x1087   : > { %v1566_v57 = vpop.f32.mrb[22].mxu1 }
0x1088   : > { %v2256_v58 = vpop.f32.mrb[23].mxu1  ;;  %v1570_v59 = vsel %vm776_vm5, %v1569_v55, -inf }
0x1089   : > { %1571 = vmax.xlane.f32.xlu0 %v1570_v59 }
0x1116   : > { %v1572_v60 = vpop.xlane.xlu0 %1571 }
0x1117   : > { %v1573_v61 = vsub.f32 %v1569_v55, %v1572_v60 }
0x1119   : > { %v1574_v62 = vmul.f32 1.442695, %v1573_v61 }
0x111b   : > { %2342 = vpow2.f32 %v1574_v62 }
0x1125   : > { %v2343_v63 = vpop.eup %2342 }
0x1126   : > { %v1576_v0 = vsel %vm776_vm5, %v2343_v63, 0.0 }
0x1127   : > { %1577 = vadd.xlane.f32.xlu1 %v1576_v0 }
0x1138   : > { %1582 = vrot.lane.b32.xlu1 %v2644_v25, %s2369_s28 }
0x1153   : > { %v1506_v3 = vpop.f32.mrb[32].mxu0 }
0x1154   : > { %v2249_v4 = vpop.f32.mrb[33].mxu0 }
0x1155   : > { %v1509_v5 = vpop.f32.mrb[34].mxu0 }
0x1156   : > { %v2250_v6 = vpop.f32.mrb[35].mxu0 }
0x11b4   : > { %v1578_v7 = vpop.xlane.xlu1 %1577 }
0x11b5   : > { %2344 = vrcp.f32 %v1578_v7 }
0x11b8   : > { %v1583_v8 = vpop.permute.xlu1 %1582 }
0x11b9   : > { %v1588_v9 = vand.u32 %v1583_v8, %v2523_v24  ;;  %v2066_v24 = vld [vmem:[%s2770_s7 + $0x1] ss:$0 sm:$0xff] }
0x11ba   : > { %v1518_v20 = vadd.f32 %v2066_v24, %v1506_v3 }
0x11bb   : > { %2258 = vmatpush3.bf16.msra.mxu0 %v1588_v9  ;;  %v2101_v9 = vld [vmem:[%s2777_s14 + $0x1] ss:$0 sm:$0xff] }
0x11bc   : > { %2269 = vmatprep.subr.bf16.mxu0 %v2362_v1 }
0x11bf   : > { %v2345_v10 = vpop.eup %2344 }
0x11c0   : > { %v1580_v11 = vmul.f32 %v2345_v10, %v2343_v63 }
0x11c2   : > { %v1581_v13 = vpack.c.bf16 %v1580_v11, %v1580_v11  ;;  %v2102_v11 = vld [vmem:[%s2778_s15 + $0x1] ss:$0 sm:$0xff] }
0x11c4   : > { %2260 = vmatmul.mubr.msk.bf16.vlgmr.msra.gmra.mrb[36].mxu0 %vm791_vm6, %v1581_v13 }
0x11c5   : > { %2273 = vmatprep.mubr.msk.bf16.mxu0 %vm2363_vm0, %v2362_v1  ;;  %2270 = vmatpush3.bf16.msra.mxu0 %v2320_v34 }
0x11c6   : > { %2271 = vmatprep.subr.bf16.mxu0 %v2362_v1 }
0x11c9   : > { %2272 = vmatpush3.bf16.msra.mxu0 %v2321_v12 }
0x1297   : > { %v1624_v14 = vpop.f32.mrb[36].mxu0 }
0x1298   : > { %v1630_v15 = vpack.c.bf16 %v1624_v14, %v1624_v14  ;;  %v2261_v16 = vpop.f32.mrb[37].mxu0 }
0x1299   : > { %v1627_v18 = vpop.f32.mrb[38].mxu0 }
0x129a   : > { %v2262_v19 = vpop.f32.mrb[39].mxu0  ;;  %2266 = vmatmul.mubr.msk.bf16.vlgmr.msra.gmra.mrb[24].mxu1 %vm606_vm1, %v1630_v15 }
0x129b   : > { %2285 = vmatprep.mubr.msk.bf16.mxu1 %vm2363_vm0, %v2362_v1 }
0x136d   : > { %v1674_v21 = vpop.f32.mrb[24].mxu1 }
0x136e   : > { %v1680_v22 = vadd.f32 %v1674_v21, %v1518_v20  ;;  %v2267_v23 = vpop.f32.mrb[25].mxu1 }
0x136f   : > { %v1677_v25 = vpop.f32.mrb[26].mxu1 }
0x1370   : > { %v2268_v26 = vpop.f32.mrb[27].mxu1  ;;  %v1681_v27 = vadd.f32 %v1680_v22, %v2634_v17  ;;  %v2322_v17 = vld [vmem:[%s2775_s12 + $0x20] sm:$0xff]  }
0x1371   : > { %2278 = vmatpush3.bf16.msra.mxu1 %v2322_v17  ;;  %v2103_v26 = vld [vmem:[%s2779_s16] ss:$0 sm:$0xff] }
0x1372   : > { %v1686_v28 = vsel %vm1064_vm7, %v1681_v27, 0.0  ;;  %2279 = vmatprep.subr.bf16.mxu1 %v2362_v1 }
0x1373   : > { %1687 = vadd.xlane.f32.xlu1 %v1686_v28  ;;  %v2104_v28 = vld [vmem:[%s2780_s17] ss:$0 sm:$0xff] }
0x1375   : > { %2280 = vmatpush3.bf16.msra.mxu1 %v2323_v35 }
0x1376   : > { %2281 = vmatprep.subr.bf16.mxu1 %v2362_v1 }
0x1379   : > { %2282 = vmatpush3.bf16.msra.mxu1 %v2324_v46 }
0x137a   : > { %2283 = vmatprep.subr.bf16.mxu1 %v2362_v1  ;;  %v2093_v1 = vld [vmem:[%s2776_s13 + $0x1] ss:$0 sm:$0xff] }
0x137d   : > { %2284 = vmatpush3.bf16.msra.mxu1 %v2325_v47 }
0x1400   : > { %v1688_v29 = vpop.xlane.xlu1 %1687 }
0x1401   : > { %v1689_v30 = vmul.f32 0.03125, %v1688_v29 }
0x1403   : > { %v1690_v31 = vsub.f32 %v1681_v27, %v1689_v30 }
0x1405   : > { %v1691_v32 = vmul.f32 %v1690_v31, %v1690_v31 }
0x1407   : > { %v1692_v33 = vsel %vm1064_vm7, %v1691_v32, 0.0 }
0x1408   : > { %1693 = vadd.xlane.f32.xlu0 %v1692_v33 }
0x1495   : > { %v1694_v36 = vpop.xlane.xlu0 %1693 }
0x1496   : > { %v1695_v37 = vmul.f32 0.03125, %v1694_v36 }
0x1498   : > { %v1696_v38 = vadd.f32 1e-05, %v1695_v37 }
0x149a   : > { %2346 = vrsqrt.f32 %v1696_v38 }
0x14a4   : > { %v2347_v39 = vpop.eup %2346 }
0x14a5   : > { %v1698_v41 = vmul.f32 %v2347_v39, %v1690_v31 }
0x14a7   : > { %v1705_v43 = vmul.f32 %v2073_v40, %v1698_v41 }
0x14a9   : > { %v1712_v44 = vadd.f32 %v2074_v42, %v1705_v43 }
0x14ab   : > { %v1713_v45 = vpack.c.bf16 %v1712_v44, %v1712_v44 }
0x14ad   : > { %2274 = vmatmul.mubr.msk.bf16.vlgmr.msra.gmra.mrb[40].mxu0 %vm681_vm2, %v1713_v45 }
0x1580   : > { %v1776_v49 = vpop.f32.mrb[40].mxu0 }
0x1581   : > { %v1777_v50 = vadd.f32 %v2080_v48, %v1776_v49  ;;  %v2275_v51 = vpop.f32.mrb[41].mxu0 }
0x1582   : > { %v1779_v52 = vpop.f32.mrb[42].mxu0 }
0x1583   : > { %v1782_v53 = vmax.f32 %v1777_v50, 0.0  ;;  %v2276_v54 = vpop.f32.mrb[43].mxu0 }
0x1585   : > { %v1783_v55 = vpack.c.bf16 %v1782_v53, %v1782_v53 }
0x1587   : > { %2286 = vmatmul.mubr.msk.bf16.vlgmr.msra.gmra.mrb[28].mxu1 %vm1201_vm8, %v1783_v55 }
0x165a   : > { %v1862_v56 = vpop.f32.mrb[28].mxu1 }
0x165b   : > { %v1863_v57 = vadd.f32 %v2093_v1, %v1862_v56  ;;  %v2287_v58 = vpop.f32.mrb[29].mxu1 }
0x165c   : > { %v1865_v59 = vpop.f32.mrb[30].mxu1 }
0x165d   : > { %v2288_v60 = vpop.f32.mrb[31].mxu1  ;;  %v1868_v61 = vadd.f32 %v1863_v57, %v1712_v44 }
0x165f   : > { %v1873_v62 = vsel %vm1064_vm7, %v1868_v61, 0.0 }
0x1660   : > { %1874 = vadd.xlane.f32.xlu0 %v1873_v62 }
0x16ed   : > { %v1875_v63 = vpop.xlane.xlu0 %1874 }
0x16ee   : > { %v1876_v0 = vmul.f32 0.03125, %v1875_v63 }
0x16f0   : > { %v1877_v2 = vsub.f32 %v1868_v61, %v1876_v0 }
0x16f2   : > { %v1878_v3 = vmul.f32 %v1877_v2, %v1877_v2 }
0x16f4   : > { %v1879_v4 = vsel %vm1064_vm7, %v1878_v3, 0.0 }
0x16f5   : > { %1880 = vadd.xlane.f32.xlu0 %v1879_v4 }
0x1782   : > { %v1881_v5 = vpop.xlane.xlu0 %1880 }
0x1783   : > { %v1882_v6 = vmul.f32 0.03125, %v1881_v5 }
0x1785   : > { %v1883_v7 = vadd.f32 1e-05, %v1882_v6 }
0x1787   : > { %2348 = vrsqrt.f32 %v1883_v7 }
0x1791   : > { %v2349_v8 = vpop.eup %2348 }
0x1792   : > { %v1885_v10 = vmul.f32 %v2349_v8, %v1877_v2 }
0x1794   : > { %v1892_v13 = vmul.f32 %v2101_v9, %v1885_v10 }
0x1796   : > { %v1899_v14 = vadd.f32 %v2102_v11, %v1892_v13 }
0x1798   : > { %v1902_v15 = vsel %vm1064_vm7, %v1899_v14, 0.0 }
0x1799   : > { %1903 = vadd.xlane.f32.xlu0 %v1902_v15 }
0x1826   : > { %v1904_v16 = vpop.xlane.xlu0 %1903 }
0x1827   : > { %v1905_v18 = vmul.f32 0.03125, %v1904_v16 }
0x1829   : > { %v1906_v19 = vsub.f32 %v1899_v14, %v1905_v18 }
0x182b   : > { %v1907_v24 = vmul.f32 %v1906_v19, %v1906_v19 }
0x182d   : > { %v1908_v20 = vsel %vm1064_vm7, %v1907_v24, 0.0 }
0x182e   : > { %1909 = vadd.xlane.f32.xlu0 %v1908_v20 }
0x18bb   : > { %v1910_v21 = vpop.xlane.xlu0 %1909 }
0x18bc   : > { %v1911_v22 = vmul.f32 0.03125, %v1910_v21 }
0x18be   : > { %v1912_v23 = vadd.f32 1e-05, %v1911_v22 }
0x18c0   : > { %2350 = vrsqrt.f32 %v1912_v23 }
0x18ca   : > { %v2351_v25 = vpop.eup %2350 }
0x18cb   : > { %v1914_v27 = vmul.f32 %v2351_v25, %v1906_v19 }
0x18cd   : > { %v1921_v29 = vmul.f32 %v2103_v26, %v1914_v27 }
0x18cf   : > { %v1928_v30 = vadd.f32 %v2104_v28, %v1921_v29 }
0x18d1   : > { %v1929_v31 = vsel %vm1064_vm7, %v1928_v30, 0.0 }
0x18d2   : > { %1930 = vadd.xlane.f32.xlu0 %v1929_v31 }
0x195f   : > { %v1931_v32 = vpop.xlane.xlu0 %1930 }
0x1960   : > { %v1932_v33 = vmul.f32 0.03125, %v1931_v32 }
0x1962   : > { %v1933_v34 = vsub.f32 %v1928_v30, %v1932_v33 }
0x1964   : > { %v1934_v12 = vmul.f32 %v1933_v34, %v1933_v34 }
0x1966   : > { %v1935_v17 = vsel %vm1064_vm7, %v1934_v12, 0.0 }
0x1967   : > { %1936 = vadd.xlane.f32.xlu0 %v1935_v17 }
0x19f4   : > { %v1937_v35 = vpop.xlane.xlu0 %1936 }
0x19f5   : > { %v1938_v36 = vmul.f32 0.03125, %v1937_v35 }
0x19f7   : > { %v1939_v37 = vadd.f32 1e-05, %v1938_v36 }
0x19f9   : > { %2352 = vrsqrt.f32 %v1939_v37 }
0x1a03   : > { %v2353_v38 = vpop.eup %2352 }
0x1a04   : > { %v1941_v39 = vmul.f32 %v2353_v38, %v1933_v34 }
0x1a06   : > { %v1942_v40 = vmul.f32 %v2103_v26, %v1941_v39 }
0x1a08   : > { %v1943_v41 = vadd.f32 %v2104_v28, %v1942_v40 }
0x1a0a   : > { %1944 = vst.msk [vmem:[%s587_s26] sm:$0x7] %vm1064_vm7, %v1943_v41 }
0x1a0b PF: > { %s28_s27 = sadd.s32 1, %s2360_s27  }
0x1a0c   : > { %p25_p4 = scmp.ge.s32.totalorder %s28_s27, 4  }
0x1a0e   :  { %27 = sbr.rel (!%p25_p4) target bundleno = 4 (0x4), region = 137 }

// kernel: forward.4
= control target key start
LH: loop header
LB: loop body
LE: loop exit
PB: predicated region body
PF: predicated region fallthrough
CT: control target
= control target key end

     0   :  { %s3006_s0 = inlined_call_operand.vmem [shape: f32[2,5,16], index: 0, kind: input, shape index: {}]   ;;  %s3007_s1 = inlined_call_operand.vmem [shape: f32[2,5,32], index: 1, kind: input, shape index: {}]   ;;  %s3008_s2 = inlined_call_operand.vmem [shape: bf16[16,32], index: 2, kind: input, shape index: {}]   ;;  %s3009_s3 = inlined_call_operand.vmem [shape: f32[1,32], index: 3, kind: input, shape index: {}]   ;;  %s3010_s4 = inlined_call_operand.vmem [shape: bf16[2,32,96], index: 4, kind: input, shape index: {}]   ;;  %s3011_s5 = inlined_call_operand.vmem [shape: f32[2,1,96], index: 5, kind: input, shape index: {}]   ;;  %s3012_s6 = inlined_call_operand.vmem [shape: bf16[2,32,32], index: 6, kind: input, shape index: {}]   ;;  %s3013_s7 = inlined_call_operand.vmem [shape: f32[2,1,32], index: 7, kind: input, shape index: {}]   ;;  %s3014_s8 = inlined_call_operand.vmem [shape: f32[2,1,32], index: 8, kind: input, shape index: {}]   ;;  %s3015_s9 = inlined_call_operand.vmem [shape: f32[2,1,32], index: 9, kind: input, shape index: {}]   ;;  %s3016_s10 = inlined_call_operand.vmem [shape: bf16[2,32,64], index: 10, kind: input, shape index: {}]   ;;  %s3017_s11 = inlined_call_operand.vmem [shape: f32[2,1,64], index: 11, kind: input, shape index: {}]   ;;  %s3018_s12 = inlined_call_operand.vmem [shape: bf16[2,64,32], index: 12, kind: input, shape index: {}]   ;;  %s3019_s13 = inlined_call_operand.vmem [shape: f32[2,1,32], index: 13, kind: input, shape index: {}]   ;;  %s3020_s14 = inlined_call_operand.vmem [shape: f32[2,1,32], index: 14, kind: input, shape index: {}]   ;;  %s3021_s15 = inlined_call_operand.vmem [shape: f32[2,1,32], index: 15, kind: input, shape index: {}]   ;;  %s3022_s16 = inlined_call_operand.vmem [shape: f32[1,32], index: 16, kind: input, shape index: {}]   ;;  %s3023_s17 = inlined_call_operand.vmem [shape: f32[1,32], index: 17, kind: input, shape index: {}]   ;;  %s3024_s18 = inlined_call_operand.vmem [shape: bf16[32,32], index: 18, kind: input, shape index: {}]   ;;  %s3025_s19 = inlined_call_operand.vmem [shape: f32[1,32], index: 19, kind: input, shape index: {}]   ;;  %s3026_s20 = inlined_call_operand.vmem [shape: f32[2,5,32], index: 20, kind: output, shape index: {0}]   ;;  %s3027_s21 = inlined_call_operand.vmem [shape: f32[2,5,32], index: 21, kind: output, shape index: {1}]  }
   0x1   :  { %3032 = sst [smem:[#allocation2_spill]] %s3006_s0 }
   0x2   :  { %3033 = sst [smem:[#allocation3_spill]] %s3007_s1 }
   0x3   :  { %3034 = sst [smem:[#allocation4_spill]] %s3008_s2  ;;  %s2689_s2 = smov 0  }
   0x4   :  { %3035 = sst [smem:[#allocation5_spill]] %s3009_s3 }
   0x5   :  { %3036 = sst [smem:[#allocation6_spill]] %s3010_s4 }
   0x6   :  { %3037 = sst [smem:[#allocation7_spill]] %s3011_s5 }
   0x7 LB: > { %s2201_s25 = sadd.s32 4294967295, %s2569_s2   ;;  %p2205_p0 = scmp.ge.s32.totalorder %s2569_s2, 1  ;;  %s2569_s2 = sphi %s2689_s2, %s32_s2  }
   0x8   : > { %p598_p1 = scmp.lt.s32.totalorder %s2569_s2, 3 }
   0xa   : > { %p599_p2 = pnand %p2205_p0, %p598_p1 }
   0xb   : > { %s3038_s3 = sld [smem:[#allocation4_spill]] (!%p599_p2)  ;;  %v2571_v1 = vmov (!%p599_p2), 0.0   ;;  %p664_p3 = scmp.lt.s32.totalorder (!%p599_p2), %s2201_s25, 1  ;;  %vm2572_vm0 = vmmov (!%p599_p2), 0   ;;  %vm698_vm1 = vcmask (!%p599_p2), 130048   ;;  %vm773_vm2 = vcmask (!%p599_p2), 261120  }
   0xc   : > { %602 = sbr.rel (%p599_p2) target bundleno = 6886 (0x1ae6), region = 100  ;;  %2354 = vmatprep.subr.bf16.mxu0 (!%p599_p2), %v2571_v1  ;;  %2360 = vmatprep.subr.bf16.mxu1 (!%p599_p2), %v2571_v1  ;;  %s3039_s4 = sld [smem:[#allocation2_spill]] (!%p599_p2)  ;;  %vm887_vm3 = vcmask (!%p599_p2), 1041408   ;;  %vm888_vm4 = vcmask (!%p599_p2), 1042432   ;;  %v2575_v22 = vmov (!%p599_p2), 65535   ;;  %vm868_vm5 = vcmask (!%p599_p2), 36864  }
   0xd   : > { %2356 = vmatprep.mubr.msk.bf16.mxu0 (!%p599_p2), %vm2572_vm0, %v2571_v1  ;;  %2364 = vmatprep.mubr.msk.bf16.mxu1 (!%p599_p2), %vm2572_vm0, %v2571_v1  ;;  %s3040_s23 = sld [smem:[#allocation6_spill]] (!%p599_p2)  ;;  %s3041_s27 = sld [smem:[#allocation3_spill]] (!%p599_p2)  ;;  %v889_v23 = vsel (!%p599_p2), %vm887_vm3, 4294967295, %v2575_v22  ;;  %vm883_vm6 = vcmask (!%p599_p2), 39936   ;;  %v2515_v47 = vld [vmem:[%s3012_s6] sm:$0xff] (!%p599_p2)   ;;  %vm1156_vm7 = vcmask (!%p599_p2), 258048  }
   0xe   : > { %s3043_s22 = sld [smem:[#allocation7_spill]] (!%p599_p2)  ;;  %s2573_s1 = smov (!%p599_p2), 64   ;;  %v2747_v24 = vsel (!%p599_p2), %vm888_vm4, %v889_v23, 0  ;;  %vm1293_vm8 = vcmask (!%p599_p2), 523264  }
   0xf   : > { %s2574_s24 = smov (!%p599_p2), 96   ;;  %s3031_s26 = smov (!%p599_p2), 112  }
  0x10   : > { %s3030_s29 = smov (!%p599_p2), 48  }
  0x11   : > { %v2512_v0 = vld [vmem:[%s3038_s3] sm:$0xff] (!%p599_p2)  }
  0x12   : > { %2355 = vmatpush3.bf16.msra.mxu0 (!%p599_p2), %v2512_v0  ;;  %v2516_v0 = vld [vmem:[%s3012_s6 + $0x8] sm:$0xff] (!%p599_p2)  }
  0x13   : > { %s3047_s25 = smov (!%p664_p3, %s2201_s25), 1  ;;  %2368 = vmatprep.subr.bf16.mxu0 %v2571_v1  ;;  %v2513_v4 = vld [vmem:[%s3040_s23] sm:$0xff]   ;;  %v2514_v5 = vld [vmem:[%s3040_s23 + $0x8] sm:$0xff]  }
  0x14   : > { %s2707_s28 = sshll.u32 %s3047_s25, 3  ;;  %2361 = vmatpush3.bf16.msra.mxu1 %v2513_v4  ;;  %v2213_v15 = vld [vmem:[%s3043_s22] ss:$0 sm:$0xff]  ;;  %s2576_s25 = smov 80  }
  0x15   : > { %s667_s30 = scalar_lea.vmem %s3039_s4, %s2707_s28  ;;  %2362 = vmatprep.subr.bf16.mxu1 %v2571_v1  ;;  %s671_s3 = scalar_lea.vmem %s3041_s27, %s2707_s28 }
  0x16   : > { %v681_v2 = vld [vmem:[%s667_s30] sm:$0x1f]  ;;  %s3042_s4 = sld [smem:[#allocation5_spill]]  ;;  %s3045_s30 = smov 48  }
  0x17   : > { %v682_v3 = vpack.c.bf16 %v681_v2, %v681_v2  ;;  %v742_v8 = vld [vmem:[%s671_s3] sm:$0x1f] }
  0x18   : > { %2363 = vmatpush3.bf16.msra.mxu1 %v2514_v5 }
  0x19   : > { %2357 = vmatmul.mubr.msk.bf16.vlgmr.msra.gmra.mrb[0].mxu0 %vm698_vm1, %v682_v3  ;;  %2374 = vmatprep.subr.bf16.mxu1 %v2571_v1 }
  0x1a   : > { %2370 = vmatprep.mubr.msk.bf16.mxu0 %vm2572_vm0, %v2571_v1 }
  0x1c   : > { %v2210_v6 = vld [vmem:[%s3042_s4] ss:$0 sm:$0xff] }
  0xec   : > { %v736_v7 = vpop.f32.mrb[0].mxu0 }
  0xed   : > { %v737_v9 = vadd.f32 %v2210_v6, %v736_v7  ;;  %v2358_v10 = vpop.f32.mrb[1].mxu0 }
  0xee   : > { %v739_v11 = vpop.f32.mrb[2].mxu0 }
  0xef   : > { %v2731_v12 = vadd.f32 %v742_v8, %v737_v9  ;;  %v2359_v13 = vpop.f32.mrb[3].mxu0 }
  0xf1   : > { %v754_v14 = vpack.c.bf16 %v2731_v12, %v2731_v12 }
  0xf3   : > { %2365 = vmatmul.mubr.msk.bf16.vlgmr.msra.gmra.mrb[0].mxu1 %vm773_vm2, %v754_v14 }
  0xf4   : > { %2376 = vmatprep.mubr.msk.bf16.mxu1 %vm2572_vm0, %v2571_v1 }
 0x1c6   : > { %v811_v16 = vpop.f32.mrb[0].mxu1 }
 0x1c7   : > { %v812_v17 = vadd.f32 %v2213_v15, %v811_v16  ;;  %v2366_v18 = vpop.f32.mrb[1].mxu1 }
 0x1c8   : > { %v814_v19 = vpop.f32.mrb[2].mxu1  ;;  %v2221_v18 = vld [vmem:[%s3013_s7] ss:$0 sm:$0xff] }
 0x1c9   : > { %v2741_v20 = vpack.c.bf16 %v812_v17, %v812_v17  ;;  %v2367_v21 = vpop.f32.mrb[3].mxu1 }
 0x1cb   : > { %881 = vrot.lane.b32.xlu1 %v2741_v20, %s2573_s1  ;;  %819 = vrot.lane.b32.xlu0 %v2741_v20, %s2574_s24 }
 0x23d   : > { %v882_v25 = vpop.permute.xlu1 %881  ;;  %v820_v26 = vpop.permute.xlu0 %819 }
 0x23e   : > { %v892_v27 = vand.u32 %v2747_v24, %v882_v25  ;;  %v825_v28 = vsel %vm698_vm1, %v820_v26, 0 }
 0x23f   : > { %2369 = vmatpush3.bf16.xpose.msra.mxu0 %v825_v28 }
 0x240   : > { %2375 = vmatpush3.bf16.msra.mxu1 %v892_v27  ;;  %2380 = vmatprep.subr.bf16.mxu0 %v2571_v1 }
 0x241   : > { %2386 = vmatprep.subr.bf16.mxu1 %v2571_v1 }
 0x246   : > { %2371 = vmatmul.mubr.msk.bf16.vlgmr.msra.gmra.mrb[4].mxu0 %vm698_vm1, %v2741_v20 }
 0x247   : > { %2382 = vmatprep.mubr.msk.bf16.mxu0 %vm2572_vm0, %v2571_v1  ;;  %2381 = vmatpush3.bf16.msra.mxu0 %v2515_v47  ;;  %v2522_v47 = vld [vmem:[%s3018_s12 + $0x18] sm:$0xff]  }
 0x248   : > { %2392 = vmatprep.subr.bf16.mxu0 %v2571_v1 }
 0x319   : > { %v861_v29 = vpop.f32.mrb[4].mxu0 }
 0x31a   : > { %v867_v30 = vmul.f32 0.25, %v861_v29  ;;  %v2372_v31 = vpop.f32.mrb[5].mxu0 }
 0x31b   : > { %v864_v32 = vpop.f32.mrb[6].mxu0 }
 0x31c   : > { %v2373_v33 = vpop.f32.mrb[7].mxu0  ;;  %v869_v34 = vsel %vm868_vm5, %v867_v30, -inf }
 0x31d   : > { %870 = vmax.xlane.f32.xlu0 %v869_v34  ;;  %v2517_v33 = vld [vmem:[%s3016_s10] sm:$0xff]   ;;  %v2518_v34 = vld [vmem:[%s3016_s10 + $0x8] sm:$0xff]  }
 0x3aa   : > { %v871_v35 = vpop.xlane.xlu0 %870 }
 0x3ab   : > { %v872_v36 = vsub.f32 %v867_v30, %v871_v35  ;;  %v2520_v35 = vld [vmem:[%s3018_s12 + $0x8] sm:$0xff]  }
 0x3ad   : > { %v873_v37 = vmul.f32 1.442695, %v872_v36 }
 0x3af   : > { %2535 = vpow2.f32 %v873_v37 }
 0x3b9   : > { %v2536_v38 = vpop.eup %2535 }
 0x3ba   : > { %v875_v39 = vsel %vm868_vm5, %v2536_v38, 0.0 }
 0x3bb   : > { %876 = vadd.xlane.f32.xlu1 %v875_v39 }
 0x3cc   : > { %993 = vrot.lane.b32.xlu1 %v2741_v20, %s2576_s25 }
 0x3d0   : > { %991 = vrot.lane.b32.xlu1 %v2741_v20, %s3031_s26  ;;  %s675_s26 = scalar_lea.vmem %s3026_s20, %s2707_s28 }
 0x448   : > { %v877_v40 = vpop.xlane.xlu1 %876 }
 0x449   : > { %2537 = vrcp.f32 %v877_v40  ;;  %v2226_v40 = vld [vmem:[%s3014_s8] ss:$0 sm:$0xff] }
 0x44c   : > { %v994_v43 = vpop.permute.xlu1 %993 }
 0x44d   : > { %v999_v45 = vsel %vm698_vm1, %v994_v43, 0 }
 0x450   : > { %v992_v46 = vpop.permute.xlu1 %991 }
 0x453   : > { %v2538_v41 = vpop.eup %2537 }
 0x454   : > { %v879_v42 = vmul.f32 %v2538_v41, %v2536_v38 }
 0x456   : > { %v880_v44 = vpack.c.bf16 %v879_v42, %v879_v42  ;;  %v2227_v42 = vld [vmem:[%s3015_s9] ss:$0 sm:$0xff] }
 0x458   : > { %2377 = vmatmul.mubr.msk.bf16.vlgmr.msra.gmra.mrb[4].mxu1 %vm883_vm6, %v880_v44 }
 0x459   : > { %2387 = vmatpush3.bf16.xpose.msra.mxu1 %v999_v45  ;;  %2388 = vmatprep.mubr.msk.bf16.mxu1 %vm2572_vm0, %v2571_v1 }
 0x45a   : > { %2398 = vmatprep.subr.bf16.mxu1 %v2571_v1 }
 0x460   : > { %2389 = vmatmul.mubr.msk.bf16.vlgmr.msra.gmra.mrb[8].mxu1 %vm698_vm1, %v992_v46  ;;  %v2521_v46 = vld [vmem:[%s3018_s12 + $0x10] sm:$0xff]  }
 0x461   : > { %2400 = vmatprep.mubr.msk.bf16.mxu1 %vm2572_vm0, %v2571_v1  ;;  %2399 = vmatpush3.bf16.msra.mxu1 %v2516_v0 }
 0x462   : > { %2412 = vmatprep.subr.bf16.mxu1 %v2571_v1 }
 0x52b   : > { %v928_v48 = vpop.f32.mrb[4].mxu1 }
 0x52c   : > { %v934_v49 = vpack.c.bf16 %v928_v48, %v928_v48  ;;  %v2378_v50 = vpop.f32.mrb[5].mxu1  ;;  %v2228_v48 = vld [vmem:[%s3017_s11] ss:$0 sm:$0xff] }
 0x52d   : > { %v931_v51 = vpop.f32.mrb[6].mxu1 }
 0x52e   : > { %v2379_v52 = vpop.f32.mrb[7].mxu1  ;;  %2383 = vmatmul.mubr.msk.bf16.vlgmr.msra.gmra.mrb[8].mxu0 %vm698_vm1, %v934_v49 }
 0x52f   : > { %2394 = vmatprep.mubr.msk.bf16.mxu0 %vm2572_vm0, %v2571_v1 }
 0x533   : > { %v1035_v53 = vpop.f32.mrb[8].mxu1 }
 0x534   : > { %v1041_v54 = vmul.f32 0.25, %v1035_v53  ;;  %v2390_v55 = vpop.f32.mrb[9].mxu1 }
 0x535   : > { %v1038_v56 = vpop.f32.mrb[10].mxu1 }
 0x536   : > { %v2391_v57 = vpop.f32.mrb[11].mxu1  ;;  %v1042_v58 = vsel %vm868_vm5, %v1041_v54, -inf  ;;  %v2232_v56 = vld [vmem:[%s3019_s13] ss:$0 sm:$0xff] }
 0x537   : > { %1043 = vmax.xlane.f32.xlu1 %v1042_v58 }
 0x5c4   : > { %v1044_v59 = vpop.xlane.xlu1 %1043 }
 0x5c5   : > { %v1045_v60 = vsub.f32 %v1041_v54, %v1044_v59 }
 0x5c7   : > { %v1046_v61 = vmul.f32 1.442695, %v1045_v60 }
 0x5c9   : > { %2539 = vpow2.f32 %v1046_v61 }
 0x5d3   : > { %v2540_v62 = vpop.eup %2539 }
 0x5d4   : > { %v1048_v63 = vsel %vm868_vm5, %v2540_v62, 0.0 }
 0x5d5   : > { %1049 = vadd.xlane.f32.xlu0 %v1048_v63 }
 0x5eb   : > { %1054 = vrot.lane.b32.xlu0 %v2741_v20, %s3030_s29 }
 0x601   : > { %v978_v2 = vpop.f32.mrb[8].mxu0 }
 0x602   : > { %v2384_v3 = vpop.f32.mrb[9].mxu0  ;;  %v990_v19 = vadd.f32 %v2221_v18, %v978_v2 }
 0x603   : > { %v981_v4 = vpop.f32.mrb[10].mxu0 }
 0x604   : > { %v2385_v5 = vpop.f32.mrb[11].mxu0 }
 0x662   : > { %v1050_v6 = vpop.xlane.xlu0 %1049 }
 0x663   : > { %2541 = vrcp.f32 %v1050_v6  ;;  %v2523_v6 = vld [vmem:[%s3040_s23 + $0x10] sm:$0xff]  }
 0x666   : > { %v1055_v7 = vpop.permute.xlu0 %1054 }
 0x667   : > { %v1060_v8 = vand.u32 %v1055_v7, %v2747_v24  ;;  %v2524_v7 = vld [vmem:[%s3040_s23 + $0x18] sm:$0xff]  }
 0x669   : > { %2393 = vmatpush3.bf16.msra.mxu0 %v1060_v8 }
 0x66a   : > { %2404 = vmatprep.subr.bf16.mxu0 %v2571_v1 }
 0x66d   : > { %v2542_v9 = vpop.eup %2541 }
 0x66e   : > { %v1052_v10 = vmul.f32 %v2542_v9, %v2540_v62 }
 0x670   : > { %v1053_v11 = vpack.c.bf16 %v1052_v10, %v1052_v10 }
 0x672   : > { %2395 = vmatmul.mubr.msk.bf16.vlgmr.msra.gmra.mrb[12].mxu0 %vm883_vm6, %v1053_v11 }
 0x673   : > { %2408 = vmatprep.mubr.msk.bf16.mxu0 %vm2572_vm0, %v2571_v1  ;;  %2405 = vmatpush3.bf16.msra.mxu0 %v2517_v33 }
 0x674   : > { %2406 = vmatprep.subr.bf16.mxu0 %v2571_v1 }
 0x677   : > { %2407 = vmatpush3.bf16.msra.mxu0 %v2518_v34 }
 0x678   : > { %2424 = vmatprep.subr.bf16.mxu0 %v2571_v1 }
 0x745   : > { %v1096_v13 = vpop.f32.mrb[12].mxu0 }
 0x746   : > { %v1102_v14 = vpack.c.bf16 %v1096_v13, %v1096_v13  ;;  %v2396_v15 = vpop.f32.mrb[13].mxu0  ;;  %v2238_v13 = vld [vmem:[%s3020_s14] ss:$0 sm:$0xff] }
 0x747   : > { %v1099_v16 = vpop.f32.mrb[14].mxu0  ;;  %v2239_v15 = vld [vmem:[%s3021_s15] ss:$0 sm:$0xff] }
 0x748   : > { %v2397_v17 = vpop.f32.mrb[15].mxu0  ;;  %2401 = vmatmul.mubr.msk.bf16.vlgmr.msra.gmra.mrb[12].mxu1 %vm698_vm1, %v1102_v14 }
 0x749   : > { %2420 = vmatprep.mubr.msk.bf16.mxu1 %vm2572_vm0, %v2571_v1 }
 0x81b   : > { %v1146_v20 = vpop.f32.mrb[12].mxu1 }
 0x81c   : > { %v1152_v21 = vadd.f32 %v1146_v20, %v990_v19  ;;  %v2402_v22 = vpop.f32.mrb[13].mxu1  ;;  %v2250_v19 = vld [vmem:[%s3043_s22 + $0x1] ss:$0 sm:$0xff] }
 0x81d   : > { %v1149_v23 = vpop.f32.mrb[14].mxu1 }
 0x81e   : > { %v2403_v25 = vpop.f32.mrb[15].mxu1  ;;  %v1153_v26 = vadd.f32 %v1152_v21, %v2731_v12  ;;  %v2519_v12 = vld [vmem:[%s3018_s12] sm:$0xff]  }
 0x81f   : > { %2413 = vmatpush3.bf16.msra.mxu1 %v2519_v12 }
 0x820   : > { %v1157_v27 = vsel %vm1156_vm7, %v1153_v26, 0.0  ;;  %2414 = vmatprep.subr.bf16.mxu1 %v2571_v1 }
 0x821   : > { %1158 = vadd.xlane.f32.xlu0 %v1157_v27 }
 0x823   : > { %2415 = vmatpush3.bf16.msra.mxu1 %v2520_v35 }
 0x824   : > { %2416 = vmatprep.subr.bf16.mxu1 %v2571_v1 }
 0x827   : > { %2417 = vmatpush3.bf16.msra.mxu1 %v2521_v46 }
 0x828   : > { %2418 = vmatprep.subr.bf16.mxu1 %v2571_v1 }
 0x82b   : > { %2419 = vmatpush3.bf16.msra.mxu1 %v2522_v47 }
 0x82c   : > { %2438 = vmatprep.subr.bf16.mxu1 %v2571_v1 }
 0x8ae   : > { %v1159_v28 = vpop.xlane.xlu0 %1158 }
 0x8af   : > { %v1161_v29 = vmul.f32 0.03125, %v1159_v28 }
 0x8b1   : > { %v1162_v30 = vsub.f32 %v1153_v26, %v1161_v29 }
 0x8b3   : > { %v1163_v31 = vmul.f32 %v1162_v30, %v1162_v30 }
 0x8b5   : > { %v1164_v32 = vsel %vm1156_vm7, %v1163_v31, 0.0 }
 0x8b6   : > { %1165 = vadd.xlane.f32.xlu1 %v1164_v32 }
 0x943   : > { %v1166_v36 = vpop.xlane.xlu1 %1165 }
 0x944   : > { %v1167_v37 = vmul.f32 0.03125, %v1166_v36 }
 0x946   : > { %v1168_v38 = vadd.f32 1e-05, %v1167_v37 }
 0x948   : > { %2543 = vrsqrt.f32 %v1168_v38 }
 0x952   : > { %v2544_v39 = vpop.eup %2543 }
 0x953   : > { %v1170_v41 = vmul.f32 %v2544_v39, %v1162_v30 }
 0x955   : > { %v1177_v43 = vmul.f32 %v2226_v40, %v1170_v41 }
 0x957   : > { %v1184_v44 = vadd.f32 %v2227_v42, %v1177_v43 }
 0x959   : > { %v1185_v45 = vpack.c.bf16 %v1184_v44, %v1184_v44 }
 0x95b   : > { %2409 = vmatmul.mubr.msk.bf16.vlgmr.msra.gmra.mrb[16].mxu0 %vm773_vm2, %v1185_v45 }
 0x95c   : > { %2428 = vmatprep.mubr.msk.bf16.mxu0 %vm2572_vm0, %v2571_v1  ;;  %2425 = vmatpush3.bf16.msra.mxu0 %v2523_v6 }
 0x95d   : > { %2426 = vmatprep.subr.bf16.mxu0 %v2571_v1 }
 0x960   : > { %2427 = vmatpush3.bf16.msra.mxu0 %v2524_v7 }
 0x961   : > { %2432 = vmatprep.subr.bf16.mxu0 %v2571_v1 }
 0xa2e   : > { %v1246_v49 = vpop.f32.mrb[16].mxu0 }
 0xa2f   : > { %v1247_v50 = vadd.f32 %v2228_v48, %v1246_v49  ;;  %v2410_v51 = vpop.f32.mrb[17].mxu0  ;;  %v2525_v48 = vld [vmem:[%s3012_s6 + $0x10] sm:$0xff]  }
 0xa30   : > { %v1249_v52 = vpop.f32.mrb[18].mxu0 }
 0xa31   : > { %v1252_v53 = vmax.f32 %v1247_v50, 0.0  ;;  %v2411_v54 = vpop.f32.mrb[19].mxu0 }
 0xa33   : > { %v1253_v55 = vpack.c.bf16 %v1252_v53, %v1252_v53 }
 0xa35   : > { %2421 = vmatmul.mubr.msk.bf16.vlgmr.msra.gmra.mrb[16].mxu1 %vm1293_vm8, %v1253_v55 }
 0xa36   : > { %2440 = vmatprep.mubr.msk.bf16.mxu1 %vm2572_vm0, %v2571_v1 }
 0xb08   : > { %v1331_v57 = vpop.f32.mrb[16].mxu1 }
 0xb09   : > { %v1332_v58 = vadd.f32 %v2232_v56, %v1331_v57  ;;  %v2422_v59 = vpop.f32.mrb[17].mxu1 }
 0xb0a   : > { %v1334_v60 = vpop.f32.mrb[18].mxu1 }
 0xb0b   : > { %v2423_v61 = vpop.f32.mrb[19].mxu1  ;;  %v1337_v62 = vadd.f32 %v1332_v58, %v1184_v44 }
 0xb0d   : > { %v1340_v63 = vsel %vm1156_vm7, %v1337_v62, 0.0 }
 0xb0e   : > { %1341 = vadd.xlane.f32.xlu1 %v1340_v63 }
 0xb9b   : > { %v1342_v0 = vpop.xlane.xlu1 %1341 }
 0xb9c   : > { %v1343_v2 = vmul.f32 0.03125, %v1342_v0 }
 0xb9e   : > { %v1344_v3 = vsub.f32 %v1337_v62, %v1343_v2  ;;  %v2526_v2 = vld [vmem:[%s3012_s6 + $0x18] sm:$0xff]  }
 0xba0   : > { %v1345_v4 = vmul.f32 %v1344_v3, %v1344_v3 }
 0xba2   : > { %v1346_v5 = vsel %vm1156_vm7, %v1345_v4, 0.0 }
 0xba3   : > { %1347 = vadd.xlane.f32.xlu1 %v1346_v5 }
 0xc30   : > { %v1348_v8 = vpop.xlane.xlu1 %1347 }
 0xc31   : > { %v1349_v9 = vmul.f32 0.03125, %v1348_v8 }
 0xc33   : > { %v1350_v10 = vadd.f32 1e-05, %v1349_v9 }
 0xc35   : > { %2545 = vrsqrt.f32 %v1350_v10 }
 0xc3f   : > { %v2546_v11 = vpop.eup %2545 }
 0xc40   : > { %v1352_v14 = vmul.f32 %v2546_v11, %v1344_v3 }
 0xc42   : > { %v1359_v16 = vmul.f32 %v2238_v13, %v1352_v14 }
 0xc44   : > { %v2858_v17 = vadd.f32 %v2239_v15, %v1359_v16 }
 0xc46   : > { %v1381_v18 = vpack.c.bf16 %v2858_v17, %v2858_v17 }
 0xc48   : > { %2429 = vmatmul.mubr.msk.bf16.vlgmr.msra.gmra.mrb[20].mxu0 %vm773_vm2, %v1381_v18 }
 0xc49   : > { %2434 = vmatprep.mubr.msk.bf16.mxu0 %vm2572_vm0, %v2571_v1 }
 0xd1b   : > { %v1437_v20 = vpop.f32.mrb[20].mxu0 }
 0xd1c   : > { %v1438_v21 = vadd.f32 %v2250_v19, %v1437_v20  ;;  %v2430_v22 = vpop.f32.mrb[21].mxu0 }
 0xd1d   : > { %v1440_v23 = vpop.f32.mrb[22].mxu0 }
 0xd1e   : > { %v2868_v25 = vpack.c.bf16 %v1438_v21, %v1438_v21  ;;  %v2431_v26 = vpop.f32.mrb[23].mxu0 }
 0xd20   : > { %1445 = vrot.lane.b32.xlu1 %v2868_v25, %s2574_s24  ;;  %s3044_s24 = smov 112  }
 0xd92   : > { %v1446_v27 = vpop.permute.xlu1 %1445 }
 0xd93   : > { %v1451_v28 = vsel %vm698_vm1, %v1446_v27, 0 }
 0xd94   : > { %2433 = vmatpush3.bf16.xpose.msra.mxu0 %v1451_v28 }
 0xd95   : > { %2444 = vmatprep.subr.bf16.mxu0 %v2571_v1 }
 0xd9b   : > { %2435 = vmatmul.mubr.msk.bf16.vlgmr.msra.gmra.mrb[24].mxu0 %vm698_vm1, %v2868_v25 }
 0xd9c   : > { %2446 = vmatprep.mubr.msk.bf16.mxu0 %vm2572_vm0, %v2571_v1  ;;  %2445 = vmatpush3.bf16.msra.mxu0 %v2525_v48  ;;  %v2272_v48 = vld [vmem:[%s3017_s11 + $0x1] ss:$0 sm:$0xff] }
 0xd9d   : > { %2456 = vmatprep.subr.bf16.mxu0 %v2571_v1 }
 0xe6e   : > { %v1487_v29 = vpop.f32.mrb[24].mxu0 }
 0xe6f   : > { %v1493_v30 = vmul.f32 0.25, %v1487_v29  ;;  %v2436_v31 = vpop.f32.mrb[25].mxu0 }
 0xe70   : > { %v1490_v32 = vpop.f32.mrb[26].mxu0 }
 0xe71   : > { %v2437_v33 = vpop.f32.mrb[27].mxu0  ;;  %v1494_v34 = vsel %vm868_vm5, %v1493_v30, -inf }
 0xe72   : > { %1495 = vmax.xlane.f32.xlu0 %v1494_v34  ;;  %v2527_v34 = vld [vmem:[%s3016_s10 + $0x10] sm:$0xff]  }
 0xe88   : > { %1506 = vrot.lane.b32.xlu0 %v2868_v25, %s2573_s1 }
 0xe8c   : > { %1613 = vrot.lane.b32.xlu0 %v2868_v25, %s2576_s25 }
 0xe90   : > { %1611 = vrot.lane.b32.xlu0 %v2868_v25, %s3044_s24 }
 0xeff   : > { %v1496_v12 = vpop.xlane.xlu0 %1495 }
 0xf00   : > { %v1497_v35 = vsub.f32 %v1493_v30, %v1496_v12  ;;  %v2528_v12 = vld [vmem:[%s3016_s10 + $0x18] sm:$0xff]  }
 0xf02   : > { %v1498_v36 = vmul.f32 1.442695, %v1497_v35  ;;  %v2530_v35 = vld [vmem:[%s3018_s12 + $0x28] sm:$0xff]  }
 0xf03   : > { %v1507_v37 = vpop.permute.xlu0 %1506 }
 0xf04   : > { %2547 = vpow2.f32 %v1498_v36  ;;  %v1512_v38 = vand.u32 %v1507_v37, %v2747_v24 }
 0xf06   : > { %2439 = vmatpush3.bf16.msra.mxu1 %v1512_v38 }
 0xf07   : > { %2450 = vmatprep.subr.bf16.mxu1 %v2571_v1  ;;  %v1614_v44 = vpop.permute.xlu0 %1613 }
 0xf08   : > { %v1619_v46 = vsel %vm698_vm1, %v1614_v44, 0 }
 0xf0b   : > { %v1612_v47 = vpop.permute.xlu0 %1611 }
 0xf0e   : > { %v2548_v39 = vpop.eup %2547 }
 0xf0f   : > { %v1500_v40 = vsel %vm868_vm5, %v2548_v39, 0.0 }
 0xf10   : > { %1501 = vadd.xlane.f32.xlu1 %v1500_v40  ;;  %v2265_v40 = vld [vmem:[%s3014_s8 + $0x1] ss:$0 sm:$0xff] }
 0xf9d   : > { %v1502_v41 = vpop.xlane.xlu1 %1501 }
 0xf9e   : > { %2549 = vrcp.f32 %v1502_v41 }
 0xfa8   : > { %v2550_v42 = vpop.eup %2549 }
 0xfa9   : > { %v1504_v43 = vmul.f32 %v2550_v42, %v2548_v39  ;;  %v2266_v42 = vld [vmem:[%s3015_s9 + $0x1] ss:$0 sm:$0xff] }
 0xfab   : > { %v1505_v45 = vpack.c.bf16 %v1504_v43, %v1504_v43 }
 0xfad   : > { %2441 = vmatmul.mubr.msk.bf16.vlgmr.msra.gmra.mrb[20].mxu1 %vm883_vm6, %v1505_v45 }
 0xfae   : > { %2451 = vmatpush3.bf16.xpose.msra.mxu1 %v1619_v46  ;;  %2452 = vmatprep.mubr.msk.bf16.mxu1 %vm2572_vm0, %v2571_v1  ;;  %v2531_v46 = vld [vmem:[%s3018_s12 + $0x30] sm:$0xff]  }
 0xfaf   : > { %2462 = vmatprep.subr.bf16.mxu1 %v2571_v1 }
 0xfb5   : > { %2453 = vmatmul.mubr.msk.bf16.vlgmr.msra.gmra.mrb[24].mxu1 %vm698_vm1, %v1612_v47  ;;  %v2532_v47 = vld [vmem:[%s3018_s12 + $0x38] sm:$0xff]  }
 0xfb6   : > { %2464 = vmatprep.mubr.msk.bf16.mxu1 %vm2572_vm0, %v2571_v1  ;;  %2463 = vmatpush3.bf16.msra.mxu1 %v2526_v2 }
 0xfb7   : > { %2476 = vmatprep.subr.bf16.mxu1 %v2571_v1 }
0x1080   : > { %v1548_v49 = vpop.f32.mrb[20].mxu1 }
0x1081   : > { %v1554_v50 = vpack.c.bf16 %v1548_v49, %v1548_v49  ;;  %v2442_v51 = vpop.f32.mrb[21].mxu1 }
0x1082   : > { %v1551_v52 = vpop.f32.mrb[22].mxu1 }
0x1083   : > { %v2443_v53 = vpop.f32.mrb[23].mxu1  ;;  %2447 = vmatmul.mubr.msk.bf16.vlgmr.msra.gmra.mrb[28].mxu0 %vm698_vm1, %v1554_v50 }
0x1084   : > { %2458 = vmatprep.mubr.msk.bf16.mxu0 %vm2572_vm0, %v2571_v1 }
0x1088   : > { %v1655_v54 = vpop.f32.mrb[24].mxu1 }
0x1089   : > { %v1661_v55 = vmul.f32 0.25, %v1655_v54  ;;  %v2454_v56 = vpop.f32.mrb[25].mxu1 }
0x108a   : > { %v1658_v57 = vpop.f32.mrb[26].mxu1  ;;  %v2285_v56 = vld [vmem:[%s3019_s13 + $0x1] ss:$0 sm:$0xff] }
0x108b   : > { %v2455_v58 = vpop.f32.mrb[27].mxu1  ;;  %v1662_v59 = vsel %vm868_vm5, %v1661_v55, -inf }
0x108c   : > { %1663 = vmax.xlane.f32.xlu0 %v1662_v59 }
0x1119   : > { %v1664_v60 = vpop.xlane.xlu0 %1663 }
0x111a   : > { %v1665_v61 = vsub.f32 %v1661_v55, %v1664_v60 }
0x111c   : > { %v1666_v62 = vmul.f32 1.442695, %v1665_v61 }
0x111e   : > { %2551 = vpow2.f32 %v1666_v62 }
0x1128   : > { %v2552_v63 = vpop.eup %2551 }
0x1129   : > { %v1668_v0 = vsel %vm868_vm5, %v2552_v63, 0.0 }
0x112a   : > { %1669 = vadd.xlane.f32.xlu1 %v1668_v0 }
0x113b   : > { %1674 = vrot.lane.b32.xlu1 %v2868_v25, %s3045_s30  ;;  %s679_s30 = scalar_lea.vmem %s3027_s21, %s2707_s28 }
0x1156   : > { %v1598_v3 = vpop.f32.mrb[28].mxu0 }
0x1157   : > { %v2448_v4 = vpop.f32.mrb[29].mxu0 }
0x1158   : > { %v1601_v5 = vpop.f32.mrb[30].mxu0 }
0x1159   : > { %v2449_v6 = vpop.f32.mrb[31].mxu0 }
0x11b7   : > { %v1670_v7 = vpop.xlane.xlu1 %1669 }
0x11b8   : > { %2553 = vrcp.f32 %v1670_v7 }
0x11bb   : > { %v1675_v8 = vpop.permute.xlu1 %1674 }
0x11bc   : > { %v1680_v9 = vand.u32 %v1675_v8, %v2747_v24  ;;  %v2258_v24 = vld [vmem:[%s3013_s7 + $0x1] ss:$0 sm:$0xff] }
0x11bd   : > { %v1610_v20 = vadd.f32 %v2258_v24, %v1598_v3 }
0x11be   : > { %2457 = vmatpush3.bf16.msra.mxu0 %v1680_v9 }
0x11bf   : > { %2468 = vmatprep.subr.bf16.mxu0 %v2571_v1 }
0x11c2   : > { %v2554_v10 = vpop.eup %2553 }
0x11c3   : > { %v1672_v11 = vmul.f32 %v2554_v10, %v2552_v63  ;;  %v2293_v10 = vld [vmem:[%s3020_s14 + $0x1] ss:$0 sm:$0xff] }
0x11c5   : > { %v1673_v13 = vpack.c.bf16 %v1672_v11, %v1672_v11 }
0x11c7   : > { %2459 = vmatmul.mubr.msk.bf16.vlgmr.msra.gmra.mrb[32].mxu0 %vm883_vm6, %v1673_v13  ;;  %v2294_v13 = vld [vmem:[%s3021_s15 + $0x1] ss:$0 sm:$0xff] }
0x11c8   : > { %2472 = vmatprep.mubr.msk.bf16.mxu0 %vm2572_vm0, %v2571_v1  ;;  %2469 = vmatpush3.bf16.msra.mxu0 %v2527_v34 }
0x11c9   : > { %2470 = vmatprep.subr.bf16.mxu0 %v2571_v1 }
0x11cc   : > { %2471 = vmatpush3.bf16.msra.mxu0 %v2528_v12 }
0x11cd   : > { %2488 = vmatprep.subr.bf16.mxu0 %v2571_v1 }
0x129a   : > { %v1716_v14 = vpop.f32.mrb[32].mxu0 }
0x129b   : > { %v1722_v15 = vpack.c.bf16 %v1716_v14, %v1716_v14  ;;  %v2460_v16 = vpop.f32.mrb[33].mxu0 }
0x129c   : > { %v1719_v18 = vpop.f32.mrb[34].mxu0 }
0x129d   : > { %v2461_v19 = vpop.f32.mrb[35].mxu0  ;;  %2465 = vmatmul.mubr.msk.bf16.vlgmr.msra.gmra.mrb[28].mxu1 %vm698_vm1, %v1722_v15 }
0x129e   : > { %2484 = vmatprep.mubr.msk.bf16.mxu1 %vm2572_vm0, %v2571_v1 }
0x1370   : > { %v1766_v21 = vpop.f32.mrb[28].mxu1 }
0x1371   : > { %v1772_v22 = vadd.f32 %v1766_v21, %v1610_v20  ;;  %v2466_v23 = vpop.f32.mrb[29].mxu1 }
0x1372   : > { %v1769_v25 = vpop.f32.mrb[30].mxu1 }
0x1373   : > { %v2467_v26 = vpop.f32.mrb[31].mxu1  ;;  %v1773_v27 = vadd.f32 %v1772_v22, %v2858_v17  ;;  %v2529_v17 = vld [vmem:[%s3018_s12 + $0x20] sm:$0xff]  }
0x1374   : > { %2477 = vmatpush3.bf16.msra.mxu1 %v2529_v17 }
0x1375   : > { %v1778_v28 = vsel %vm1156_vm7, %v1773_v27, 0.0  ;;  %2478 = vmatprep.subr.bf16.mxu1 %v2571_v1 }
0x1376   : > { %1779 = vadd.xlane.f32.xlu1 %v1778_v28 }
0x1378   : > { %2479 = vmatpush3.bf16.msra.mxu1 %v2530_v35 }
0x1379   : > { %2480 = vmatprep.subr.bf16.mxu1 %v2571_v1 }
0x137c   : > { %2481 = vmatpush3.bf16.msra.mxu1 %v2531_v46 }
0x137d   : > { %2482 = vmatprep.subr.bf16.mxu1 %v2571_v1 }
0x1380   : > { %2483 = vmatpush3.bf16.msra.mxu1 %v2532_v47 }
0x1403   : > { %v1780_v29 = vpop.xlane.xlu1 %1779 }
0x1404   : > { %v1781_v30 = vmul.f32 0.03125, %v1780_v29  ;;  %v2296_v29 = vld [vmem:[%s3023_s17] ss:$0 sm:$0xff] }
0x1406   : > { %v1782_v31 = vsub.f32 %v1773_v27, %v1781_v30  ;;  %v2295_v27 = vld [vmem:[%s3022_s16] ss:$0 sm:$0xff] }
0x1408   : > { %v1783_v32 = vmul.f32 %v1782_v31, %v1782_v31 }
0x140a   : > { %v1784_v33 = vsel %vm1156_vm7, %v1783_v32, 0.0 }
0x140b   : > { %1785 = vadd.xlane.f32.xlu0 %v1784_v33 }
0x1498   : > { %v1786_v36 = vpop.xlane.xlu0 %1785 }
0x1499   : > { %v1787_v37 = vmul.f32 0.03125, %v1786_v36  ;;  %v2533_v36 = vld [vmem:[%s3024_s18] sm:$0xff]  }
0x149b   : > { %v1788_v38 = vadd.f32 1e-05, %v1787_v37  ;;  %v2534_v37 = vld [vmem:[%s3024_s18 + $0x8] sm:$0xff]  }
0x149d   : > { %2555 = vrsqrt.f32 %v1788_v38 }
0x14a7   : > { %v2556_v39 = vpop.eup %2555 }
0x14a8   : > { %v1790_v41 = vmul.f32 %v2556_v39, %v1782_v31 }
0x14aa   : > { %v1797_v43 = vmul.f32 %v2265_v40, %v1790_v41 }
0x14ac   : > { %v1804_v44 = vadd.f32 %v2266_v42, %v1797_v43 }
0x14ae   : > { %v1805_v45 = vpack.c.bf16 %v1804_v44, %v1804_v44 }
0x14b0   : > { %2473 = vmatmul.mubr.msk.bf16.vlgmr.msra.gmra.mrb[36].mxu0 %vm773_vm2, %v1805_v45 }
0x14b1   : > { %2492 = vmatprep.mubr.msk.bf16.mxu0 %vm2572_vm0, %v2571_v1  ;;  %2489 = vmatpush3.bf16.msra.mxu0 %v2533_v36 }
0x14b2   : > { %2490 = vmatprep.subr.bf16.mxu0 %v2571_v1  ;;  %v2297_v1 = vld [vmem:[%s3025_s19] ss:$0 sm:$0xff] }
0x14b5   : > { %2491 = vmatpush3.bf16.msra.mxu0 %v2534_v37 }
0x1583   : > { %v1868_v49 = vpop.f32.mrb[36].mxu0 }
0x1584   : > { %v1869_v50 = vadd.f32 %v2272_v48, %v1868_v49  ;;  %v2474_v51 = vpop.f32.mrb[37].mxu0 }
0x1585   : > { %v1871_v52 = vpop.f32.mrb[38].mxu0 }
0x1586   : > { %v1874_v53 = vmax.f32 %v1869_v50, 0.0  ;;  %v2475_v54 = vpop.f32.mrb[39].mxu0 }
0x1588   : > { %v1875_v55 = vpack.c.bf16 %v1874_v53, %v1874_v53 }
0x158a   : > { %2485 = vmatmul.mubr.msk.bf16.vlgmr.msra.gmra.mrb[32].mxu1 %vm1293_vm8, %v1875_v55 }
0x165d   : > { %v1954_v57 = vpop.f32.mrb[32].mxu1 }
0x165e   : > { %v1955_v58 = vadd.f32 %v2285_v56, %v1954_v57  ;;  %v2486_v59 = vpop.f32.mrb[33].mxu1 }
0x165f   : > { %v1957_v60 = vpop.f32.mrb[34].mxu1 }
0x1660   : > { %v2487_v61 = vpop.f32.mrb[35].mxu1  ;;  %v1960_v62 = vadd.f32 %v1955_v58, %v1804_v44 }
0x1662   : > { %v1965_v63 = vsel %vm1156_vm7, %v1960_v62, 0.0 }
0x1663   : > { %1966 = vadd.xlane.f32.xlu0 %v1965_v63 }
0x16f0   : > { %v1967_v0 = vpop.xlane.xlu0 %1966 }
0x16f1   : > { %v1968_v2 = vmul.f32 0.03125, %v1967_v0 }
0x16f3   : > { %v1969_v3 = vsub.f32 %v1960_v62, %v1968_v2 }
0x16f5   : > { %v1970_v4 = vmul.f32 %v1969_v3, %v1969_v3 }
0x16f7   : > { %v1971_v5 = vsel %vm1156_vm7, %v1970_v4, 0.0 }
0x16f8   : > { %1972 = vadd.xlane.f32.xlu0 %v1971_v5 }
0x1785   : > { %v1973_v6 = vpop.xlane.xlu0 %1972 }
0x1786   : > { %v1974_v7 = vmul.f32 0.03125, %v1973_v6 }
0x1788   : > { %v1975_v8 = vadd.f32 1e-05, %v1974_v7 }
0x178a   : > { %2557 = vrsqrt.f32 %v1975_v8 }
0x1794   : > { %v2558_v9 = vpop.eup %2557 }
0x1795   : > { %v1977_v11 = vmul.f32 %v2558_v9, %v1969_v3 }
0x1797   : > { %v1984_v14 = vmul.f32 %v2293_v10, %v1977_v11 }
0x1799   : > { %v1991_v15 = vadd.f32 %v2294_v13, %v1984_v14 }
0x179b   : > { %v1994_v16 = vsel %vm1156_vm7, %v1991_v15, 0.0 }
0x179c   : > { %1995 = vadd.xlane.f32.xlu0 %v1994_v16 }
0x1829   : > { %v1996_v18 = vpop.xlane.xlu0 %1995 }
0x182a   : > { %v1997_v19 = vmul.f32 0.03125, %v1996_v18 }
0x182c   : > { %v1998_v24 = vsub.f32 %v1991_v15, %v1997_v19 }
0x182e   : > { %v1999_v20 = vmul.f32 %v1998_v24, %v1998_v24 }
0x1830   : > { %v2000_v21 = vsel %vm1156_vm7, %v1999_v20, 0.0 }
0x1831   : > { %2001 = vadd.xlane.f32.xlu0 %v2000_v21 }
0x18be   : > { %v2002_v22 = vpop.xlane.xlu0 %2001 }
0x18bf   : > { %v2003_v23 = vmul.f32 0.03125, %v2002_v22 }
0x18c1   : > { %v2004_v25 = vadd.f32 1e-05, %v2003_v23 }
0x18c3   : > { %2559 = vrsqrt.f32 %v2004_v25 }
0x18cd   : > { %v2560_v26 = vpop.eup %2559 }
0x18ce   : > { %v2006_v28 = vmul.f32 %v2560_v26, %v1998_v24 }
0x18d0   : > { %v2013_v30 = vmul.f32 %v2295_v27, %v2006_v28 }
0x18d2   : > { %v2020_v31 = vadd.f32 %v2296_v29, %v2013_v30 }
0x18d4   : > { %v2021_v32 = vsel %vm1156_vm7, %v2020_v31, 0.0 }
0x18d5   : > { %2022 = vadd.xlane.f32.xlu0 %v2021_v32 }
0x1962   : > { %v2023_v33 = vpop.xlane.xlu0 %2022 }
0x1963   : > { %v2024_v34 = vmul.f32 0.03125, %v2023_v33 }
0x1965   : > { %v2025_v12 = vsub.f32 %v2020_v31, %v2024_v34 }
0x1967   : > { %v2026_v17 = vmul.f32 %v2025_v12, %v2025_v12 }
0x1969   : > { %v2027_v35 = vsel %vm1156_vm7, %v2026_v17, 0.0 }
0x196a   : > { %2028 = vadd.xlane.f32.xlu0 %v2027_v35 }
0x19f7   : > { %v2029_v38 = vpop.xlane.xlu0 %2028 }
0x19f8   : > { %v2030_v39 = vmul.f32 0.03125, %v2029_v38 }
0x19fa   : > { %v2031_v40 = vadd.f32 1e-05, %v2030_v39 }
0x19fc   : > { %2561 = vrsqrt.f32 %v2031_v40 }
0x1a06   : > { %v2562_v41 = vpop.eup %2561 }
0x1a07   : > { %v2033_v42 = vmul.f32 %v2562_v41, %v2025_v12 }
0x1a09   : > { %v2034_v43 = vmul.f32 %v2295_v27, %v2033_v42 }
0x1a0b   : > { %v2035_v44 = vadd.f32 %v2296_v29, %v2034_v43 }
0x1a0d   : > { %2036 = vst.msk [vmem:[%s675_s26] sm:$0x1f] %vm1156_vm7, %v2035_v44  ;;  %v2037_v45 = vpack.c.bf16 %v2035_v44, %v2035_v44 }
0x1a0f   : > { %2493 = vmatmul.mubr.msk.bf16.vlgmr.msra.gmra.mrb[40].mxu0 %vm773_vm2, %v2037_v45 }
0x1ae2   : > { %v2098_v46 = vpop.f32.mrb[40].mxu0 }
0x1ae3   : > { %v2099_v47 = vadd.f32 %v2297_v1, %v2098_v46  ;;  %v2494_v48 = vpop.f32.mrb[41].mxu0 }
0x1ae4   : > { %v2101_v49 = vpop.f32.mrb[42].mxu0 }
0x1ae5   : > { %2104 = vst.msk [vmem:[%s679_s30] sm:$0x1f] %vm1156_vm7, %v2099_v47  ;;  %v2495_v50 = vpop.f32.mrb[43].mxu0 }
0x1ae6 PF: > { %s32_s2 = sadd.s32 1, %s2569_s2  }
0x1ae7   : > { %p29_p4 = scmp.ge.s32.totalorder %s32_s2, 4  }
0x1ae9   :  { %31 = sbr.rel (!%p29_p4) target bundleno = 7 (0x7), region = 157 }

// kernel: forward.5
= control target key start
LH: loop header
LB: loop body
LE: loop exit
PB: predicated region body
PF: predicated region fallthrough
CT: control target
= control target key end

     0   :  { %s3211_s0 = inlined_call_operand.vmem [shape: f32[2,10,32], index: 0, kind: input, shape index: {}]   ;;  %s3212_s1 = inlined_call_operand.vmem [shape: f32[1,10,32], index: 1, kind: input, shape index: {}]   ;;  %s3213_s2 = inlined_call_operand.vmem [shape: f32[10,10], index: 2, kind: input, shape index: {}]   ;;  %s3214_s3 = inlined_call_operand.vmem [shape: f32[2,1,32], index: 3, kind: input, shape index: {}]   ;;  %s3215_s4 = inlined_call_operand.vmem [shape: f32[2,1,32], index: 4, kind: input, shape index: {}]   ;;  %s3216_s5 = inlined_call_operand.vmem [shape: bf16[2,32,96], index: 5, kind: input, shape index: {}]   ;;  %s3217_s6 = inlined_call_operand.vmem [shape: f32[2,1,96], index: 6, kind: input, shape index: {}]   ;;  %s3218_s7 = inlined_call_operand.vmem [shape: bf16[2,32,32], index: 7, kind: input, shape index: {}]   ;;  %s3219_s8 = inlined_call_operand.vmem [shape: f32[2,1,32], index: 8, kind: input, shape index: {}]   ;;  %s3220_s9 = inlined_call_operand.vmem [shape: f32[2,1,32], index: 9, kind: input, shape index: {}]   ;;  %s3221_s10 = inlined_call_operand.vmem [shape: f32[2,1,32], index: 10, kind: input, shape index: {}]   ;;  %s3222_s11 = inlined_call_operand.vmem [shape: bf16[2,32,128], index: 11, kind: input, shape index: {}]   ;;  %s3223_s12 = inlined_call_operand.vmem [shape: f32[2,1,128], index: 12, kind: input, shape index: {}]   ;;  %s3224_s13 = inlined_call_operand.vmem [shape: bf16[2,128,32], index: 13, kind: input, shape index: {}]   ;;  %s3225_s14 = inlined_call_operand.vmem [shape: f32[2,1,32], index: 14, kind: input, shape index: {}]   ;;  %s3226_s15 = inlined_call_operand.vmem [shape: f32[1,32], index: 15, kind: input, shape index: {}]   ;;  %s3227_s16 = inlined_call_operand.vmem [shape: f32[1,32], index: 16, kind: input, shape index: {}]   ;;  %s3228_s17 = inlined_call_operand.vmem [shape: bf16[32,16], index: 17, kind: input, shape index: {}]   ;;  %s3229_s18 = inlined_call_operand.vmem [shape: f32[1,16], index: 18, kind: input, shape index: {}]   ;;  %s3230_s19 = inlined_call_operand.vmem [shape: f32[2,9,16], index: 19, kind: output, shape index: {}]  }
   0x1   :  { %3237 = sst [smem:[#allocation2_spill]] %s3211_s0  ;;  %s2812_s0 = smov 0  }
   0x2   :  { %3238 = sst [smem:[#allocation3_spill]] %s3212_s1 }
   0x3   :  { %3239 = sst [smem:[#allocation4_spill]] %s3213_s2 }
   0x4   :  { %3240 = sst [smem:[#allocation5_spill]] %s3214_s3 }
   0x5 LB: > { %s2268_s30 = sadd.s32 4294967295, %s2703_s0   ;;  %p2272_p0 = scmp.ge.s32.totalorder %s2703_s0, 1  ;;  %s2703_s0 = sphi %s2812_s0, %s29_s0  }
   0x6   : > { %p537_p1 = scmp.lt.s32.totalorder %s2703_s0, 3 }
   0x8   : > { %p538_p2 = pnand %p2272_p0, %p537_p1 }
   0x9   : > { %p593_p3 = scmp.lt.s32.totalorder (!%p538_p2), %s2268_s30, 1  ;;  %s3241_s1 = sld [smem:[#allocation3_spill]] (!%p538_p2)  ;;  %vm614_vm0 = vcmask (!%p538_p2), 261120   ;;  %vm618_vm1 = vcmask (!%p538_p2), 254976   ;;  %v2607_v18 = vld [vmem:[%s3216_s5] sm:$0xff] (!%p538_p2)   ;;  %v2705_v19 = vmov (!%p538_p2), 0.0  }
   0xa   : > { %541 = sbr.rel (%p538_p2) target bundleno = 6149 (0x1805), region = 96  ;;  %s3242_s3 = sld [smem:[#allocation2_spill]] (!%p538_p2)  ;;  %2440 = vmatprep.subr.bf16.mxu1 (!%p538_p2), %v2705_v19  ;;  %2454 = vmatprep.subr.bf16.mxu0 (!%p538_p2), %v2705_v19  ;;  %v2608_v20 = vld [vmem:[%s3216_s5 + $0x8] sm:$0xff] (!%p538_p2)   ;;  %vm2706_vm2 = vmmov (!%p538_p2), 0   ;;  %v2278_v33 = vld [vmem:[%s3215_s4] ss:$0 sm:$0xff] (!%p538_p2) }
   0xb   : > { %2441 = vmatpush3.bf16.msra.mxu1 (!%p538_p2), %v2607_v18  ;;  %2444 = vmatprep.mubr.msk.bf16.mxu1 (!%p538_p2), %vm2706_vm2, %v2705_v19  ;;  %s3243_s2 = sld [smem:[#allocation5_spill]] (!%p538_p2)  ;;  %v2279_v38 = vld [vmem:[%s3217_s6] ss:$0 sm:$0xff] (!%p538_p2)  ;;  %s2707_s27 = smov (!%p538_p2), 96   ;;  %vm736_vm3 = vcmask (!%p538_p2), 130048   ;;  %vm788_vm4 = vcmask (!%p538_p2), 80896  }
   0xc   : > { %2442 = vmatprep.subr.bf16.mxu1 (!%p538_p2), %v2705_v19  ;;  %2456 = vmatprep.mubr.msk.bf16.mxu0 (!%p538_p2), %vm2706_vm2, %v2705_v19  ;;  %s2708_s28 = smov (!%p538_p2), 80   ;;  %s2709_s29 = smov (!%p538_p2), 112   ;;  %vm792_vm5 = vcmask (!%p538_p2), 74752   ;;  %vm818_vm6 = vcmask (!%p538_p2), 1044480   ;;  %vm2211_vm7 = vcmask (!%p538_p2), 122880  }
   0xd   : > { %s3244_s22 = sld [smem:[#allocation4_spill]] (!%p538_p2)  ;;  %s3235_s21 = smov (!%p538_p2), 48  }
   0xf   : > { %v606_v0 = vld [vmem:[%s3241_s1] sm:$0xff] (!%p538_p2)  ;;  %v607_v1 = vld [vmem:[%s3241_s1 + $0x8] sm:$0x3] (!%p538_p2)  ;;  %2443 = vmatpush3.bf16.msra.mxu1 (!%p538_p2), %v2608_v20 }
  0x10   : > { %2448 = vmatprep.subr.bf16.mxu1 (!%p538_p2), %v2705_v19 }
  0x11   : > { %s3249_s30 = smov (!%p593_p3, %s2268_s30), 1  ;;  %v2277_v29 = vld [vmem:[%s3243_s2] ss:$0 sm:$0xff] }
  0x12   : > { %s3234_s23 = sshll.u32 %s3249_s30, 4  ;;  %s3247_s20 = sshll.u32 %s3249_s30, 4 }
  0x13   : > { %s597_s26 = scalar_lea.vmem %s3242_s3, %s3234_s23  ;;  %v2889_v49 = vld [vmem:[%s3244_s22] sm:$0xff]  ;;  %v2894_v53 = vld [vmem:[%s3244_s22 + $0x8] sm:$0x3]  ;;  %s3236_s3 = smov 64  }
  0x14   : > { %v604_v2 = vld [vmem:[%s597_s26] sm:$0xff]  ;;  %v605_v3 = vld [vmem:[%s597_s26 + $0x8] sm:$0x3] }
  0x15   : > { %v2834_v4 = vadd.f32 %v606_v0, %v604_v2  ;;  %v2836_v5 = vadd.f32 %v607_v1, %v605_v3 }
  0x17   : > { %v615_v6 = vsel %vm614_vm0, %v2834_v4, 0.0  ;;  %v619_v7 = vsel %vm618_vm1, %v2836_v5, 0.0 }
  0x18   : > { %616 = vadd.xlane.f32.xlu0 %v615_v6 }
  0x1c   : > { %620 = vadd.xlane.f32.xlu0 %v619_v7 }
  0xa5   : > { %v617_v8 = vpop.xlane.xlu0 %616 }
  0xa6   : > { %v623_v9 = vmul.f32 0.03125, %v617_v8 }
  0xa8   : > { %v625_v10 = vsub.f32 %v2834_v4, %v623_v9 }
  0xa9   : > { %v621_v11 = vpop.xlane.xlu0 %620 }
  0xaa   : > { %v624_v12 = vmul.f32 0.03125, %v621_v11  ;;  %v627_v13 = vmul.f32 %v625_v10, %v625_v10 }
  0xac   : > { %v626_v14 = vsub.f32 %v2836_v5, %v624_v12  ;;  %v629_v15 = vsel %vm614_vm0, %v627_v13, 0.0 }
  0xad   : > { %630 = vadd.xlane.f32.xlu1 %v629_v15 }
  0xae   : > { %v628_v16 = vmul.f32 %v626_v14, %v626_v14 }
  0xb0   : > { %v632_v17 = vsel %vm618_vm1, %v628_v16, 0.0 }
  0xb1   : > { %633 = vadd.xlane.f32.xlu1 %v632_v17 }
 0x13a   : > { %v631_v21 = vpop.xlane.xlu1 %630 }
 0x13b   : > { %v635_v22 = vmul.f32 0.03125, %v631_v21  ;;  %v2609_v21 = vld [vmem:[%s3218_s7] sm:$0xff]  }
 0x13d   : > { %v637_v23 = vadd.f32 1e-05, %v635_v22 }
 0x13e   : > { %v634_v24 = vpop.xlane.xlu1 %633 }
 0x13f   : > { %2637 = vrsqrt.f32 %v637_v23  ;;  %v636_v25 = vmul.f32 0.03125, %v634_v24 }
 0x141   : > { %v638_v26 = vadd.f32 1e-05, %v636_v25 }
 0x143   : > { %2639 = vrsqrt.f32 %v638_v26 }
 0x149   : > { %v2638_v27 = vpop.eup %2637 }
 0x14a   : > { %v641_v28 = vmul.f32 %v2638_v27, %v625_v10 }
 0x14c   : > { %v649_v32 = vmul.f32 %v2277_v29, %v641_v28 }
 0x14d   : > { %v2640_v30 = vpop.eup %2639 }
 0x14e   : > { %v642_v31 = vmul.f32 %v2640_v30, %v626_v14  ;;  %v657_v35 = vadd.f32 %v2278_v33, %v649_v32 }
 0x150   : > { %v650_v34 = vmul.f32 %v2277_v29, %v642_v31 }
 0x152   : > { %v658_v36 = vadd.f32 %v2278_v33, %v650_v34 }
 0x154   : > { %v669_v37 = vpack.c.bf16 %v658_v36, %v657_v35 }
 0x156   : > { %2445 = vmatmul.mubr.msk.bf16.vlgmr.msra.gmra.mrb[0].mxu1 %vm614_vm0, %v669_v37 }
 0x157   : > { %2450 = vmatprep.mubr.msk.bf16.mxu1 %vm2706_vm2, %v2705_v19 }
 0x229   : > { %v725_v39 = vpop.f32.mrb[0].mxu1 }
 0x22a   : > { %v2446_v40 = vpop.f32.mrb[1].mxu1  ;;  %v726_v42 = vadd.f32 %v2279_v38, %v725_v39 }
 0x22b   : > { %v728_v41 = vpop.f32.mrb[2].mxu1 }
 0x22c   : > { %v729_v43 = vadd.f32 %v2279_v38, %v728_v41  ;;  %v2447_v44 = vpop.f32.mrb[3].mxu1 }
 0x22e   : > { %v2872_v45 = vpack.c.bf16 %v729_v43, %v726_v42 }
 0x230   : > { %734 = vrot.lane.b32.xlu0 %v2872_v45, %s2707_s27 }
 0x234   : > { %924 = vrot.lane.b32.xlu0 %v2872_v45, %s2708_s28 }
 0x238   : > { %922 = vrot.lane.b32.xlu0 %v2872_v45, %s2709_s29 }
 0x2a2   : > { %v735_v46 = vpop.permute.xlu0 %734 }
 0x2a3   : > { %v741_v47 = vsel %vm736_vm3, %v735_v46, 0 }
 0x2a4   : > { %2449 = vmatpush3.bf16.xpose.msra.mxu1 %v741_v47 }
 0x2a5   : > { %2460 = vmatprep.subr.bf16.mxu1 %v2705_v19 }
 0x2a6   : > { %v925_v16 = vpop.permute.xlu0 %924 }
 0x2a7   : > { %v930_v18 = vsel %vm736_vm3, %v925_v16, 0 }
 0x2aa   : > { %v923_v20 = vpop.permute.xlu0 %922 }
 0x2ab   : > { %2451 = vmatmul.mubr.msk.bf16.vlgmr.msra.gmra.mrb[4].mxu1 %vm736_vm3, %v2872_v45 }
 0x2ac   : > { %2462 = vmatprep.mubr.msk.bf16.mxu1 %vm2706_vm2, %v2705_v19  ;;  %2461 = vmatpush3.bf16.msra.mxu1 %v2609_v21 }
 0x2ad   : > { %2472 = vmatprep.subr.bf16.mxu1 %v2705_v19 }
 0x37e   : > { %v777_v48 = vpop.f32.mrb[4].mxu1 }
 0x37f   : > { %v784_v50 = vmul.f32 0.25, %v777_v48  ;;  %v2452_v51 = vpop.f32.mrb[5].mxu1  ;;  %v2610_v48 = vld [vmem:[%s3218_s7 + $0x8] sm:$0xff]  }
 0x380   : > { %v780_v52 = vpop.f32.mrb[6].mxu1 }
 0x381   : > { %v785_v54 = vmul.f32 0.25, %v780_v52  ;;  %v2453_v55 = vpop.f32.mrb[7].mxu1  ;;  %v786_v56 = vadd.f32 %v784_v50, %v2889_v49 }
 0x383   : > { %v789_v57 = vsel %vm788_vm4, %v786_v56, -inf  ;;  %v787_v58 = vadd.f32 %v785_v54, %v2894_v53 }
 0x384   : > { %790 = vmax.xlane.f32.xlu1 %v789_v57 }
 0x385   : > { %v793_v59 = vsel %vm792_vm5, %v787_v58, -inf }
 0x388   : > { %794 = vmax.xlane.f32.xlu1 %v793_v59 }
 0x411   : > { %v791_v60 = vpop.xlane.xlu1 %790 }
 0x412   : > { %v796_v61 = vsub.f32 %v786_v56, %v791_v60 }
 0x414   : > { %v798_v62 = vmul.f32 1.442695, %v796_v61 }
 0x415   : > { %v795_v63 = vpop.xlane.xlu1 %794 }
 0x416   : > { %2641 = vpow2.f32 %v798_v62  ;;  %v797_v0 = vsub.f32 %v787_v58, %v795_v63 }
 0x418   : > { %v800_v1 = vmul.f32 1.442695, %v797_v0 }
 0x41a   : > { %2643 = vpow2.f32 %v800_v1 }
 0x420   : > { %v2642_v2 = vpop.eup %2641 }
 0x421   : > { %v802_v3 = vsel %vm788_vm4, %v2642_v2, 0.0 }
 0x422   : > { %803 = vadd.xlane.f32.xlu1 %v802_v3 }
 0x424   : > { %v2644_v6 = vpop.eup %2643 }
 0x425   : > { %v805_v7 = vsel %vm792_vm5, %v2644_v6, 0.0 }
 0x426   : > { %806 = vadd.xlane.f32.xlu1 %v805_v7 }
 0x437   : > { %813 = vrot.lane.b32.xlu1 %v2872_v45, %s3236_s3 }
 0x4af   : > { %v804_v8 = vpop.xlane.xlu1 %803 }
 0x4b0   : > { %2645 = vrcp.f32 %v804_v8 }
 0x4b3   : > { %v807_v9 = vpop.xlane.xlu1 %806 }
 0x4b4   : > { %2647 = vrcp.f32 %v807_v9 }
 0x4b7   : > { %v814_v10 = vpop.permute.xlu1 %813 }
 0x4b8   : > { %v820_v11 = vsel %vm818_vm6, %v814_v10, 0 }
 0x4b9   : > { %2455 = vmatpush3.bf16.msra.mxu0 %v820_v11 }
 0x4ba   : > { %2466 = vmatprep.subr.bf16.mxu0 %v2705_v19  ;;  %v2646_v12 = vpop.eup %2645 }
 0x4bb   : > { %v810_v14 = vmul.f32 %v2646_v12, %v2642_v2 }
 0x4be   : > { %v2648_v13 = vpop.eup %2647 }
 0x4bf   : > { %v811_v15 = vmul.f32 %v2648_v13, %v2644_v6  ;;  %v2287_v6 = vld [vmem:[%s3219_s8] ss:$0 sm:$0xff] }
 0x4c1   : > { %v812_v17 = vpack.c.bf16 %v811_v15, %v810_v14 }
 0x4c3   : > { %2457 = vmatmul.mubr.msk.bf16.vlgmr.msra.gmra.mrb[0].mxu0 %vm788_vm4, %v812_v17 }
 0x4c4   : > { %2467 = vmatpush3.bf16.xpose.msra.mxu0 %v930_v18  ;;  %2468 = vmatprep.mubr.msk.bf16.mxu0 %vm2706_vm2, %v2705_v19 }
 0x4c5   : > { %2478 = vmatprep.subr.bf16.mxu0 %v2705_v19 }
 0x4cb   : > { %2469 = vmatmul.mubr.msk.bf16.vlgmr.msra.gmra.mrb[4].mxu0 %vm736_vm3, %v923_v20 }
 0x4cc   : > { %2480 = vmatprep.mubr.msk.bf16.mxu0 %vm2706_vm2, %v2705_v19  ;;  %2479 = vmatpush3.bf16.msra.mxu0 %v2610_v48  ;;  %v2613_v48 = vld [vmem:[%s3224_s13] sm:$0xff]  }
 0x4cd   : > { %2492 = vmatprep.subr.bf16.mxu0 %v2705_v19 }
 0x596   : > { %v856_v22 = vpop.f32.mrb[0].mxu0 }
 0x597   : > { %v2458_v23 = vpop.f32.mrb[1].mxu0 }
 0x598   : > { %v859_v24 = vpop.f32.mrb[2].mxu0 }
 0x599   : > { %v863_v25 = vpack.c.bf16 %v859_v24, %v856_v22  ;;  %v2459_v26 = vpop.f32.mrb[3].mxu0 }
 0x59b   : > { %2463 = vmatmul.mubr.msk.bf16.vlgmr.msra.gmra.mrb[8].mxu1 %vm736_vm3, %v863_v25 }
 0x59c   : > { %2474 = vmatprep.mubr.msk.bf16.mxu1 %vm2706_vm2, %v2705_v19 }
 0x59e   : > { %v966_v27 = vpop.f32.mrb[4].mxu0 }
 0x59f   : > { %v973_v28 = vmul.f32 0.25, %v966_v27  ;;  %v2470_v29 = vpop.f32.mrb[5].mxu0 }
 0x5a0   : > { %v969_v30 = vpop.f32.mrb[6].mxu0  ;;  %v2612_v29 = vld [vmem:[%s3222_s11 + $0x8] sm:$0xff]  }
 0x5a1   : > { %v974_v31 = vmul.f32 0.25, %v969_v30  ;;  %v2471_v32 = vpop.f32.mrb[7].mxu0  ;;  %v975_v33 = vadd.f32 %v973_v28, %v2889_v49  ;;  %v2611_v28 = vld [vmem:[%s3222_s11] sm:$0xff]  }
 0x5a3   : > { %v977_v34 = vsel %vm788_vm4, %v975_v33, -inf  ;;  %v976_v35 = vadd.f32 %v974_v31, %v2894_v53 }
 0x5a4   : > { %978 = vmax.xlane.f32.xlu0 %v977_v34 }
 0x5a5   : > { %v980_v36 = vsel %vm792_vm5, %v976_v35, -inf }
 0x5a6   : > { %981 = vmax.xlane.f32.xlu1 %v980_v36 }
 0x631   : > { %v979_v37 = vpop.xlane.xlu0 %978 }
 0x632   : > { %v983_v38 = vsub.f32 %v975_v33, %v979_v37 }
 0x633   : > { %v982_v39 = vpop.xlane.xlu1 %981 }
 0x634   : > { %v985_v40 = vmul.f32 1.442695, %v983_v38  ;;  %v984_v41 = vsub.f32 %v976_v35, %v982_v39  ;;  %v2292_v38 = vld [vmem:[%s3220_s9] ss:$0 sm:$0xff] }
 0x636   : > { %2649 = vpow2.f32 %v985_v40  ;;  %v987_v42 = vmul.f32 1.442695, %v984_v41 }
 0x638   : > { %2651 = vpow2.f32 %v987_v42  ;;  %v2293_v42 = vld [vmem:[%s3221_s10] ss:$0 sm:$0xff] }
 0x640   : > { %v2650_v43 = vpop.eup %2649 }
 0x641   : > { %v989_v44 = vsel %vm788_vm4, %v2650_v43, 0.0 }
 0x642   : > { %v2652_v46 = vpop.eup %2651  ;;  %990 = vadd.xlane.f32.xlu0 %v989_v44 }
 0x643   : > { %v992_v47 = vsel %vm792_vm5, %v2652_v46, 0.0 }
 0x646   : > { %993 = vadd.xlane.f32.xlu0 %v992_v47 }
 0x65c   : > { %1000 = vrot.lane.b32.xlu0 %v2872_v45, %s3235_s21  ;;  %s602_s21 = scalar_lea.vmem %s3230_s19, %s3247_s20 }
 0x66e   : > { %v907_v50 = vpop.f32.mrb[8].mxu1 }
 0x66f   : > { %v2464_v51 = vpop.f32.mrb[9].mxu1  ;;  %v920_v7 = vadd.f32 %v2287_v6, %v907_v50  ;;  %v2614_v50 = vld [vmem:[%s3224_s13 + $0x8] sm:$0xff]  }
 0x670   : > { %v910_v52 = vpop.f32.mrb[10].mxu1  ;;  %v2615_v51 = vld [vmem:[%s3224_s13 + $0x10] sm:$0xff]  }
 0x671   : > { %v2465_v54 = vpop.f32.mrb[11].mxu1  ;;  %v921_v9 = vadd.f32 %v2287_v6, %v910_v52  ;;  %v2616_v52 = vld [vmem:[%s3224_s13 + $0x18] sm:$0xff]  }
 0x672   : > { %v2617_v54 = vld [vmem:[%s3224_s13 + $0x20] sm:$0xff]  }
 0x6cf   : > { %v991_v55 = vpop.xlane.xlu0 %990 }
 0x6d0   : > { %2653 = vrcp.f32 %v991_v55  ;;  %v2618_v55 = vld [vmem:[%s3224_s13 + $0x28] sm:$0xff]  }
 0x6d3   : > { %v994_v56 = vpop.xlane.xlu0 %993 }
 0x6d4   : > { %2655 = vrcp.f32 %v994_v56  ;;  %v2619_v56 = vld [vmem:[%s3224_s13 + $0x30] sm:$0xff]  }
 0x6d7   : > { %v1001_v57 = vpop.permute.xlu0 %1000 }
 0x6d8   : > { %v1006_v58 = vsel %vm818_vm6, %v1001_v57, 0  ;;  %v2620_v57 = vld [vmem:[%s3224_s13 + $0x38] sm:$0xff]  }
 0x6d9   : > { %2473 = vmatpush3.bf16.msra.mxu1 %v1006_v58  ;;  %v2294_v58 = vld [vmem:[%s3223_s12] ss:$0 sm:$0xff] }
 0x6da   : > { %2484 = vmatprep.subr.bf16.mxu1 %v2705_v19  ;;  %v2654_v45 = vpop.eup %2653 }
 0x6db   : > { %v997_v60 = vmul.f32 %v2654_v45, %v2650_v43 }
 0x6de   : > { %v2656_v59 = vpop.eup %2655 }
 0x6df   : > { %v998_v61 = vmul.f32 %v2656_v59, %v2652_v46 }
 0x6e1   : > { %v999_v62 = vpack.c.bf16 %v998_v61, %v997_v60 }
 0x6e3   : > { %2475 = vmatmul.mubr.msk.bf16.vlgmr.msra.gmra.mrb[12].mxu1 %vm788_vm4, %v999_v62 }
 0x6e4   : > { %2488 = vmatprep.mubr.msk.bf16.mxu1 %vm2706_vm2, %v2705_v19  ;;  %2485 = vmatpush3.bf16.msra.mxu1 %v2611_v28 }
 0x6e5   : > { %2486 = vmatprep.subr.bf16.mxu1 %v2705_v19 }
 0x6e8   : > { %2487 = vmatpush3.bf16.msra.mxu1 %v2612_v29 }
 0x6e9   : > { %2512 = vmatprep.subr.bf16.mxu1 %v2705_v19 }
 0x7b6   : > { %v1042_v63 = vpop.f32.mrb[12].mxu1 }
 0x7b7   : > { %v2476_v0 = vpop.f32.mrb[13].mxu1 }
 0x7b8   : > { %v1045_v1 = vpop.f32.mrb[14].mxu1 }
 0x7b9   : > { %v1049_v2 = vpack.c.bf16 %v1045_v1, %v1042_v63  ;;  %v2477_v3 = vpop.f32.mrb[15].mxu1 }
 0x7bb   : > { %2481 = vmatmul.mubr.msk.bf16.vlgmr.msra.gmra.mrb[8].mxu0 %vm736_vm3, %v1049_v2 }
 0x7bc   : > { %2508 = vmatprep.mubr.msk.bf16.mxu0 %vm2706_vm2, %v2705_v19  ;;  %2493 = vmatpush3.bf16.msra.mxu0 %v2613_v48 }
 0x7bd   : > { %2494 = vmatprep.subr.bf16.mxu0 %v2705_v19 }
 0x7c0   : > { %2495 = vmatpush3.bf16.msra.mxu0 %v2614_v50 }
 0x7c1   : > { %2496 = vmatprep.subr.bf16.mxu0 %v2705_v19 }
 0x7c4   : > { %2497 = vmatpush3.bf16.msra.mxu0 %v2615_v51 }
 0x7c5   : > { %2498 = vmatprep.subr.bf16.mxu0 %v2705_v19 }
 0x7c8   : > { %2499 = vmatpush3.bf16.msra.mxu0 %v2616_v52 }
 0x7c9   : > { %2500 = vmatprep.subr.bf16.mxu0 %v2705_v19 }
 0x7cc   : > { %2501 = vmatpush3.bf16.msra.mxu0 %v2617_v54  ;;  %v2309_v54 = vld [vmem:[%s3243_s2 + $0x1] ss:$0 sm:$0xff] }
 0x7cd   : > { %2502 = vmatprep.subr.bf16.mxu0 %v2705_v19 }
 0x7d0   : > { %2503 = vmatpush3.bf16.msra.mxu0 %v2618_v55 }
 0x7d1   : > { %2504 = vmatprep.subr.bf16.mxu0 %v2705_v19 }
 0x7d4   : > { %2505 = vmatpush3.bf16.msra.mxu0 %v2619_v56 }
 0x7d5   : > { %2506 = vmatprep.subr.bf16.mxu0 %v2705_v19 }
 0x7d8   : > { %2507 = vmatpush3.bf16.msra.mxu0 %v2620_v57 }
 0x7d9   : > { %2538 = vmatprep.subr.bf16.mxu0 %v2705_v19 }
 0x88e   : > { %v1093_v8 = vpop.f32.mrb[8].mxu0 }
 0x88f   : > { %v1100_v10 = vadd.f32 %v1093_v8, %v920_v7  ;;  %v2482_v11 = vpop.f32.mrb[9].mxu0 }
 0x890   : > { %v1096_v12 = vpop.f32.mrb[10].mxu0 }
 0x891   : > { %v2945_v13 = vadd.f32 %v1100_v10, %v2834_v4  ;;  %v1101_v14 = vadd.f32 %v1096_v12, %v921_v9  ;;  %v2483_v15 = vpop.f32.mrb[11].mxu0 }
 0x893   : > { %v2948_v16 = vadd.f32 %v1101_v14, %v2836_v5  ;;  %v1106_v17 = vsel %vm614_vm0, %v2945_v13, 0.0 }
 0x894   : > { %1107 = vadd.xlane.f32.xlu1 %v1106_v17 }
 0x895   : > { %v1109_v18 = vsel %vm618_vm1, %v2948_v16, 0.0 }
 0x898   : > { %1110 = vadd.xlane.f32.xlu1 %v1109_v18 }
 0x921   : > { %v1108_v20 = vpop.xlane.xlu1 %1107 }
 0x922   : > { %v1112_v21 = vmul.f32 0.03125, %v1108_v20 }
 0x924   : > { %v1114_v22 = vsub.f32 %v2945_v13, %v1112_v21 }
 0x925   : > { %v1111_v23 = vpop.xlane.xlu1 %1110 }
 0x926   : > { %v1113_v4 = vmul.f32 0.03125, %v1111_v23  ;;  %v1116_v24 = vmul.f32 %v1114_v22, %v1114_v22 }
 0x928   : > { %v1115_v25 = vsub.f32 %v2948_v16, %v1113_v4  ;;  %v1118_v5 = vsel %vm614_vm0, %v1116_v24, 0.0  ;;  %v2298_v4 = vld [vmem:[%s3225_s14] ss:$0 sm:$0xff] }
 0x929   : > { %1119 = vadd.xlane.f32.xlu1 %v1118_v5 }
 0x92a   : > { %v1117_v26 = vmul.f32 %v1115_v25, %v1115_v25 }
 0x92c   : > { %v1121_v27 = vsel %vm618_vm1, %v1117_v26, 0.0 }
 0x92d   : > { %1122 = vadd.xlane.f32.xlu1 %v1121_v27 }
 0x9b6   : > { %v1120_v30 = vpop.xlane.xlu1 %1119 }
 0x9b7   : > { %v1124_v31 = vmul.f32 0.03125, %v1120_v30 }
 0x9b9   : > { %v1126_v32 = vadd.f32 1e-05, %v1124_v31 }
 0x9ba   : > { %v1123_v33 = vpop.xlane.xlu1 %1122 }
 0x9bb   : > { %2657 = vrsqrt.f32 %v1126_v32  ;;  %v1125_v34 = vmul.f32 0.03125, %v1123_v33 }
 0x9bd   : > { %v1127_v35 = vadd.f32 1e-05, %v1125_v34 }
 0x9bf   : > { %2659 = vrsqrt.f32 %v1127_v35 }
 0x9c5   : > { %v2658_v36 = vpop.eup %2657 }
 0x9c6   : > { %v1130_v37 = vmul.f32 %v2658_v36, %v1114_v22 }
 0x9c8   : > { %v1138_v40 = vmul.f32 %v2292_v38, %v1130_v37 }
 0x9c9   : > { %v2660_v39 = vpop.eup %2659 }
 0x9ca   : > { %v1131_v41 = vmul.f32 %v2660_v39, %v1115_v25  ;;  %v1146_v44 = vadd.f32 %v2293_v42, %v1138_v40 }
 0x9cc   : > { %v1139_v43 = vmul.f32 %v2292_v38, %v1131_v41  ;;  %v2621_v41 = vld [vmem:[%s3216_s5 + $0x10] sm:$0xff]  }
 0x9ce   : > { %v1147_v46 = vadd.f32 %v2293_v42, %v1139_v43  ;;  %v2622_v42 = vld [vmem:[%s3216_s5 + $0x18] sm:$0xff]  }
 0x9d0   : > { %v1148_v47 = vpack.c.bf16 %v1147_v46, %v1146_v44 }
 0x9d2   : > { %2489 = vmatmul.mubr.msk.bf16.vlgmr.msra.gmra.mrb[16].mxu1 %vm614_vm0, %v1148_v47 }
 0x9d3   : > { %2516 = vmatprep.mubr.msk.bf16.mxu1 %vm2706_vm2, %v2705_v19  ;;  %2513 = vmatpush3.bf16.msra.mxu1 %v2621_v41 }
 0x9d4   : > { %2514 = vmatprep.subr.bf16.mxu1 %v2705_v19 }
 0x9d7   : > { %2515 = vmatpush3.bf16.msra.mxu1 %v2622_v42 }
 0x9d8   : > { %2520 = vmatprep.subr.bf16.mxu1 %v2705_v19 }
 0xaa5   : > { %v1209_v45 = vpop.f32.mrb[16].mxu1 }
 0xaa6   : > { %v1210_v59 = vadd.f32 %v2294_v58, %v1209_v45  ;;  %v2490_v60 = vpop.f32.mrb[17].mxu1 }
 0xaa7   : > { %v1212_v61 = vpop.f32.mrb[18].mxu1 }
 0xaa8   : > { %v1216_v62 = vmul.f32 %v1210_v59, %v1210_v59  ;;  %v1213_v63 = vadd.f32 %v2294_v58, %v1212_v61  ;;  %v2491_v0 = vpop.f32.mrb[19].mxu1  ;;  %v2310_v58 = vld [vmem:[%s3215_s4 + $0x1] ss:$0 sm:$0xff] }
 0xaaa   : > { %v1218_v1 = vmul.f32 %v1216_v62, %v1210_v59  ;;  %v1217_v2 = vmul.f32 %v1213_v63, %v1213_v63  ;;  %v2321_v62 = vld [vmem:[%s3217_s6 + $0x1] ss:$0 sm:$0xff] }
 0xaac   : > { %v1220_v3 = vmul.f32 0.044715, %v1218_v1  ;;  %v1219_v6 = vmul.f32 %v1217_v2, %v1213_v63 }
 0xaae   : > { %v1222_v7 = vadd.f32 %v1220_v3, %v1210_v59  ;;  %v1221_v8 = vmul.f32 0.044715, %v1219_v6 }
 0xab0   : > { %v1224_v9 = vmul.f32 0.7978846, %v1222_v7  ;;  %v1223_v10 = vadd.f32 %v1221_v8, %v1213_v63 }
 0xab2   : > { %2661 = vtanh.f32 %v1224_v9  ;;  %v1225_v11 = vmul.f32 0.7978846, %v1223_v10 }
 0xab4   : > { %2663 = vtanh.f32 %v1225_v11 }
 0xabc   : > { %v2662_v12 = vpop.eup %2661 }
 0xabd   : > { %v1228_v14 = vadd.f32 1.0, %v2662_v12 }
 0xabe   : > { %v2664_v15 = vpop.eup %2663 }
 0xabf   : > { %v1230_v17 = vmul.f32 0.5, %v1228_v14  ;;  %v1229_v18 = vadd.f32 1.0, %v2664_v15 }
 0xac1   : > { %v1231_v20 = vmul.f32 0.5, %v1229_v18  ;;  %v1232_v21 = vmul.f32 %v1230_v17, %v1210_v59 }
 0xac3   : > { %v1233_v22 = vmul.f32 %v1231_v20, %v1213_v63 }
 0xac5   : > { %v1234_v23 = vpack.c.bf16 %v1233_v22, %v1232_v21 }
 0xac7   : > { %2509 = vmatmul.mubr.bf16.vlgmr.msra.gmra.mrb[12].mxu0 %v1234_v23 }
 0xac8   : > { %2540 = vmatprep.mubr.msk.bf16.mxu0 %vm2706_vm2, %v2705_v19 }
 0xb9a   : > { %v1340_v24 = vpop.f32.mrb[12].mxu0 }
 0xb9b   : > { %v1341_v25 = vadd.f32 %v2298_v4, %v1340_v24  ;;  %v2510_v5 = vpop.f32.mrb[13].mxu0 }
 0xb9c   : > { %v1343_v26 = vpop.f32.mrb[14].mxu0 }
 0xb9d   : > { %v3016_v27 = vadd.f32 %v1341_v25, %v2945_v13  ;;  %v1344_v28 = vadd.f32 %v2298_v4, %v1343_v26  ;;  %v2511_v29 = vpop.f32.mrb[15].mxu0 }
 0xb9f   : > { %v3019_v30 = vadd.f32 %v1344_v28, %v2948_v16  ;;  %v1353_v31 = vsel %vm614_vm0, %v3016_v27, 0.0 }
 0xba0   : > { %1354 = vadd.xlane.f32.xlu1 %v1353_v31 }
 0xba1   : > { %v1356_v32 = vsel %vm618_vm1, %v3019_v30, 0.0 }
 0xba4   : > { %1357 = vadd.xlane.f32.xlu1 %v1356_v32 }
 0xc2d   : > { %v1355_v33 = vpop.xlane.xlu1 %1354 }
 0xc2e   : > { %v1359_v34 = vmul.f32 0.03125, %v1355_v33 }
 0xc30   : > { %v1361_v35 = vsub.f32 %v3016_v27, %v1359_v34 }
 0xc31   : > { %v1358_v36 = vpop.xlane.xlu1 %1357 }
 0xc32   : > { %v1360_v13 = vmul.f32 0.03125, %v1358_v36  ;;  %v1363_v37 = vmul.f32 %v1361_v35, %v1361_v35 }
 0xc34   : > { %v1362_v38 = vsub.f32 %v3019_v30, %v1360_v13  ;;  %v1365_v16 = vsel %vm614_vm0, %v1363_v37, 0.0 }
 0xc35   : > { %1366 = vadd.xlane.f32.xlu0 %v1365_v16 }
 0xc36   : > { %v1364_v39 = vmul.f32 %v1362_v38, %v1362_v38 }
 0xc38   : > { %v1368_v40 = vsel %vm618_vm1, %v1364_v39, 0.0 }
 0xc39   : > { %1369 = vadd.xlane.f32.xlu1 %v1368_v40 }
 0xcc2   : > { %v1367_v43 = vpop.xlane.xlu0 %1366 }
 0xcc3   : > { %v1371_v44 = vmul.f32 0.03125, %v1367_v43 }
 0xcc5   : > { %v1373_v46 = vadd.f32 1e-05, %v1371_v44 }
 0xcc6   : > { %v1370_v47 = vpop.xlane.xlu1 %1369 }
 0xcc7   : > { %2665 = vrsqrt.f32 %v1373_v46  ;;  %v1372_v48 = vmul.f32 0.03125, %v1370_v47 }
 0xcc9   : > { %v1374_v50 = vadd.f32 1e-05, %v1372_v48 }
 0xccb   : > { %2667 = vrsqrt.f32 %v1374_v50 }
 0xcd1   : > { %v2666_v51 = vpop.eup %2665 }
 0xcd2   : > { %v1377_v52 = vmul.f32 %v2666_v51, %v1361_v35 }
 0xcd4   : > { %v1385_v56 = vmul.f32 %v2309_v54, %v1377_v52 }
 0xcd5   : > { %v2668_v55 = vpop.eup %2667 }
 0xcd6   : > { %v1378_v57 = vmul.f32 %v2668_v55, %v1362_v38  ;;  %v1393_v59 = vadd.f32 %v2310_v58, %v1385_v56 }
 0xcd8   : > { %v1386_v45 = vmul.f32 %v2309_v54, %v1378_v57 }
 0xcda   : > { %v1394_v60 = vadd.f32 %v2310_v58, %v1386_v45 }
 0xcdc   : > { %v1409_v61 = vpack.c.bf16 %v1394_v60, %v1393_v59 }
 0xcde   : > { %2517 = vmatmul.mubr.msk.bf16.vlgmr.msra.gmra.mrb[20].mxu1 %vm614_vm0, %v1409_v61 }
 0xcdf   : > { %2522 = vmatprep.mubr.msk.bf16.mxu1 %vm2706_vm2, %v2705_v19 }
 0xdb1   : > { %v1465_v63 = vpop.f32.mrb[20].mxu1 }
 0xdb2   : > { %v2518_v0 = vpop.f32.mrb[21].mxu1  ;;  %v1466_v2 = vadd.f32 %v2321_v62, %v1465_v63  ;;  %v2623_v63 = vld [vmem:[%s3218_s7 + $0x10] sm:$0xff]  }
 0xdb3   : > { %v1468_v1 = vpop.f32.mrb[22].mxu1 }
 0xdb4   : > { %v1469_v3 = vadd.f32 %v2321_v62, %v1468_v1  ;;  %v2519_v6 = vpop.f32.mrb[23].mxu1 }
 0xdb6   : > { %v3049_v7 = vpack.c.bf16 %v1469_v3, %v1466_v2 }
 0xdb8   : > { %1474 = vrot.lane.b32.xlu1 %v3049_v7, %s2707_s27  ;;  %s3245_s27 = smov 64  }
 0xdbc   : > { %1660 = vrot.lane.b32.xlu1 %v3049_v7, %s2708_s28  ;;  %s3246_s28 = smov 48  }
 0xdc0   : > { %1658 = vrot.lane.b32.xlu1 %v3049_v7, %s2709_s29 }
 0xe2a   : > { %v1475_v8 = vpop.permute.xlu1 %1474 }
 0xe2b   : > { %v1480_v9 = vsel %vm736_vm3, %v1475_v8, 0 }
 0xe2c   : > { %2521 = vmatpush3.bf16.xpose.msra.mxu1 %v1480_v9 }
 0xe2d   : > { %2526 = vmatprep.subr.bf16.mxu1 %v2705_v19 }
 0xe2e   : > { %v1661_v10 = vpop.permute.xlu1 %1660 }
 0xe2f   : > { %v1666_v11 = vsel %vm736_vm3, %v1661_v10, 0 }
 0xe30   : > { %2539 = vmatpush3.bf16.xpose.msra.mxu0 %v1666_v11 }
 0xe31   : > { %2550 = vmatprep.subr.bf16.mxu0 %v2705_v19 }
 0xe32   : > { %v1659_v12 = vpop.permute.xlu1 %1658 }
 0xe33   : > { %2523 = vmatmul.mubr.msk.bf16.vlgmr.msra.gmra.mrb[24].mxu1 %vm736_vm3, %v3049_v7 }
 0xe34   : > { %2528 = vmatprep.mubr.msk.bf16.mxu1 %vm2706_vm2, %v2705_v19 }
 0xe37   : > { %2541 = vmatmul.mubr.msk.bf16.vlgmr.msra.gmra.mrb[16].mxu0 %vm736_vm3, %v1659_v12 }
 0xe38   : > { %2552 = vmatprep.mubr.msk.bf16.mxu0 %vm2706_vm2, %v2705_v19 }
 0xf06   : > { %v1516_v14 = vpop.f32.mrb[24].mxu1 }
 0xf07   : > { %v1523_v15 = vmul.f32 0.25, %v1516_v14  ;;  %v2524_v17 = vpop.f32.mrb[25].mxu1 }
 0xf08   : > { %v1519_v18 = vpop.f32.mrb[26].mxu1 }
 0xf09   : > { %v1524_v20 = vmul.f32 0.25, %v1519_v18  ;;  %v2525_v21 = vpop.f32.mrb[27].mxu1  ;;  %v1525_v22 = vadd.f32 %v1523_v15, %v2889_v49  ;;  %v2624_v18 = vld [vmem:[%s3218_s7 + $0x18] sm:$0xff]  }
 0xf0a   : > { %v1702_v23 = vpop.f32.mrb[16].mxu0  ;;  %2551 = vmatpush3.bf16.msra.mxu0 %v2624_v18 }
 0xf0b   : > { %v2542_v4 = vpop.f32.mrb[17].mxu0  ;;  %v1527_v24 = vsel %vm788_vm4, %v1525_v22, -inf  ;;  %v1526_v25 = vadd.f32 %v1524_v20, %v2894_v53  ;;  %2564 = vmatprep.subr.bf16.mxu0 %v2705_v19 }
 0xf0c   : > { %v1705_v5 = vpop.f32.mrb[18].mxu0  ;;  %1528 = vmax.xlane.f32.xlu0 %v1527_v24 }
 0xf0d   : > { %v1710_v26 = vmul.f32 0.25, %v1705_v5  ;;  %v2543_v28 = vpop.f32.mrb[19].mxu0  ;;  %v1530_v29 = vsel %vm792_vm5, %v1526_v25, -inf }
 0xf0e   : > { %1531 = vmax.xlane.f32.xlu1 %v1530_v29  ;;  %v2329_v28 = vld [vmem:[%s3219_s8 + $0x1] ss:$0 sm:$0xff] }
 0xf0f   : > { %v1712_v31 = vadd.f32 %v1710_v26, %v2894_v53  ;;  %v1709_v53 = vmul.f32 0.25, %v1702_v23 }
 0xf11   : > { %v1716_v32 = vsel %vm792_vm5, %v1712_v31, -inf  ;;  %v1711_v41 = vadd.f32 %v1709_v53, %v2889_v49 }
 0xf12   : > { %1717 = vmax.xlane.f32.xlu1 %v1716_v32 }
 0xf13   : > { %v1713_v42 = vsel %vm788_vm4, %v1711_v41, -inf }
 0xf99   : > { %v1529_v33 = vpop.xlane.xlu0 %1528 }
 0xf9a   : > { %v1533_v34 = vsub.f32 %v1525_v22, %v1529_v33 }
 0xf9b   : > { %v1532_v35 = vpop.xlane.xlu1 %1531 }
 0xf9c   : > { %v1535_v36 = vmul.f32 1.442695, %v1533_v34  ;;  %v1534_v13 = vsub.f32 %v1526_v25, %v1532_v35 }
 0xf9e   : > { %2669 = vpow2.f32 %v1535_v36  ;;  %v1537_v37 = vmul.f32 1.442695, %v1534_v13 }
 0xf9f   : > { %v1718_v49 = vpop.xlane.xlu1 %1717 }
 0xfa0   : > { %2671 = vpow2.f32 %v1537_v37  ;;  %v1720_v55 = vsub.f32 %v1712_v31, %v1718_v49 }
 0xfa2   : > { %v1723_v58 = vmul.f32 1.442695, %v1720_v55 }
 0xfa8   : > { %v2670_v38 = vpop.eup %2669 }
 0xfa9   : > { %v1539_v16 = vsel %vm788_vm4, %v2670_v38, 0.0 }
 0xfaa   : > { %v2672_v39 = vpop.eup %2671  ;;  %1540 = vadd.xlane.f32.xlu0 %v1539_v16 }
 0xfab   : > { %v1542_v40 = vsel %vm792_vm5, %v2672_v39, 0.0 }
 0xfae   : > { %1543 = vadd.xlane.f32.xlu0 %v1542_v40 }
 0xfc4   : > { %1550 = vrot.lane.b32.xlu0 %v3049_v7, %s3245_s27 }
 0xfe3   : > { %1714 = vmax.xlane.f32.xlu0 %v1713_v42 }
0x1037   : > { %v1541_v43 = vpop.xlane.xlu0 %1540 }
0x1038   : > { %2673 = vrcp.f32 %v1541_v43 }
0x103b   : > { %v1544_v44 = vpop.xlane.xlu0 %1543 }
0x103c   : > { %2675 = vrcp.f32 %v1544_v44 }
0x103f   : > { %v1551_v46 = vpop.permute.xlu0 %1550 }
0x1040   : > { %v1556_v47 = vsel %vm818_vm6, %v1551_v46, 0 }
0x1041   : > { %2527 = vmatpush3.bf16.msra.mxu1 %v1556_v47 }
0x1042   : > { %2532 = vmatprep.subr.bf16.mxu1 %v2705_v19  ;;  %v2674_v48 = vpop.eup %2673 }
0x1043   : > { %v1547_v51 = vmul.f32 %v2674_v48, %v2670_v38  ;;  %v2625_v48 = vld [vmem:[%s3222_s11 + $0x10] sm:$0xff]  }
0x1046   : > { %v2676_v50 = vpop.eup %2675 }
0x1047   : > { %v1548_v52 = vmul.f32 %v2676_v50, %v2672_v39  ;;  %v2626_v50 = vld [vmem:[%s3222_s11 + $0x18] sm:$0xff]  }
0x1049   : > { %v1549_v54 = vpack.c.bf16 %v1548_v52, %v1547_v51 }
0x104b   : > { %2529 = vmatmul.mubr.msk.bf16.vlgmr.msra.gmra.mrb[28].mxu1 %vm788_vm4, %v1549_v54 }
0x104c   : > { %2534 = vmatprep.mubr.msk.bf16.mxu1 %vm2706_vm2, %v2705_v19  ;;  %2533 = vmatpush3.bf16.msra.mxu1 %v2623_v63 }
0x104d   : > { %2544 = vmatprep.subr.bf16.mxu1 %v2705_v19 }
0x1070   : > { %v1715_v56 = vpop.xlane.xlu0 %1714 }
0x1071   : > { %v1719_v57 = vsub.f32 %v1711_v41, %v1715_v56 }
0x1073   : > { %v1721_v45 = vmul.f32 1.442695, %v1719_v57 }
0x1075   : > { %2677 = vpow2.f32 %v1721_v45  ;;  %v2336_v45 = vld [vmem:[%s3220_s9 + $0x1] ss:$0 sm:$0xff] }
0x1076   : > { %2679 = vpow2.f32 %v1723_v58 }
0x107f   : > { %v2678_v59 = vpop.eup %2677 }
0x1080   : > { %v1725_v60 = vsel %vm788_vm4, %v2678_v59, 0.0  ;;  %v2680_v61 = vpop.eup %2679 }
0x1081   : > { %1726 = vadd.xlane.f32.xlu1 %v1725_v60  ;;  %v1728_v62 = vsel %vm792_vm5, %v2680_v61, 0.0 }
0x1085   : > { %1729 = vadd.xlane.f32.xlu1 %v1728_v62  ;;  %v2337_v62 = vld [vmem:[%s3221_s10 + $0x1] ss:$0 sm:$0xff] }
0x1096   : > { %1736 = vrot.lane.b32.xlu1 %v3049_v7, %s3246_s28 }
0x110e   : > { %v1727_v0 = vpop.xlane.xlu1 %1726 }
0x1112   : > { %v1730_v1 = vpop.xlane.xlu1 %1729 }
0x1113   : > { %2681 = vrcp.f32 %v1730_v1 }
0x1114   : > { %2683 = vrcp.f32 %v1727_v0 }
0x1116   : > { %v1737_v6 = vpop.permute.xlu1 %1736 }
0x1117   : > { %v1742_v7 = vsel %vm818_vm6, %v1737_v6, 0  ;;  %v2628_v6 = vld [vmem:[%s3224_s13 + $0x48] sm:$0xff]  }
0x111d   : > { %v2682_v11 = vpop.eup %2681 }
0x111e   : > { %v1592_v2 = vpop.f32.mrb[28].mxu1  ;;  %v2684_v12 = vpop.eup %2683  ;;  %v1734_v14 = vmul.f32 %v2682_v11, %v2680_v61  ;;  %v2632_v11 = vld [vmem:[%s3224_s13 + $0x68] sm:$0xff]  }
0x111f   : > { %v2530_v3 = vpop.f32.mrb[29].mxu1  ;;  %v1733_v15 = vmul.f32 %v2684_v12, %v2678_v59  ;;  %v2634_v12 = vld [vmem:[%s3224_s13 + $0x78] sm:$0xff]  }
0x1120   : > { %v1595_v8 = vpop.f32.mrb[30].mxu1  ;;  %v2627_v3 = vld [vmem:[%s3224_s13 + $0x40] sm:$0xff]  }
0x1121   : > { %v1599_v9 = vpack.c.bf16 %v1595_v8, %v1592_v2  ;;  %v2531_v10 = vpop.f32.mrb[31].mxu1  ;;  %v1735_v17 = vpack.c.bf16 %v1734_v14, %v1733_v15  ;;  %v2629_v8 = vld [vmem:[%s3224_s13 + $0x50] sm:$0xff]   ;;  %v2343_v14 = vld [vmem:[%s3223_s12 + $0x1] ss:$0 sm:$0xff] }
0x1122   : > { %v2631_v10 = vld [vmem:[%s3224_s13 + $0x60] sm:$0xff]  }
0x1123   : > { %2535 = vmatmul.mubr.msk.bf16.vlgmr.msra.gmra.mrb[32].mxu1 %vm736_vm3, %v1599_v9  ;;  %v2630_v9 = vld [vmem:[%s3224_s13 + $0x58] sm:$0xff]  }
0x1124   : > { %2545 = vmatpush3.bf16.msra.mxu1 %v1742_v7  ;;  %2546 = vmatprep.mubr.msk.bf16.mxu1 %vm2706_vm2, %v2705_v19  ;;  %v2633_v7 = vld [vmem:[%s3224_s13 + $0x70] sm:$0xff]  }
0x1125   : > { %2556 = vmatprep.subr.bf16.mxu1 %v2705_v19 }
0x112b   : > { %2547 = vmatmul.mubr.msk.bf16.vlgmr.msra.gmra.mrb[36].mxu1 %vm788_vm4, %v1735_v17 }
0x112c   : > { %2560 = vmatprep.mubr.msk.bf16.mxu1 %vm2706_vm2, %v2705_v19  ;;  %2557 = vmatpush3.bf16.msra.mxu1 %v2625_v48 }
0x112d   : > { %2558 = vmatprep.subr.bf16.mxu1 %v2705_v19 }
0x1130   : > { %2559 = vmatpush3.bf16.msra.mxu1 %v2626_v50 }
0x1131   : > { %2584 = vmatprep.subr.bf16.mxu1 %v2705_v19 }
0x11f6   : > { %v1643_v20 = vpop.f32.mrb[32].mxu1 }
0x11f7   : > { %v2536_v21 = vpop.f32.mrb[33].mxu1  ;;  %v1656_v29 = vadd.f32 %v2329_v28, %v1643_v20 }
0x11f8   : > { %v1646_v22 = vpop.f32.mrb[34].mxu1 }
0x11f9   : > { %v2537_v23 = vpop.f32.mrb[35].mxu1  ;;  %v1657_v32 = vadd.f32 %v2329_v28, %v1646_v22 }
0x11fe   : > { %v1778_v4 = vpop.f32.mrb[36].mxu1 }
0x11ff   : > { %v2548_v24 = vpop.f32.mrb[37].mxu1 }
0x1200   : > { %v1781_v25 = vpop.f32.mrb[38].mxu1 }
0x1201   : > { %v1785_v5 = vpack.c.bf16 %v1781_v25, %v1778_v4  ;;  %v2549_v26 = vpop.f32.mrb[39].mxu1 }
0x1203   : > { %2553 = vmatmul.mubr.msk.bf16.vlgmr.msra.gmra.mrb[20].mxu0 %vm736_vm3, %v1785_v5 }
0x1204   : > { %2580 = vmatprep.mubr.msk.bf16.mxu0 %vm2706_vm2, %v2705_v19  ;;  %2565 = vmatpush3.bf16.msra.mxu0 %v2627_v3 }
0x1205   : > { %2566 = vmatprep.subr.bf16.mxu0 %v2705_v19 }
0x1208   : > { %2567 = vmatpush3.bf16.msra.mxu0 %v2628_v6 }
0x1209   : > { %2568 = vmatprep.subr.bf16.mxu0 %v2705_v19 }
0x120c   : > { %2569 = vmatpush3.bf16.msra.mxu0 %v2629_v8  ;;  %v2373_v8 = vld [vmem:[%s3226_s15] ss:$0 sm:$0xff] }
0x120d   : > { %2570 = vmatprep.subr.bf16.mxu0 %v2705_v19 }
0x1210   : > { %2571 = vmatpush3.bf16.msra.mxu0 %v2630_v9 }
0x1211   : > { %2572 = vmatprep.subr.bf16.mxu0 %v2705_v19 }
0x1214   : > { %2573 = vmatpush3.bf16.msra.mxu0 %v2631_v10 }
0x1215   : > { %2574 = vmatprep.subr.bf16.mxu0 %v2705_v19 }
0x1218   : > { %2575 = vmatpush3.bf16.msra.mxu0 %v2632_v11 }
0x1219   : > { %2576 = vmatprep.subr.bf16.mxu0 %v2705_v19 }
0x121c   : > { %2577 = vmatpush3.bf16.msra.mxu0 %v2633_v7 }
0x121d   : > { %2578 = vmatprep.subr.bf16.mxu0 %v2705_v19 }
0x1220   : > { %2579 = vmatpush3.bf16.msra.mxu0 %v2634_v12 }
0x12d6   : > { %v1829_v31 = vpop.f32.mrb[20].mxu0 }
0x12d7   : > { %v1836_v33 = vadd.f32 %v1829_v31, %v1656_v29  ;;  %v2554_v34 = vpop.f32.mrb[21].mxu0 }
0x12d8   : > { %v1832_v35 = vpop.f32.mrb[22].mxu0 }
0x12d9   : > { %v3112_v36 = vadd.f32 %v1836_v33, %v3016_v27  ;;  %v1837_v13 = vadd.f32 %v1832_v35, %v1657_v32  ;;  %v2555_v37 = vpop.f32.mrb[23].mxu0 }
0x12db   : > { %v3115_v38 = vadd.f32 %v1837_v13, %v3019_v30  ;;  %v1844_v16 = vsel %vm614_vm0, %v3112_v36, 0.0 }
0x12dc   : > { %1845 = vadd.xlane.f32.xlu0 %v1844_v16 }
0x12dd   : > { %v1847_v39 = vsel %vm618_vm1, %v3115_v38, 0.0 }
0x12de   : > { %1848 = vadd.xlane.f32.xlu1 %v1847_v39 }
0x1369   : > { %v1846_v40 = vpop.xlane.xlu0 %1845 }
0x136a   : > { %v1850_v53 = vmul.f32 0.03125, %v1846_v40 }
0x136b   : > { %v1849_v41 = vpop.xlane.xlu1 %1848 }
0x136c   : > { %v1852_v42 = vsub.f32 %v3112_v36, %v1850_v53  ;;  %v1851_v27 = vmul.f32 0.03125, %v1849_v41  ;;  %v2364_v41 = vld [vmem:[%s3225_s14 + $0x1] ss:$0 sm:$0xff] }
0x136e   : > { %v1853_v43 = vsub.f32 %v3115_v38, %v1851_v27  ;;  %v1854_v44 = vmul.f32 %v1852_v42, %v1852_v42 }
0x1370   : > { %v1856_v30 = vsel %vm614_vm0, %v1854_v44, 0.0  ;;  %v1855_v46 = vmul.f32 %v1853_v43, %v1853_v43 }
0x1371   : > { %1857 = vadd.xlane.f32.xlu0 %v1856_v30 }
0x1372   : > { %v1859_v47 = vsel %vm618_vm1, %v1855_v46, 0.0 }
0x1375   : > { %1860 = vadd.xlane.f32.xlu0 %v1859_v47 }
0x13fe   : > { %v1858_v51 = vpop.xlane.xlu0 %1857 }
0x13ff   : > { %v1862_v52 = vmul.f32 0.03125, %v1858_v51 }
0x1401   : > { %v1864_v54 = vadd.f32 1e-05, %v1862_v52 }
0x1402   : > { %v1861_v49 = vpop.xlane.xlu0 %1860 }
0x1403   : > { %2685 = vrsqrt.f32 %v1864_v54  ;;  %v1863_v55 = vmul.f32 0.03125, %v1861_v49 }
0x1405   : > { %v1865_v56 = vadd.f32 1e-05, %v1863_v55 }
0x1407   : > { %2687 = vrsqrt.f32 %v1865_v56 }
0x140d   : > { %v2686_v57 = vpop.eup %2685 }
0x140e   : > { %v1868_v58 = vmul.f32 %v2686_v57, %v1852_v42 }
0x1410   : > { %v1876_v60 = vmul.f32 %v2336_v45, %v1868_v58 }
0x1411   : > { %v2688_v59 = vpop.eup %2687 }
0x1412   : > { %v1869_v61 = vmul.f32 %v2688_v59, %v1853_v43  ;;  %v1884_v0 = vadd.f32 %v2337_v62, %v1876_v60  ;;  %v2636_v60 = vld [vmem:[%s3228_s17 + $0x8] sm:$0xff]  }
0x1414   : > { %v1877_v63 = vmul.f32 %v2336_v45, %v1869_v61 }
0x1416   : > { %v1885_v1 = vadd.f32 %v2337_v62, %v1877_v63 }
0x1418   : > { %v1886_v2 = vpack.c.bf16 %v1885_v1, %v1884_v0 }
0x141a   : > { %2561 = vmatmul.mubr.msk.bf16.vlgmr.msra.gmra.mrb[40].mxu1 %vm614_vm0, %v1886_v2 }
0x141b   : > { %2588 = vmatprep.mubr.msk.bf16.mxu1 %vm2706_vm2, %v2705_v19 }
0x14ed   : > { %v1949_v15 = vpop.f32.mrb[40].mxu1 }
0x14ee   : > { %v1950_v17 = vadd.f32 %v2343_v14, %v1949_v15  ;;  %v2562_v18 = vpop.f32.mrb[41].mxu1 }
0x14ef   : > { %v1952_v20 = vpop.f32.mrb[42].mxu1 }
0x14f0   : > { %v1956_v21 = vmul.f32 %v1950_v17, %v1950_v17  ;;  %v1953_v22 = vadd.f32 %v2343_v14, %v1952_v20  ;;  %v2563_v23 = vpop.f32.mrb[43].mxu1 }
0x14f2   : > { %v1958_v4 = vmul.f32 %v1956_v21, %v1950_v17  ;;  %v1957_v24 = vmul.f32 %v1953_v22, %v1953_v22 }
0x14f4   : > { %v1960_v25 = vmul.f32 0.044715, %v1958_v4  ;;  %v1959_v5 = vmul.f32 %v1957_v24, %v1953_v22 }
0x14f6   : > { %v1962_v26 = vadd.f32 %v1960_v25, %v1950_v17  ;;  %v1961_v28 = vmul.f32 0.044715, %v1959_v5 }
0x14f8   : > { %v1964_v29 = vmul.f32 0.7978846, %v1962_v26  ;;  %v1963_v31 = vadd.f32 %v1961_v28, %v1953_v22 }
0x14fa   : > { %2689 = vtanh.f32 %v1964_v29  ;;  %v1965_v32 = vmul.f32 0.7978846, %v1963_v31 }
0x14fc   : > { %2691 = vtanh.f32 %v1965_v32 }
0x1504   : > { %v2690_v33 = vpop.eup %2689 }
0x1505   : > { %v1968_v34 = vadd.f32 1.0, %v2690_v33 }
0x1506   : > { %v2692_v35 = vpop.eup %2691 }
0x1507   : > { %v1970_v13 = vmul.f32 0.5, %v1968_v34  ;;  %v1969_v37 = vadd.f32 1.0, %v2692_v35 }
0x1509   : > { %v1971_v16 = vmul.f32 0.5, %v1969_v37  ;;  %v1972_v39 = vmul.f32 %v1970_v13, %v1950_v17 }
0x150b   : > { %v1973_v40 = vmul.f32 %v1971_v16, %v1953_v22  ;;  %v2375_v22 = vld [vmem:[%s3229_s18] ss:$0 sm:$0xff] }
0x150d   : > { %v1974_v53 = vpack.c.bf16 %v1973_v40, %v1972_v39 }
0x150f   : > { %2581 = vmatmul.mubr.bf16.vlgmr.msra.gmra.mrb[24].mxu0 %v1974_v53 }
0x15e2   : > { %v2082_v42 = vpop.f32.mrb[24].mxu0 }
0x15e3   : > { %v2083_v27 = vadd.f32 %v2364_v41, %v2082_v42  ;;  %v2582_v43 = vpop.f32.mrb[25].mxu0 }
0x15e4   : > { %v2085_v44 = vpop.f32.mrb[26].mxu0 }
0x15e5   : > { %v2086_v30 = vadd.f32 %v2364_v41, %v2085_v44  ;;  %v2583_v46 = vpop.f32.mrb[27].mxu0  ;;  %v2089_v47 = vadd.f32 %v2083_v27, %v3112_v36 }
0x15e7   : > { %v2093_v48 = vsel %vm614_vm0, %v2089_v47, 0.0  ;;  %v2090_v50 = vadd.f32 %v2086_v30, %v3115_v38  ;;  %v2635_v38 = vld [vmem:[%s3228_s17] sm:$0xff]  }
0x15e8   : > { %2094 = vadd.xlane.f32.xlu0 %v2093_v48  ;;  %2585 = vmatpush3.bf16.msra.mxu1 %v2635_v38 }
0x15e9   : > { %v2096_v51 = vsel %vm618_vm1, %v2090_v50, 0.0  ;;  %2586 = vmatprep.subr.bf16.mxu1 %v2705_v19  ;;  %v2374_v19 = vld [vmem:[%s3227_s16] ss:$0 sm:$0xff] }
0x15ec   : > { %2097 = vadd.xlane.f32.xlu0 %v2096_v51  ;;  %2587 = vmatpush3.bf16.msra.mxu1 %v2636_v60 }
0x1675   : > { %v2095_v52 = vpop.xlane.xlu0 %2094 }
0x1676   : > { %v2099_v54 = vmul.f32 0.03125, %v2095_v52 }
0x1678   : > { %v2101_v49 = vsub.f32 %v2089_v47, %v2099_v54 }
0x1679   : > { %v2098_v55 = vpop.xlane.xlu0 %2097 }
0x167a   : > { %v2100_v56 = vmul.f32 0.03125, %v2098_v55  ;;  %v2103_v57 = vmul.f32 %v2101_v49, %v2101_v49 }
0x167c   : > { %v2102_v58 = vsub.f32 %v2090_v50, %v2100_v56  ;;  %v2105_v45 = vsel %vm614_vm0, %v2103_v57, 0.0 }
0x167d   : > { %2106 = vadd.xlane.f32.xlu0 %v2105_v45 }
0x167e   : > { %v2104_v59 = vmul.f32 %v2102_v58, %v2102_v58 }
0x1680   : > { %v2108_v36 = vsel %vm618_vm1, %v2104_v59, 0.0 }
0x1681   : > { %2109 = vadd.xlane.f32.xlu0 %v2108_v36 }
0x170a   : > { %v2107_v61 = vpop.xlane.xlu0 %2106 }
0x170b   : > { %v2111_v62 = vmul.f32 0.03125, %v2107_v61 }
0x170d   : > { %v2113_v63 = vadd.f32 1e-05, %v2111_v62 }
0x170e   : > { %v2110_v0 = vpop.xlane.xlu0 %2109 }
0x170f   : > { %2693 = vrsqrt.f32 %v2113_v63  ;;  %v2112_v1 = vmul.f32 0.03125, %v2110_v0 }
0x1711   : > { %v2114_v2 = vadd.f32 1e-05, %v2112_v1 }
0x1713   : > { %2695 = vrsqrt.f32 %v2114_v2 }
0x1719   : > { %v2694_v3 = vpop.eup %2693 }
0x171a   : > { %v2117_v6 = vmul.f32 %v2694_v3, %v2101_v49 }
0x171c   : > { %v2125_v10 = vmul.f32 %v2373_v8, %v2117_v6 }
0x171d   : > { %v2696_v9 = vpop.eup %2695 }
0x171e   : > { %v2118_v11 = vmul.f32 %v2696_v9, %v2102_v58  ;;  %v2133_v12 = vadd.f32 %v2374_v19, %v2125_v10 }
0x1720   : > { %v2126_v7 = vmul.f32 %v2373_v8, %v2118_v11 }
0x1722   : > { %v2134_v14 = vadd.f32 %v2374_v19, %v2126_v7 }
0x1724   : > { %v2135_v15 = vpack.c.bf16 %v2134_v14, %v2133_v12 }
0x1726   : > { %v2150_v17 = vshll.u32 %v2135_v15, 16  ;;  %v2148_v18 = vshrl.u32 %v2135_v15, 16 }
0x1728   : > { %v2152_v20 = vrot.slane %v2150_v17, 1 }
0x172a   : > { %v2153_v21 = vor.u32 %v2152_v20, %v2148_v18 }
0x172c   : > { %2589 = vmatmul.mubr.msk.bf16.vlgmr.msra.gmra.mrb[44].mxu1 %vm614_vm0, %v2153_v21 }
0x17ff   : > { %v2203_v23 = vpop.f32.mrb[44].mxu1 }
0x1800   : > { %v2204_v4 = vadd.f32 %v2375_v22, %v2203_v23  ;;  %v2590_v24 = vpop.f32.mrb[45].mxu1 }
0x1801   : > { %v2206_v25 = vpop.f32.mrb[46].mxu1 }
0x1802   : > { %2210 = vst.msk [vmem:[%s602_s21] sm:$0xff] %vm736_vm3, %v2204_v4  ;;  %v2207_v5 = vadd.f32 %v2375_v22, %v2206_v25  ;;  %v2591_v26 = vpop.f32.mrb[47].mxu1 }
0x1804   : > { %2212 = vst.msk [vmem:[%s602_s21 + $0x8] sm:$0x1] %vm2211_vm7, %v2207_v5 }
0x1805 PF: > { %s29_s0 = sadd.s32 1, %s2703_s0  }
0x1806   : > { %p26_p4 = scmp.ge.s32.totalorder %s29_s0, 4  }
0x1808   :  { %28 = sbr.rel (!%p26_p4) target bundleno = 5 (0x5), region = 138 }

</bundles_post_ra>
